<compile_context>
chip_gen: v7x
topology: tpu7x:2x2x1
jax: 0.10.0
libtpu: 0.0.40
codegen_flags: <defaults>
</compile_context>

<pallas_src>
import functools

import jax
import jax.numpy as jnp
from jax.experimental import pallas as pl
from jax.experimental.pallas import tpu as pltpu  # noqa: F401  (TPU backend)

EPS = 1e-5  # nn.LayerNorm default eps


# ----------------------------------------------------------------------------
# Fused forward kernel
# ----------------------------------------------------------------------------
def _layer_norm(y, gamma, beta):
    """LayerNorm over last dim, f32 math (v5e-safe)."""
    mu = jnp.mean(y, axis=-1, keepdims=True)
    var = jnp.mean((y - mu) ** 2, axis=-1, keepdims=True)
    return (y - mu) * jax.lax.rsqrt(var + EPS) * gamma + beta


def _vit_fused_kernel(xpat_ref, pos_ref, pe_w_ref, pe_b_ref,
                      wqkv_ref, bqkv_ref, wo_ref, bo_ref,
                      ln1_g_ref, ln1_b_ref,
                      ff_w1_ref, ff_b1_ref, ff_w2_ref, ff_b2_ref,
                      ln2_g_ref, ln2_b_ref,
                      ue_w_ref, ue_b_ref,
                      o_ref, *, B, NP, D, nhead, num_layers):
    """Whole ViT forward for the full batch, everything resident in VMEM.

    xpat_ref: (B*NP, patch_dim)  patchified input (also the residual base).
    o_ref:    (B*NP, patch_dim)  clamp(x_patches + predicted_residual, 0, 1).
    """
    M = B * NP
    hd = D // nhead
    scale = 1.0 / float(hd) ** 0.5

    xp = xpat_ref[...].astype(jnp.float32)                        # (M, PD)

    # ---- patch_embed + positional embedding --------------------------------
    h = jnp.dot(xp, pe_w_ref[...], preferred_element_type=jnp.float32)
    h = h + pe_b_ref[...]
    pos = pos_ref[...]                                            # (NP, D)
    h = h + jnp.concatenate([pos] * B, axis=0)                    # (M, D)

    # ---- transformer encoder layers (post-norm, ReLU FFN), static unroll ---
    for l in range(num_layers):
        # Fused QKV projection: one (M, D) x (D, 3D) MXU pass.
        qkv = jnp.dot(h, wqkv_ref[l], preferred_element_type=jnp.float32)
        qkv = qkv + bqkv_ref[l]                                   # (M, 3D)
        q = (qkv[:, 0 * D:1 * D] * scale).reshape(B, NP, D)       # scale once
        k = qkv[:, 1 * D:2 * D].reshape(B, NP, D)
        v = qkv[:, 2 * D:3 * D].reshape(B, NP, D)

        # Multi-head attention; whole batch per einsum (batch dim = B).
        ctx_heads = []
        for hh in range(nhead):
            sl = slice(hh * hd, (hh + 1) * hd)
            s = jnp.einsum('bqd,bkd->bqk', q[:, :, sl], k[:, :, sl],
                           preferred_element_type=jnp.float32)    # (B, NP, NP)
            s = s - jnp.max(s, axis=-1, keepdims=True)
            p = jnp.exp(s)
            denom = jnp.sum(p, axis=-1, keepdims=True)
            p = p * pl.reciprocal(denom, approx=True)             # EUP divide
            ctx_heads.append(jnp.einsum('bqk,bkd->bqd', p, v[:, :, sl],
                                        preferred_element_type=jnp.float32))
        ctx = jnp.concatenate(ctx_heads, axis=-1).reshape(M, D)
        attn = jnp.dot(ctx, wo_ref[l], preferred_element_type=jnp.float32)
        attn = attn + bo_ref[l]

        # Add & Norm 1 (post-norm).
        h = _layer_norm(h + attn, ln1_g_ref[l], ln1_b_ref[l])

        # FFN: linear -> ReLU -> linear, intermediate stays in VMEM/vregs.
        ff = jnp.dot(h, ff_w1_ref[l], preferred_element_type=jnp.float32)
        ff = jnp.maximum(ff + ff_b1_ref[l], 0.0)
        ff = jnp.dot(ff, ff_w2_ref[l], preferred_element_type=jnp.float32)
        ff = ff + ff_b2_ref[l]

        # Add & Norm 2.
        h = _layer_norm(h + ff, ln2_g_ref[l], ln2_b_ref[l])

    # ---- patch_unembed -> residual (patch layout) -> add + clamp(0, 1) -----
    res = jnp.dot(h, ue_w_ref[...], preferred_element_type=jnp.float32)
    res = res + ue_b_ref[...]
    o_ref[...] = jnp.clip(xp + res, 0.0, 1.0).astype(o_ref.dtype)


# ----------------------------------------------------------------------------
# JAX glue: patchify / unpatchify (pure layout, matches PyTorch exactly)
# ----------------------------------------------------------------------------
def patchify(imgs, p):
    b, c, h, w = imgs.shape
    x = imgs.reshape(b, c, h // p, p, w // p, p)
    x = jnp.transpose(x, (0, 2, 4, 3, 5, 1))
    return x.reshape(b, (h // p) * (w // p), p * p * c)


def unpatchify(patches, p, c, h, w):
    b = patches.shape[0]
    x = patches.reshape(b, h // p, w // p, p, p, c)
    x = jnp.transpose(x, (0, 5, 1, 3, 2, 4))
    return x.reshape(b, c, h, w)


# ----------------------------------------------------------------------------
# Parameters (deterministic synthetic init, layer weights stacked along L)
# ----------------------------------------------------------------------------
def init_params(key, *, in_channels, patch_size, image_size, embed_dim,
                num_layers):
    p = patch_size
    PD = in_channels * p * p
    NP = (image_size // p) ** 2
    D = embed_dim
    k_pe, k_pos, k_ue, k_layers = jax.random.split(key, 4)

    def w(k, shape, std=0.02):
        return std * jax.random.normal(k, shape, jnp.float32)

    names = ("wqkv", "bqkv", "wo", "bo", "ln1_g", "ln1_b",
             "ff_w1", "ff_b1", "ff_w2", "ff_b2", "ln2_g", "ln2_b")
    layers = {n: [] for n in names}
    for lk in jax.random.split(k_layers, num_layers):
        k1, k2, k3, k4 = jax.random.split(lk, 4)
        layers["wqkv"].append(w(k1, (D, 3 * D)))          # fused Wq|Wk|Wv
        layers["bqkv"].append(jnp.zeros((1, 3 * D), jnp.float32))
        layers["wo"].append(w(k2, (D, D)))
        layers["bo"].append(jnp.zeros((1, D), jnp.float32))
        layers["ln1_g"].append(jnp.ones((1, D), jnp.float32))
        layers["ln1_b"].append(jnp.zeros((1, D), jnp.float32))
        layers["ff_w1"].append(w(k3, (D, 4 * D)))
        layers["ff_b1"].append(jnp.zeros((1, 4 * D), jnp.float32))
        layers["ff_w2"].append(w(k4, (4 * D, D)))
        layers["ff_b2"].append(jnp.zeros((1, D), jnp.float32))
        layers["ln2_g"].append(jnp.ones((1, D), jnp.float32))
        layers["ln2_b"].append(jnp.zeros((1, D), jnp.float32))

    params = {
        "patch_embed_w": w(k_pe, (PD, D)),
        "patch_embed_b": jnp.zeros((1, D), jnp.float32),
        "pos_embedding": w(k_pos, (NP, D)),               # std=0.02 (_init_weights)
        # NOTE: PyTorch zero-inits patch_unembed (=> trivial residual); we use
        # small random values so the full residual path is exercised.
        "unembed_w": w(k_ue, (D, PD)),
        "unembed_b": jnp.zeros((1, PD), jnp.float32),
    }
    params.update({n: jnp.stack(v) for n, v in layers.items()})
    return params


# ----------------------------------------------------------------------------
# Forward pass (mirrors VisionTransformerForRegression.forward), 1 pallas_call
# ----------------------------------------------------------------------------
def _full_spec(shape):
    nd = len(shape)
    return pl.BlockSpec(shape, lambda i, _nd=nd: (0,) * _nd)


def vit_forward(params, x, *, patch_size, nhead):
    B, C, H, W = x.shape
    p = patch_size
    D = params["patch_embed_w"].shape[1]
    PD = C * p * p
    NP = (H // p) * (W // p)
    L = params["wqkv"].shape[0]
    M = B * NP

    xpat = patchify(x, p).reshape(M, PD)                  # layout only

    args = (
        xpat,
        params["pos_embedding"],
        params["patch_embed_w"], params["patch_embed_b"],
        params["wqkv"], params["bqkv"], params["wo"], params["bo"],
        params["ln1_g"], params["ln1_b"],
        params["ff_w1"], params["ff_b1"], params["ff_w2"], params["ff_b2"],
        params["ln2_g"], params["ln2_b"],
        params["unembed_w"], params["unembed_b"],
    )

    out_pat = pl.pallas_call(
        functools.partial(_vit_fused_kernel, B=B, NP=NP, D=D,
                          nhead=nhead, num_layers=int(L)),
        out_shape=jax.ShapeDtypeStruct((M, PD), x.dtype),
        grid=(1,),
        in_specs=[_full_spec(a.shape) for a in args],
        out_specs=_full_spec((M, PD)),
    )(*args)

    return unpatchify(out_pat.reshape(B, NP, PD), p, C, H, W)  # layout only


# ----------------------------------------------------------------------------
if __name__ == "__main__":
    key = jax.random.PRNGKey(0)
    kp, kx = jax.random.split(key)

    # Small config consistent with the module: image_size % patch_size == 0.
    B, C, H, W = 2, 4, 16, 16
    PATCH, EMBED, NHEAD, NLAYERS = 4, 32, 4, 2

    params = init_params(kp, in_channels=C, patch_size=PATCH, image_size=H,
                         embed_dim=EMBED, num_layers=NLAYERS)
    x = jax.random.uniform(kx, (B, C, H, W), jnp.float32)  # image-like input

    fwd = jax.jit(functools.partial(vit_forward, patch_size=PATCH, nhead=NHEAD))
    out = jax.block_until_ready(fwd(params, x))

    assert out.shape == (B, C, H, W)
    assert bool(jnp.all(jnp.isfinite(out)))
    assert bool(jnp.all(out >= 0.0)) and bool(jnp.all(out <= 1.0))
    print("KERNEL_OK")
</pallas_src>

<mosaic_0001>
module attributes {stable_mosaic.version = 11 : i64} {
  func.func @_vit_fused_kernel(%arg0: i32, %arg1: memref<32x64xf32, #tpu.memory_space<vmem>>, %arg2: memref<16x32xf32, #tpu.memory_space<vmem>>, %arg3: memref<64x32xf32, #tpu.memory_space<vmem>>, %arg4: memref<1x32xf32, #tpu.memory_space<vmem>>, %arg5: memref<2x32x96xf32, #tpu.memory_space<vmem>>, %arg6: memref<2x1x96xf32, #tpu.memory_space<vmem>>, %arg7: memref<2x32x32xf32, #tpu.memory_space<vmem>>, %arg8: memref<2x1x32xf32, #tpu.memory_space<vmem>>, %arg9: memref<2x1x32xf32, #tpu.memory_space<vmem>>, %arg10: memref<2x1x32xf32, #tpu.memory_space<vmem>>, %arg11: memref<2x32x128xf32, #tpu.memory_space<vmem>>, %arg12: memref<2x1x128xf32, #tpu.memory_space<vmem>>, %arg13: memref<2x128x32xf32, #tpu.memory_space<vmem>>, %arg14: memref<2x1x32xf32, #tpu.memory_space<vmem>>, %arg15: memref<2x1x32xf32, #tpu.memory_space<vmem>>, %arg16: memref<2x1x32xf32, #tpu.memory_space<vmem>>, %arg17: memref<32x64xf32, #tpu.memory_space<vmem>>, %arg18: memref<1x64xf32, #tpu.memory_space<vmem>>, %arg19: memref<32x64xf32, #tpu.memory_space<vmem>>) attributes {dimension_semantics = [#tpu.dimension_semantics<arbitrary>], iteration_bounds = array<i64: 1>, scalar_prefetch = 0 : i64, scratch_operands = 0 : i64, tpu.core_type = #tpu.core_type<tc>, window_params = [{pipeline_mode = #tpu.pipeline_mode<synchronous>, transform_indices = @transform_0, window_bounds = array<i64: 32, 64>}, {pipeline_mode = #tpu.pipeline_mode<synchronous>, transform_indices = @transform_1, window_bounds = array<i64: 16, 32>}, {pipeline_mode = #tpu.pipeline_mode<synchronous>, transform_indices = @transform_2, window_bounds = array<i64: 64, 32>}, {pipeline_mode = #tpu.pipeline_mode<synchronous>, transform_indices = @transform_3, window_bounds = array<i64: 1, 32>}, {pipeline_mode = #tpu.pipeline_mode<synchronous>, transform_indices = @transform_4, window_bounds = array<i64: 2, 32, 96>}, {pipeline_mode = #tpu.pipeline_mode<synchronous>, transform_indices = @transform_5, window_bounds = array<i64: 2, 1, 96>}, {pipeline_mode = #tpu.pipeline_mode<synchronous>, transform_indices = @transform_6, window_bounds = array<i64: 2, 32, 32>}, {pipeline_mode = #tpu.pipeline_mode<synchronous>, transform_indices = @transform_7, window_bounds = array<i64: 2, 1, 32>}, {pipeline_mode = #tpu.pipeline_mode<synchronous>, transform_indices = @transform_8, window_bounds = array<i64: 2, 1, 32>}, {pipeline_mode = #tpu.pipeline_mode<synchronous>, transform_indices = @transform_9, window_bounds = array<i64: 2, 1, 32>}, {pipeline_mode = #tpu.pipeline_mode<synchronous>, transform_indices = @transform_10, window_bounds = array<i64: 2, 32, 128>}, {pipeline_mode = #tpu.pipeline_mode<synchronous>, transform_indices = @transform_11, window_bounds = array<i64: 2, 1, 128>}, {pipeline_mode = #tpu.pipeline_mode<synchronous>, transform_indices = @transform_12, window_bounds = array<i64: 2, 128, 32>}, {pipeline_mode = #tpu.pipeline_mode<synchronous>, transform_indices = @transform_13, window_bounds = array<i64: 2, 1, 32>}, {pipeline_mode = #tpu.pipeline_mode<synchronous>, transform_indices = @transform_14, window_bounds = array<i64: 2, 1, 32>}, {pipeline_mode = #tpu.pipeline_mode<synchronous>, transform_indices = @transform_15, window_bounds = array<i64: 2, 1, 32>}, {pipeline_mode = #tpu.pipeline_mode<synchronous>, transform_indices = @transform_16, window_bounds = array<i64: 32, 64>}, {pipeline_mode = #tpu.pipeline_mode<synchronous>, transform_indices = @transform_17, window_bounds = array<i64: 1, 64>}, {pipeline_mode = #tpu.pipeline_mode<synchronous>, transform_indices = @transform_18, window_bounds = array<i64: 32, 64>}]} {
    %c0 = arith.constant 0 : index
    %c0_0 = arith.constant 0 : index
    %0 = vector.load %arg1[%c0, %c0_0] : memref<32x64xf32, #tpu.memory_space<vmem>>, vector<32x64xf32>
    %c0_1 = arith.constant 0 : index
    %c0_2 = arith.constant 0 : index
    %1 = vector.load %arg3[%c0_1, %c0_2] : memref<64x32xf32, #tpu.memory_space<vmem>>, vector<64x32xf32>
    %cst = arith.constant dense<0.000000e+00> : vector<32x32xf32>
    %2 = tpu.matmul %0, %1, %cst {dimension_numbers = #tpu.dot_dimension_numbers<[1], [0], [0], [1], [0, 0, 1, 1], [], []>} : vector<32x64xf32>, vector<64x32xf32>, vector<32x32xf32> -> vector<32x32xf32>
    %c0_3 = arith.constant 0 : index
    %c0_4 = arith.constant 0 : index
    %3 = vector.load %arg4[%c0_3, %c0_4] : memref<1x32xf32, #tpu.memory_space<vmem>>, vector<1x32xf32>
    %4 = vector.broadcast %3 : vector<1x32xf32> to vector<32x32xf32>
    %5 = arith.addf %2, %4 : vector<32x32xf32>
    %c0_5 = arith.constant 0 : index
    %c0_6 = arith.constant 0 : index
    %6 = vector.load %arg2[%c0_5, %c0_6] : memref<16x32xf32, #tpu.memory_space<vmem>>, vector<16x32xf32>
    %7 = tpu.concatenate %6, %6 in 0 : vector<16x32xf32>, vector<16x32xf32> -> vector<32x32xf32>
    %8 = arith.addf %5, %7 : vector<32x32xf32>
    %c0_7 = arith.constant 0 : index
    %c0_8 = arith.constant 0 : index
    %c0_9 = arith.constant 0 : index
    %9 = vector.load %arg5[%c0_7, %c0_8, %c0_9] : memref<2x32x96xf32, #tpu.memory_space<vmem>>, vector<1x32x96xf32>
    %10 = vector.shape_cast %9 : vector<1x32x96xf32> to vector<32x96xf32>
    %cst_10 = arith.constant dense<0.000000e+00> : vector<32x96xf32>
    %11 = tpu.matmul %8, %10, %cst_10 {dimension_numbers = #tpu.dot_dimension_numbers<[1], [0], [0], [1], [0, 0, 1, 1], [], []>} : vector<32x32xf32>, vector<32x96xf32>, vector<32x96xf32> -> vector<32x96xf32>
    %c0_11 = arith.constant 0 : index
    %c0_12 = arith.constant 0 : index
    %c0_13 = arith.constant 0 : index
    %12 = vector.load %arg6[%c0_11, %c0_12, %c0_13] : memref<2x1x96xf32, #tpu.memory_space<vmem>>, vector<1x1x96xf32>
    %13 = vector.shape_cast %12 : vector<1x1x96xf32> to vector<1x96xf32>
    %14 = vector.broadcast %13 : vector<1x96xf32> to vector<32x96xf32>
    %15 = arith.addf %11, %14 : vector<32x96xf32>
    %16 = vector.extract_strided_slice %15 {offsets = [0, 0], sizes = [32, 32], strides = [1, 1]} : vector<32x96xf32> to vector<32x32xf32>
    %cst_14 = arith.constant 0.353553385 : f32
    %17 = vector.broadcast %cst_14 : f32 to vector<32x32xf32>
    %18 = arith.mulf %16, %17 : vector<32x32xf32>
    %19 = vector.shape_cast %18 : vector<32x32xf32> to vector<2x16x32xf32>
    %20 = vector.extract_strided_slice %15 {offsets = [0, 32], sizes = [32, 32], strides = [1, 1]} : vector<32x96xf32> to vector<32x32xf32>
    %21 = vector.shape_cast %20 : vector<32x32xf32> to vector<2x16x32xf32>
    %22 = vector.extract_strided_slice %15 {offsets = [0, 64], sizes = [32, 32], strides = [1, 1]} : vector<32x96xf32> to vector<32x32xf32>
    %23 = vector.shape_cast %22 : vector<32x32xf32> to vector<2x16x32xf32>
    %24 = vector.extract_strided_slice %19 {offsets = [0, 0, 0], sizes = [2, 16, 8], strides = [1, 1, 1]} : vector<2x16x32xf32> to vector<2x16x8xf32>
    %25 = vector.extract_strided_slice %21 {offsets = [0, 0, 0], sizes = [2, 16, 8], strides = [1, 1, 1]} : vector<2x16x32xf32> to vector<2x16x8xf32>
    "tpu.trace_start"() <{level = 10 : i32, message = "bqd,bkd->bqk"}> : () -> ()
    %cst_15 = arith.constant dense<0.000000e+00> : vector<2x16x16xf32>
    %26 = tpu.matmul %24, %25, %cst_15 {dimension_numbers = #tpu.dot_dimension_numbers<[2], [2], [1], [1], [0, 0, 0, 1, 1, 1], [0], [0]>} : vector<2x16x8xf32>, vector<2x16x8xf32>, vector<2x16x16xf32> -> vector<2x16x16xf32>
    "tpu.trace_stop"() : () -> ()
    %cst_16 = arith.constant dense<0xFF800000> : vector<2x16xf32>
    %27 = vector.multi_reduction <maximumf>, %26, %cst_16 [2] : vector<2x16x16xf32> to vector<2x16xf32>
    %28 = vector.shape_cast %27 : vector<2x16xf32> to vector<2x16x1xf32>
    %29 = vector.broadcast %28 : vector<2x16x1xf32> to vector<2x16x16xf32>
    %30 = arith.subf %26, %29 : vector<2x16x16xf32>
    %31 = math.exp %30 : vector<2x16x16xf32>
    %cst_17 = arith.constant dense<0.000000e+00> : vector<2x16xf32>
    %32 = vector.multi_reduction <add>, %31, %cst_17 [2] : vector<2x16x16xf32> to vector<2x16xf32>
    %33 = vector.shape_cast %32 : vector<2x16xf32> to vector<2x16x1xf32>
    %34 = tpu.reciprocal %33 {approx = true} : vector<2x16x1xf32> -> vector<2x16x1xf32>
    %35 = vector.broadcast %34 : vector<2x16x1xf32> to vector<2x16x16xf32>
    %36 = arith.mulf %31, %35 : vector<2x16x16xf32>
    %37 = vector.extract_strided_slice %23 {offsets = [0, 0, 0], sizes = [2, 16, 8], strides = [1, 1, 1]} : vector<2x16x32xf32> to vector<2x16x8xf32>
    "tpu.trace_start"() <{level = 10 : i32, message = "bqk,bkd->bqd"}> : () -> ()
    %cst_18 = arith.constant dense<0.000000e+00> : vector<2x16x8xf32>
    %38 = tpu.matmul %36, %37, %cst_18 {dimension_numbers = #tpu.dot_dimension_numbers<[2], [1], [1], [2], [0, 0, 0, 1, 1, 2], [0], [0]>} : vector<2x16x16xf32>, vector<2x16x8xf32>, vector<2x16x8xf32> -> vector<2x16x8xf32>
    "tpu.trace_stop"() : () -> ()
    %39 = vector.extract_strided_slice %19 {offsets = [0, 0, 8], sizes = [2, 16, 8], strides = [1, 1, 1]} : vector<2x16x32xf32> to vector<2x16x8xf32>
    %40 = vector.extract_strided_slice %21 {offsets = [0, 0, 8], sizes = [2, 16, 8], strides = [1, 1, 1]} : vector<2x16x32xf32> to vector<2x16x8xf32>
    "tpu.trace_start"() <{level = 10 : i32, message = "bqd,bkd->bqk"}> : () -> ()
    %cst_19 = arith.constant dense<0.000000e+00> : vector<2x16x16xf32>
    %41 = tpu.matmul %39, %40, %cst_19 {dimension_numbers = #tpu.dot_dimension_numbers<[2], [2], [1], [1], [0, 0, 0, 1, 1, 1], [0], [0]>} : vector<2x16x8xf32>, vector<2x16x8xf32>, vector<2x16x16xf32> -> vector<2x16x16xf32>
    "tpu.trace_stop"() : () -> ()
    %cst_20 = arith.constant dense<0xFF800000> : vector<2x16xf32>
    %42 = vector.multi_reduction <maximumf>, %41, %cst_20 [2] : vector<2x16x16xf32> to vector<2x16xf32>
    %43 = vector.shape_cast %42 : vector<2x16xf32> to vector<2x16x1xf32>
    %44 = vector.broadcast %43 : vector<2x16x1xf32> to vector<2x16x16xf32>
    %45 = arith.subf %41, %44 : vector<2x16x16xf32>
    %46 = math.exp %45 : vector<2x16x16xf32>
    %cst_21 = arith.constant dense<0.000000e+00> : vector<2x16xf32>
    %47 = vector.multi_reduction <add>, %46, %cst_21 [2] : vector<2x16x16xf32> to vector<2x16xf32>
    %48 = vector.shape_cast %47 : vector<2x16xf32> to vector<2x16x1xf32>
    %49 = tpu.reciprocal %48 {approx = true} : vector<2x16x1xf32> -> vector<2x16x1xf32>
    %50 = vector.broadcast %49 : vector<2x16x1xf32> to vector<2x16x16xf32>
    %51 = arith.mulf %46, %50 : vector<2x16x16xf32>
    %52 = vector.extract_strided_slice %23 {offsets = [0, 0, 8], sizes = [2, 16, 8], strides = [1, 1, 1]} : vector<2x16x32xf32> to vector<2x16x8xf32>
    "tpu.trace_start"() <{level = 10 : i32, message = "bqk,bkd->bqd"}> : () -> ()
    %cst_22 = arith.constant dense<0.000000e+00> : vector<2x16x8xf32>
    %53 = tpu.matmul %51, %52, %cst_22 {dimension_numbers = #tpu.dot_dimension_numbers<[2], [1], [1], [2], [0, 0, 0, 1, 1, 2], [0], [0]>} : vector<2x16x16xf32>, vector<2x16x8xf32>, vector<2x16x8xf32> -> vector<2x16x8xf32>
    "tpu.trace_stop"() : () -> ()
    %54 = vector.extract_strided_slice %19 {offsets = [0, 0, 16], sizes = [2, 16, 8], strides = [1, 1, 1]} : vector<2x16x32xf32> to vector<2x16x8xf32>
    %55 = vector.extract_strided_slice %21 {offsets = [0, 0, 16], sizes = [2, 16, 8], strides = [1, 1, 1]} : vector<2x16x32xf32> to vector<2x16x8xf32>
    "tpu.trace_start"() <{level = 10 : i32, message = "bqd,bkd->bqk"}> : () -> ()
    %cst_23 = arith.constant dense<0.000000e+00> : vector<2x16x16xf32>
    %56 = tpu.matmul %54, %55, %cst_23 {dimension_numbers = #tpu.dot_dimension_numbers<[2], [2], [1], [1], [0, 0, 0, 1, 1, 1], [0], [0]>} : vector<2x16x8xf32>, vector<2x16x8xf32>, vector<2x16x16xf32> -> vector<2x16x16xf32>
    "tpu.trace_stop"() : () -> ()
    %cst_24 = arith.constant dense<0xFF800000> : vector<2x16xf32>
    %57 = vector.multi_reduction <maximumf>, %56, %cst_24 [2] : vector<2x16x16xf32> to vector<2x16xf32>
    %58 = vector.shape_cast %57 : vector<2x16xf32> to vector<2x16x1xf32>
    %59 = vector.broadcast %58 : vector<2x16x1xf32> to vector<2x16x16xf32>
    %60 = arith.subf %56, %59 : vector<2x16x16xf32>
    %61 = math.exp %60 : vector<2x16x16xf32>
    %cst_25 = arith.constant dense<0.000000e+00> : vector<2x16xf32>
    %62 = vector.multi_reduction <add>, %61, %cst_25 [2] : vector<2x16x16xf32> to vector<2x16xf32>
    %63 = vector.shape_cast %62 : vector<2x16xf32> to vector<2x16x1xf32>
    %64 = tpu.reciprocal %63 {approx = true} : vector<2x16x1xf32> -> vector<2x16x1xf32>
    %65 = vector.broadcast %64 : vector<2x16x1xf32> to vector<2x16x16xf32>
    %66 = arith.mulf %61, %65 : vector<2x16x16xf32>
    %67 = vector.extract_strided_slice %23 {offsets = [0, 0, 16], sizes = [2, 16, 8], strides = [1, 1, 1]} : vector<2x16x32xf32> to vector<2x16x8xf32>
    "tpu.trace_start"() <{level = 10 : i32, message = "bqk,bkd->bqd"}> : () -> ()
    %cst_26 = arith.constant dense<0.000000e+00> : vector<2x16x8xf32>
    %68 = tpu.matmul %66, %67, %cst_26 {dimension_numbers = #tpu.dot_dimension_numbers<[2], [1], [1], [2], [0, 0, 0, 1, 1, 2], [0], [0]>} : vector<2x16x16xf32>, vector<2x16x8xf32>, vector<2x16x8xf32> -> vector<2x16x8xf32>
    "tpu.trace_stop"() : () -> ()
    %69 = vector.extract_strided_slice %19 {offsets = [0, 0, 24], sizes = [2, 16, 8], strides = [1, 1, 1]} : vector<2x16x32xf32> to vector<2x16x8xf32>
    %70 = vector.extract_strided_slice %21 {offsets = [0, 0, 24], sizes = [2, 16, 8], strides = [1, 1, 1]} : vector<2x16x32xf32> to vector<2x16x8xf32>
    "tpu.trace_start"() <{level = 10 : i32, message = "bqd,bkd->bqk"}> : () -> ()
    %cst_27 = arith.constant dense<0.000000e+00> : vector<2x16x16xf32>
    %71 = tpu.matmul %69, %70, %cst_27 {dimension_numbers = #tpu.dot_dimension_numbers<[2], [2], [1], [1], [0, 0, 0, 1, 1, 1], [0], [0]>} : vector<2x16x8xf32>, vector<2x16x8xf32>, vector<2x16x16xf32> -> vector<2x16x16xf32>
    "tpu.trace_stop"() : () -> ()
    %cst_28 = arith.constant dense<0xFF800000> : vector<2x16xf32>
    %72 = vector.multi_reduction <maximumf>, %71, %cst_28 [2] : vector<2x16x16xf32> to vector<2x16xf32>
    %73 = vector.shape_cast %72 : vector<2x16xf32> to vector<2x16x1xf32>
    %74 = vector.broadcast %73 : vector<2x16x1xf32> to vector<2x16x16xf32>
    %75 = arith.subf %71, %74 : vector<2x16x16xf32>
    %76 = math.exp %75 : vector<2x16x16xf32>
    %cst_29 = arith.constant dense<0.000000e+00> : vector<2x16xf32>
    %77 = vector.multi_reduction <add>, %76, %cst_29 [2] : vector<2x16x16xf32> to vector<2x16xf32>
    %78 = vector.shape_cast %77 : vector<2x16xf32> to vector<2x16x1xf32>
    %79 = tpu.reciprocal %78 {approx = true} : vector<2x16x1xf32> -> vector<2x16x1xf32>
    %80 = vector.broadcast %79 : vector<2x16x1xf32> to vector<2x16x16xf32>
    %81 = arith.mulf %76, %80 : vector<2x16x16xf32>
    %82 = vector.extract_strided_slice %23 {offsets = [0, 0, 24], sizes = [2, 16, 8], strides = [1, 1, 1]} : vector<2x16x32xf32> to vector<2x16x8xf32>
    "tpu.trace_start"() <{level = 10 : i32, message = "bqk,bkd->bqd"}> : () -> ()
    %cst_30 = arith.constant dense<0.000000e+00> : vector<2x16x8xf32>
    %83 = tpu.matmul %81, %82, %cst_30 {dimension_numbers = #tpu.dot_dimension_numbers<[2], [1], [1], [2], [0, 0, 0, 1, 1, 2], [0], [0]>} : vector<2x16x16xf32>, vector<2x16x8xf32>, vector<2x16x8xf32> -> vector<2x16x8xf32>
    "tpu.trace_stop"() : () -> ()
    %84 = tpu.concatenate %38, %53, %68, %83 in 2 : vector<2x16x8xf32>, vector<2x16x8xf32>, vector<2x16x8xf32>, vector<2x16x8xf32> -> vector<2x16x32xf32>
    %85 = vector.shape_cast %84 : vector<2x16x32xf32> to vector<32x32xf32>
    %c0_31 = arith.constant 0 : index
    %c0_32 = arith.constant 0 : index
    %c0_33 = arith.constant 0 : index
    %86 = vector.load %arg7[%c0_31, %c0_32, %c0_33] : memref<2x32x32xf32, #tpu.memory_space<vmem>>, vector<1x32x32xf32>
    %87 = vector.shape_cast %86 : vector<1x32x32xf32> to vector<32x32xf32>
    %cst_34 = arith.constant dense<0.000000e+00> : vector<32x32xf32>
    %88 = tpu.matmul %85, %87, %cst_34 {dimension_numbers = #tpu.dot_dimension_numbers<[1], [0], [0], [1], [0, 0, 1, 1], [], []>} : vector<32x32xf32>, vector<32x32xf32>, vector<32x32xf32> -> vector<32x32xf32>
    %c0_35 = arith.constant 0 : index
    %c0_36 = arith.constant 0 : index
    %c0_37 = arith.constant 0 : index
    %89 = vector.load %arg8[%c0_35, %c0_36, %c0_37] : memref<2x1x32xf32, #tpu.memory_space<vmem>>, vector<1x1x32xf32>
    %90 = vector.shape_cast %89 : vector<1x1x32xf32> to vector<1x32xf32>
    %91 = vector.broadcast %90 : vector<1x32xf32> to vector<32x32xf32>
    %92 = arith.addf %88, %91 : vector<32x32xf32>
    %93 = arith.addf %8, %92 : vector<32x32xf32>
    %c0_38 = arith.constant 0 : index
    %c0_39 = arith.constant 0 : index
    %c0_40 = arith.constant 0 : index
    %94 = vector.load %arg9[%c0_38, %c0_39, %c0_40] : memref<2x1x32xf32, #tpu.memory_space<vmem>>, vector<1x1x32xf32>
    %95 = vector.shape_cast %94 : vector<1x1x32xf32> to vector<1x32xf32>
    %c0_41 = arith.constant 0 : index
    %c0_42 = arith.constant 0 : index
    %c0_43 = arith.constant 0 : index
    %96 = vector.load %arg10[%c0_41, %c0_42, %c0_43] : memref<2x1x32xf32, #tpu.memory_space<vmem>>, vector<1x1x32xf32>
    %97 = vector.shape_cast %96 : vector<1x1x32xf32> to vector<1x32xf32>
    %cst_44 = arith.constant dense<0.000000e+00> : vector<32xf32>
    %98 = vector.multi_reduction <add>, %93, %cst_44 [1] : vector<32x32xf32> to vector<32xf32>
    %99 = vector.shape_cast %98 : vector<32xf32> to vector<32x1xf32>
    %cst_45 = arith.constant 3.200000e+01 : f32
    %100 = vector.broadcast %cst_45 : f32 to vector<32x1xf32>
    %101 = arith.divf %99, %100 : vector<32x1xf32>
    %102 = vector.broadcast %101 : vector<32x1xf32> to vector<32x32xf32>
    %103 = arith.subf %93, %102 : vector<32x32xf32>
    %104 = arith.mulf %103, %103 : vector<32x32xf32>
    %cst_46 = arith.constant dense<0.000000e+00> : vector<32xf32>
    %105 = vector.multi_reduction <add>, %104, %cst_46 [1] : vector<32x32xf32> to vector<32xf32>
    %106 = vector.shape_cast %105 : vector<32xf32> to vector<32x1xf32>
    %cst_47 = arith.constant 3.200000e+01 : f32
    %107 = vector.broadcast %cst_47 : f32 to vector<32x1xf32>
    %108 = arith.divf %106, %107 : vector<32x1xf32>
    %109 = vector.broadcast %101 : vector<32x1xf32> to vector<32x32xf32>
    %110 = arith.subf %93, %109 : vector<32x32xf32>
    %cst_48 = arith.constant 9.99999974E-6 : f32
    %111 = vector.broadcast %cst_48 : f32 to vector<32x1xf32>
    %112 = arith.addf %108, %111 : vector<32x1xf32>
    %113 = math.rsqrt %112 : vector<32x1xf32>
    %114 = vector.broadcast %113 : vector<32x1xf32> to vector<32x32xf32>
    %115 = arith.mulf %110, %114 : vector<32x32xf32>
    %116 = vector.broadcast %95 : vector<1x32xf32> to vector<32x32xf32>
    %117 = arith.mulf %115, %116 : vector<32x32xf32>
    %118 = vector.broadcast %97 : vector<1x32xf32> to vector<32x32xf32>
    %119 = arith.addf %117, %118 : vector<32x32xf32>
    %c0_49 = arith.constant 0 : index
    %c0_50 = arith.constant 0 : index
    %c0_51 = arith.constant 0 : index
    %120 = vector.load %arg11[%c0_49, %c0_50, %c0_51] : memref<2x32x128xf32, #tpu.memory_space<vmem>>, vector<1x32x128xf32>
    %121 = vector.shape_cast %120 : vector<1x32x128xf32> to vector<32x128xf32>
    %cst_52 = arith.constant dense<0.000000e+00> : vector<32x128xf32>
    %122 = tpu.matmul %119, %121, %cst_52 {dimension_numbers = #tpu.dot_dimension_numbers<[1], [0], [0], [1], [0, 0, 1, 1], [], []>} : vector<32x32xf32>, vector<32x128xf32>, vector<32x128xf32> -> vector<32x128xf32>
    %c0_53 = arith.constant 0 : index
    %c0_54 = arith.constant 0 : index
    %c0_55 = arith.constant 0 : index
    %123 = vector.load %arg12[%c0_53, %c0_54, %c0_55] : memref<2x1x128xf32, #tpu.memory_space<vmem>>, vector<1x1x128xf32>
    %124 = vector.shape_cast %123 : vector<1x1x128xf32> to vector<1x128xf32>
    %125 = vector.broadcast %124 : vector<1x128xf32> to vector<32x128xf32>
    %126 = arith.addf %122, %125 : vector<32x128xf32>
    %cst_56 = arith.constant 0.000000e+00 : f32
    %127 = vector.broadcast %cst_56 : f32 to vector<32x128xf32>
    %128 = arith.maximumf %126, %127 : vector<32x128xf32>
    %c0_57 = arith.constant 0 : index
    %c0_58 = arith.constant 0 : index
    %c0_59 = arith.constant 0 : index
    %129 = vector.load %arg13[%c0_57, %c0_58, %c0_59] : memref<2x128x32xf32, #tpu.memory_space<vmem>>, vector<1x128x32xf32>
    %130 = vector.shape_cast %129 : vector<1x128x32xf32> to vector<128x32xf32>
    %cst_60 = arith.constant dense<0.000000e+00> : vector<32x32xf32>
    %131 = tpu.matmul %128, %130, %cst_60 {dimension_numbers = #tpu.dot_dimension_numbers<[1], [0], [0], [1], [0, 0, 1, 1], [], []>} : vector<32x128xf32>, vector<128x32xf32>, vector<32x32xf32> -> vector<32x32xf32>
    %c0_61 = arith.constant 0 : index
    %c0_62 = arith.constant 0 : index
    %c0_63 = arith.constant 0 : index
    %132 = vector.load %arg14[%c0_61, %c0_62, %c0_63] : memref<2x1x32xf32, #tpu.memory_space<vmem>>, vector<1x1x32xf32>
    %133 = vector.shape_cast %132 : vector<1x1x32xf32> to vector<1x32xf32>
    %134 = vector.broadcast %133 : vector<1x32xf32> to vector<32x32xf32>
    %135 = arith.addf %131, %134 : vector<32x32xf32>
    %136 = arith.addf %119, %135 : vector<32x32xf32>
    %c0_64 = arith.constant 0 : index
    %c0_65 = arith.constant 0 : index
    %c0_66 = arith.constant 0 : index
    %137 = vector.load %arg15[%c0_64, %c0_65, %c0_66] : memref<2x1x32xf32, #tpu.memory_space<vmem>>, vector<1x1x32xf32>
    %138 = vector.shape_cast %137 : vector<1x1x32xf32> to vector<1x32xf32>
    %c0_67 = arith.constant 0 : index
    %c0_68 = arith.constant 0 : index
    %c0_69 = arith.constant 0 : index
    %139 = vector.load %arg16[%c0_67, %c0_68, %c0_69] : memref<2x1x32xf32, #tpu.memory_space<vmem>>, vector<1x1x32xf32>
    %140 = vector.shape_cast %139 : vector<1x1x32xf32> to vector<1x32xf32>
    %cst_70 = arith.constant dense<0.000000e+00> : vector<32xf32>
    %141 = vector.multi_reduction <add>, %136, %cst_70 [1] : vector<32x32xf32> to vector<32xf32>
    %142 = vector.shape_cast %141 : vector<32xf32> to vector<32x1xf32>
    %cst_71 = arith.constant 3.200000e+01 : f32
    %143 = vector.broadcast %cst_71 : f32 to vector<32x1xf32>
    %144 = arith.divf %142, %143 : vector<32x1xf32>
    %145 = vector.broadcast %144 : vector<32x1xf32> to vector<32x32xf32>
    %146 = arith.subf %136, %145 : vector<32x32xf32>
    %147 = arith.mulf %146, %146 : vector<32x32xf32>
    %cst_72 = arith.constant dense<0.000000e+00> : vector<32xf32>
    %148 = vector.multi_reduction <add>, %147, %cst_72 [1] : vector<32x32xf32> to vector<32xf32>
    %149 = vector.shape_cast %148 : vector<32xf32> to vector<32x1xf32>
    %cst_73 = arith.constant 3.200000e+01 : f32
    %150 = vector.broadcast %cst_73 : f32 to vector<32x1xf32>
    %151 = arith.divf %149, %150 : vector<32x1xf32>
    %152 = vector.broadcast %144 : vector<32x1xf32> to vector<32x32xf32>
    %153 = arith.subf %136, %152 : vector<32x32xf32>
    %cst_74 = arith.constant 9.99999974E-6 : f32
    %154 = vector.broadcast %cst_74 : f32 to vector<32x1xf32>
    %155 = arith.addf %151, %154 : vector<32x1xf32>
    %156 = math.rsqrt %155 : vector<32x1xf32>
    %157 = vector.broadcast %156 : vector<32x1xf32> to vector<32x32xf32>
    %158 = arith.mulf %153, %157 : vector<32x32xf32>
    %159 = vector.broadcast %138 : vector<1x32xf32> to vector<32x32xf32>
    %160 = arith.mulf %158, %159 : vector<32x32xf32>
    %161 = vector.broadcast %140 : vector<1x32xf32> to vector<32x32xf32>
    %162 = arith.addf %160, %161 : vector<32x32xf32>
    %c1 = arith.constant 1 : index
    %c0_75 = arith.constant 0 : index
    %c0_76 = arith.constant 0 : index
    %163 = vector.load %arg5[%c1, %c0_75, %c0_76] : memref<2x32x96xf32, #tpu.memory_space<vmem>>, vector<1x32x96xf32>
    %164 = vector.shape_cast %163 : vector<1x32x96xf32> to vector<32x96xf32>
    %cst_77 = arith.constant dense<0.000000e+00> : vector<32x96xf32>
    %165 = tpu.matmul %162, %164, %cst_77 {dimension_numbers = #tpu.dot_dimension_numbers<[1], [0], [0], [1], [0, 0, 1, 1], [], []>} : vector<32x32xf32>, vector<32x96xf32>, vector<32x96xf32> -> vector<32x96xf32>
    %c1_78 = arith.constant 1 : index
    %c0_79 = arith.constant 0 : index
    %c0_80 = arith.constant 0 : index
    %166 = vector.load %arg6[%c1_78, %c0_79, %c0_80] : memref<2x1x96xf32, #tpu.memory_space<vmem>>, vector<1x1x96xf32>
    %167 = vector.shape_cast %166 : vector<1x1x96xf32> to vector<1x96xf32>
    %168 = vector.broadcast %167 : vector<1x96xf32> to vector<32x96xf32>
    %169 = arith.addf %165, %168 : vector<32x96xf32>
    %170 = vector.extract_strided_slice %169 {offsets = [0, 0], sizes = [32, 32], strides = [1, 1]} : vector<32x96xf32> to vector<32x32xf32>
    %cst_81 = arith.constant 0.353553385 : f32
    %171 = vector.broadcast %cst_81 : f32 to vector<32x32xf32>
    %172 = arith.mulf %170, %171 : vector<32x32xf32>
    %173 = vector.shape_cast %172 : vector<32x32xf32> to vector<2x16x32xf32>
    %174 = vector.extract_strided_slice %169 {offsets = [0, 32], sizes = [32, 32], strides = [1, 1]} : vector<32x96xf32> to vector<32x32xf32>
    %175 = vector.shape_cast %174 : vector<32x32xf32> to vector<2x16x32xf32>
    %176 = vector.extract_strided_slice %169 {offsets = [0, 64], sizes = [32, 32], strides = [1, 1]} : vector<32x96xf32> to vector<32x32xf32>
    %177 = vector.shape_cast %176 : vector<32x32xf32> to vector<2x16x32xf32>
    %178 = vector.extract_strided_slice %173 {offsets = [0, 0, 0], sizes = [2, 16, 8], strides = [1, 1, 1]} : vector<2x16x32xf32> to vector<2x16x8xf32>
    %179 = vector.extract_strided_slice %175 {offsets = [0, 0, 0], sizes = [2, 16, 8], strides = [1, 1, 1]} : vector<2x16x32xf32> to vector<2x16x8xf32>
    "tpu.trace_start"() <{level = 10 : i32, message = "bqd,bkd->bqk"}> : () -> ()
    %cst_82 = arith.constant dense<0.000000e+00> : vector<2x16x16xf32>
    %180 = tpu.matmul %178, %179, %cst_82 {dimension_numbers = #tpu.dot_dimension_numbers<[2], [2], [1], [1], [0, 0, 0, 1, 1, 1], [0], [0]>} : vector<2x16x8xf32>, vector<2x16x8xf32>, vector<2x16x16xf32> -> vector<2x16x16xf32>
    "tpu.trace_stop"() : () -> ()
    %cst_83 = arith.constant dense<0xFF800000> : vector<2x16xf32>
    %181 = vector.multi_reduction <maximumf>, %180, %cst_83 [2] : vector<2x16x16xf32> to vector<2x16xf32>
    %182 = vector.shape_cast %181 : vector<2x16xf32> to vector<2x16x1xf32>
    %183 = vector.broadcast %182 : vector<2x16x1xf32> to vector<2x16x16xf32>
    %184 = arith.subf %180, %183 : vector<2x16x16xf32>
    %185 = math.exp %184 : vector<2x16x16xf32>
    %cst_84 = arith.constant dense<0.000000e+00> : vector<2x16xf32>
    %186 = vector.multi_reduction <add>, %185, %cst_84 [2] : vector<2x16x16xf32> to vector<2x16xf32>
    %187 = vector.shape_cast %186 : vector<2x16xf32> to vector<2x16x1xf32>
    %188 = tpu.reciprocal %187 {approx = true} : vector<2x16x1xf32> -> vector<2x16x1xf32>
    %189 = vector.broadcast %188 : vector<2x16x1xf32> to vector<2x16x16xf32>
    %190 = arith.mulf %185, %189 : vector<2x16x16xf32>
    %191 = vector.extract_strided_slice %177 {offsets = [0, 0, 0], sizes = [2, 16, 8], strides = [1, 1, 1]} : vector<2x16x32xf32> to vector<2x16x8xf32>
    "tpu.trace_start"() <{level = 10 : i32, message = "bqk,bkd->bqd"}> : () -> ()
    %cst_85 = arith.constant dense<0.000000e+00> : vector<2x16x8xf32>
    %192 = tpu.matmul %190, %191, %cst_85 {dimension_numbers = #tpu.dot_dimension_numbers<[2], [1], [1], [2], [0, 0, 0, 1, 1, 2], [0], [0]>} : vector<2x16x16xf32>, vector<2x16x8xf32>, vector<2x16x8xf32> -> vector<2x16x8xf32>
    "tpu.trace_stop"() : () -> ()
    %193 = vector.extract_strided_slice %173 {offsets = [0, 0, 8], sizes = [2, 16, 8], strides = [1, 1, 1]} : vector<2x16x32xf32> to vector<2x16x8xf32>
    %194 = vector.extract_strided_slice %175 {offsets = [0, 0, 8], sizes = [2, 16, 8], strides = [1, 1, 1]} : vector<2x16x32xf32> to vector<2x16x8xf32>
    "tpu.trace_start"() <{level = 10 : i32, message = "bqd,bkd->bqk"}> : () -> ()
    %cst_86 = arith.constant dense<0.000000e+00> : vector<2x16x16xf32>
    %195 = tpu.matmul %193, %194, %cst_86 {dimension_numbers = #tpu.dot_dimension_numbers<[2], [2], [1], [1], [0, 0, 0, 1, 1, 1], [0], [0]>} : vector<2x16x8xf32>, vector<2x16x8xf32>, vector<2x16x16xf32> -> vector<2x16x16xf32>
    "tpu.trace_stop"() : () -> ()
    %cst_87 = arith.constant dense<0xFF800000> : vector<2x16xf32>
    %196 = vector.multi_reduction <maximumf>, %195, %cst_87 [2] : vector<2x16x16xf32> to vector<2x16xf32>
    %197 = vector.shape_cast %196 : vector<2x16xf32> to vector<2x16x1xf32>
    %198 = vector.broadcast %197 : vector<2x16x1xf32> to vector<2x16x16xf32>
    %199 = arith.subf %195, %198 : vector<2x16x16xf32>
    %200 = math.exp %199 : vector<2x16x16xf32>
    %cst_88 = arith.constant dense<0.000000e+00> : vector<2x16xf32>
    %201 = vector.multi_reduction <add>, %200, %cst_88 [2] : vector<2x16x16xf32> to vector<2x16xf32>
    %202 = vector.shape_cast %201 : vector<2x16xf32> to vector<2x16x1xf32>
    %203 = tpu.reciprocal %202 {approx = true} : vector<2x16x1xf32> -> vector<2x16x1xf32>
    %204 = vector.broadcast %203 : vector<2x16x1xf32> to vector<2x16x16xf32>
    %205 = arith.mulf %200, %204 : vector<2x16x16xf32>
    %206 = vector.extract_strided_slice %177 {offsets = [0, 0, 8], sizes = [2, 16, 8], strides = [1, 1, 1]} : vector<2x16x32xf32> to vector<2x16x8xf32>
    "tpu.trace_start"() <{level = 10 : i32, message = "bqk,bkd->bqd"}> : () -> ()
    %cst_89 = arith.constant dense<0.000000e+00> : vector<2x16x8xf32>
    %207 = tpu.matmul %205, %206, %cst_89 {dimension_numbers = #tpu.dot_dimension_numbers<[2], [1], [1], [2], [0, 0, 0, 1, 1, 2], [0], [0]>} : vector<2x16x16xf32>, vector<2x16x8xf32>, vector<2x16x8xf32> -> vector<2x16x8xf32>
    "tpu.trace_stop"() : () -> ()
    %208 = vector.extract_strided_slice %173 {offsets = [0, 0, 16], sizes = [2, 16, 8], strides = [1, 1, 1]} : vector<2x16x32xf32> to vector<2x16x8xf32>
    %209 = vector.extract_strided_slice %175 {offsets = [0, 0, 16], sizes = [2, 16, 8], strides = [1, 1, 1]} : vector<2x16x32xf32> to vector<2x16x8xf32>
    "tpu.trace_start"() <{level = 10 : i32, message = "bqd,bkd->bqk"}> : () -> ()
    %cst_90 = arith.constant dense<0.000000e+00> : vector<2x16x16xf32>
    %210 = tpu.matmul %208, %209, %cst_90 {dimension_numbers = #tpu.dot_dimension_numbers<[2], [2], [1], [1], [0, 0, 0, 1, 1, 1], [0], [0]>} : vector<2x16x8xf32>, vector<2x16x8xf32>, vector<2x16x16xf32> -> vector<2x16x16xf32>
    "tpu.trace_stop"() : () -> ()
    %cst_91 = arith.constant dense<0xFF800000> : vector<2x16xf32>
    %211 = vector.multi_reduction <maximumf>, %210, %cst_91 [2] : vector<2x16x16xf32> to vector<2x16xf32>
    %212 = vector.shape_cast %211 : vector<2x16xf32> to vector<2x16x1xf32>
    %213 = vector.broadcast %212 : vector<2x16x1xf32> to vector<2x16x16xf32>
    %214 = arith.subf %210, %213 : vector<2x16x16xf32>
    %215 = math.exp %214 : vector<2x16x16xf32>
    %cst_92 = arith.constant dense<0.000000e+00> : vector<2x16xf32>
    %216 = vector.multi_reduction <add>, %215, %cst_92 [2] : vector<2x16x16xf32> to vector<2x16xf32>
    %217 = vector.shape_cast %216 : vector<2x16xf32> to vector<2x16x1xf32>
    %218 = tpu.reciprocal %217 {approx = true} : vector<2x16x1xf32> -> vector<2x16x1xf32>
    %219 = vector.broadcast %218 : vector<2x16x1xf32> to vector<2x16x16xf32>
    %220 = arith.mulf %215, %219 : vector<2x16x16xf32>
    %221 = vector.extract_strided_slice %177 {offsets = [0, 0, 16], sizes = [2, 16, 8], strides = [1, 1, 1]} : vector<2x16x32xf32> to vector<2x16x8xf32>
    "tpu.trace_start"() <{level = 10 : i32, message = "bqk,bkd->bqd"}> : () -> ()
    %cst_93 = arith.constant dense<0.000000e+00> : vector<2x16x8xf32>
    %222 = tpu.matmul %220, %221, %cst_93 {dimension_numbers = #tpu.dot_dimension_numbers<[2], [1], [1], [2], [0, 0, 0, 1, 1, 2], [0], [0]>} : vector<2x16x16xf32>, vector<2x16x8xf32>, vector<2x16x8xf32> -> vector<2x16x8xf32>
    "tpu.trace_stop"() : () -> ()
    %223 = vector.extract_strided_slice %173 {offsets = [0, 0, 24], sizes = [2, 16, 8], strides = [1, 1, 1]} : vector<2x16x32xf32> to vector<2x16x8xf32>
    %224 = vector.extract_strided_slice %175 {offsets = [0, 0, 24], sizes = [2, 16, 8], strides = [1, 1, 1]} : vector<2x16x32xf32> to vector<2x16x8xf32>
    "tpu.trace_start"() <{level = 10 : i32, message = "bqd,bkd->bqk"}> : () -> ()
    %cst_94 = arith.constant dense<0.000000e+00> : vector<2x16x16xf32>
    %225 = tpu.matmul %223, %224, %cst_94 {dimension_numbers = #tpu.dot_dimension_numbers<[2], [2], [1], [1], [0, 0, 0, 1, 1, 1], [0], [0]>} : vector<2x16x8xf32>, vector<2x16x8xf32>, vector<2x16x16xf32> -> vector<2x16x16xf32>
    "tpu.trace_stop"() : () -> ()
    %cst_95 = arith.constant dense<0xFF800000> : vector<2x16xf32>
    %226 = vector.multi_reduction <maximumf>, %225, %cst_95 [2] : vector<2x16x16xf32> to vector<2x16xf32>
    %227 = vector.shape_cast %226 : vector<2x16xf32> to vector<2x16x1xf32>
    %228 = vector.broadcast %227 : vector<2x16x1xf32> to vector<2x16x16xf32>
    %229 = arith.subf %225, %228 : vector<2x16x16xf32>
    %230 = math.exp %229 : vector<2x16x16xf32>
    %cst_96 = arith.constant dense<0.000000e+00> : vector<2x16xf32>
    %231 = vector.multi_reduction <add>, %230, %cst_96 [2] : vector<2x16x16xf32> to vector<2x16xf32>
    %232 = vector.shape_cast %231 : vector<2x16xf32> to vector<2x16x1xf32>
    %233 = tpu.reciprocal %232 {approx = true} : vector<2x16x1xf32> -> vector<2x16x1xf32>
    %234 = vector.broadcast %233 : vector<2x16x1xf32> to vector<2x16x16xf32>
    %235 = arith.mulf %230, %234 : vector<2x16x16xf32>
    %236 = vector.extract_strided_slice %177 {offsets = [0, 0, 24], sizes = [2, 16, 8], strides = [1, 1, 1]} : vector<2x16x32xf32> to vector<2x16x8xf32>
    "tpu.trace_start"() <{level = 10 : i32, message = "bqk,bkd->bqd"}> : () -> ()
    %cst_97 = arith.constant dense<0.000000e+00> : vector<2x16x8xf32>
    %237 = tpu.matmul %235, %236, %cst_97 {dimension_numbers = #tpu.dot_dimension_numbers<[2], [1], [1], [2], [0, 0, 0, 1, 1, 2], [0], [0]>} : vector<2x16x16xf32>, vector<2x16x8xf32>, vector<2x16x8xf32> -> vector<2x16x8xf32>
    "tpu.trace_stop"() : () -> ()
    %238 = tpu.concatenate %192, %207, %222, %237 in 2 : vector<2x16x8xf32>, vector<2x16x8xf32>, vector<2x16x8xf32>, vector<2x16x8xf32> -> vector<2x16x32xf32>
    %239 = vector.shape_cast %238 : vector<2x16x32xf32> to vector<32x32xf32>
    %c1_98 = arith.constant 1 : index
    %c0_99 = arith.constant 0 : index
    %c0_100 = arith.constant 0 : index
    %240 = vector.load %arg7[%c1_98, %c0_99, %c0_100] : memref<2x32x32xf32, #tpu.memory_space<vmem>>, vector<1x32x32xf32>
    %241 = vector.shape_cast %240 : vector<1x32x32xf32> to vector<32x32xf32>
    %cst_101 = arith.constant dense<0.000000e+00> : vector<32x32xf32>
    %242 = tpu.matmul %239, %241, %cst_101 {dimension_numbers = #tpu.dot_dimension_numbers<[1], [0], [0], [1], [0, 0, 1, 1], [], []>} : vector<32x32xf32>, vector<32x32xf32>, vector<32x32xf32> -> vector<32x32xf32>
    %c1_102 = arith.constant 1 : index
    %c0_103 = arith.constant 0 : index
    %c0_104 = arith.constant 0 : index
    %243 = vector.load %arg8[%c1_102, %c0_103, %c0_104] : memref<2x1x32xf32, #tpu.memory_space<vmem>>, vector<1x1x32xf32>
    %244 = vector.shape_cast %243 : vector<1x1x32xf32> to vector<1x32xf32>
    %245 = vector.broadcast %244 : vector<1x32xf32> to vector<32x32xf32>
    %246 = arith.addf %242, %245 : vector<32x32xf32>
    %247 = arith.addf %162, %246 : vector<32x32xf32>
    %c1_105 = arith.constant 1 : index
    %c0_106 = arith.constant 0 : index
    %c0_107 = arith.constant 0 : index
    %248 = vector.load %arg9[%c1_105, %c0_106, %c0_107] : memref<2x1x32xf32, #tpu.memory_space<vmem>>, vector<1x1x32xf32>
    %249 = vector.shape_cast %248 : vector<1x1x32xf32> to vector<1x32xf32>
    %c1_108 = arith.constant 1 : index
    %c0_109 = arith.constant 0 : index
    %c0_110 = arith.constant 0 : index
    %250 = vector.load %arg10[%c1_108, %c0_109, %c0_110] : memref<2x1x32xf32, #tpu.memory_space<vmem>>, vector<1x1x32xf32>
    %251 = vector.shape_cast %250 : vector<1x1x32xf32> to vector<1x32xf32>
    %cst_111 = arith.constant dense<0.000000e+00> : vector<32xf32>
    %252 = vector.multi_reduction <add>, %247, %cst_111 [1] : vector<32x32xf32> to vector<32xf32>
    %253 = vector.shape_cast %252 : vector<32xf32> to vector<32x1xf32>
    %cst_112 = arith.constant 3.200000e+01 : f32
    %254 = vector.broadcast %cst_112 : f32 to vector<32x1xf32>
    %255 = arith.divf %253, %254 : vector<32x1xf32>
    %256 = vector.broadcast %255 : vector<32x1xf32> to vector<32x32xf32>
    %257 = arith.subf %247, %256 : vector<32x32xf32>
    %258 = arith.mulf %257, %257 : vector<32x32xf32>
    %cst_113 = arith.constant dense<0.000000e+00> : vector<32xf32>
    %259 = vector.multi_reduction <add>, %258, %cst_113 [1] : vector<32x32xf32> to vector<32xf32>
    %260 = vector.shape_cast %259 : vector<32xf32> to vector<32x1xf32>
    %cst_114 = arith.constant 3.200000e+01 : f32
    %261 = vector.broadcast %cst_114 : f32 to vector<32x1xf32>
    %262 = arith.divf %260, %261 : vector<32x1xf32>
    %263 = vector.broadcast %255 : vector<32x1xf32> to vector<32x32xf32>
    %264 = arith.subf %247, %263 : vector<32x32xf32>
    %cst_115 = arith.constant 9.99999974E-6 : f32
    %265 = vector.broadcast %cst_115 : f32 to vector<32x1xf32>
    %266 = arith.addf %262, %265 : vector<32x1xf32>
    %267 = math.rsqrt %266 : vector<32x1xf32>
    %268 = vector.broadcast %267 : vector<32x1xf32> to vector<32x32xf32>
    %269 = arith.mulf %264, %268 : vector<32x32xf32>
    %270 = vector.broadcast %249 : vector<1x32xf32> to vector<32x32xf32>
    %271 = arith.mulf %269, %270 : vector<32x32xf32>
    %272 = vector.broadcast %251 : vector<1x32xf32> to vector<32x32xf32>
    %273 = arith.addf %271, %272 : vector<32x32xf32>
    %c1_116 = arith.constant 1 : index
    %c0_117 = arith.constant 0 : index
    %c0_118 = arith.constant 0 : index
    %274 = vector.load %arg11[%c1_116, %c0_117, %c0_118] : memref<2x32x128xf32, #tpu.memory_space<vmem>>, vector<1x32x128xf32>
    %275 = vector.shape_cast %274 : vector<1x32x128xf32> to vector<32x128xf32>
    %cst_119 = arith.constant dense<0.000000e+00> : vector<32x128xf32>
    %276 = tpu.matmul %273, %275, %cst_119 {dimension_numbers = #tpu.dot_dimension_numbers<[1], [0], [0], [1], [0, 0, 1, 1], [], []>} : vector<32x32xf32>, vector<32x128xf32>, vector<32x128xf32> -> vector<32x128xf32>
    %c1_120 = arith.constant 1 : index
    %c0_121 = arith.constant 0 : index
    %c0_122 = arith.constant 0 : index
    %277 = vector.load %arg12[%c1_120, %c0_121, %c0_122] : memref<2x1x128xf32, #tpu.memory_space<vmem>>, vector<1x1x128xf32>
    %278 = vector.shape_cast %277 : vector<1x1x128xf32> to vector<1x128xf32>
    %279 = vector.broadcast %278 : vector<1x128xf32> to vector<32x128xf32>
    %280 = arith.addf %276, %279 : vector<32x128xf32>
    %cst_123 = arith.constant 0.000000e+00 : f32
    %281 = vector.broadcast %cst_123 : f32 to vector<32x128xf32>
    %282 = arith.maximumf %280, %281 : vector<32x128xf32>
    %c1_124 = arith.constant 1 : index
    %c0_125 = arith.constant 0 : index
    %c0_126 = arith.constant 0 : index
    %283 = vector.load %arg13[%c1_124, %c0_125, %c0_126] : memref<2x128x32xf32, #tpu.memory_space<vmem>>, vector<1x128x32xf32>
    %284 = vector.shape_cast %283 : vector<1x128x32xf32> to vector<128x32xf32>
    %cst_127 = arith.constant dense<0.000000e+00> : vector<32x32xf32>
    %285 = tpu.matmul %282, %284, %cst_127 {dimension_numbers = #tpu.dot_dimension_numbers<[1], [0], [0], [1], [0, 0, 1, 1], [], []>} : vector<32x128xf32>, vector<128x32xf32>, vector<32x32xf32> -> vector<32x32xf32>
    %c1_128 = arith.constant 1 : index
    %c0_129 = arith.constant 0 : index
    %c0_130 = arith.constant 0 : index
    %286 = vector.load %arg14[%c1_128, %c0_129, %c0_130] : memref<2x1x32xf32, #tpu.memory_space<vmem>>, vector<1x1x32xf32>
    %287 = vector.shape_cast %286 : vector<1x1x32xf32> to vector<1x32xf32>
    %288 = vector.broadcast %287 : vector<1x32xf32> to vector<32x32xf32>
    %289 = arith.addf %285, %288 : vector<32x32xf32>
    %290 = arith.addf %273, %289 : vector<32x32xf32>
    %c1_131 = arith.constant 1 : index
    %c0_132 = arith.constant 0 : index
    %c0_133 = arith.constant 0 : index
    %291 = vector.load %arg15[%c1_131, %c0_132, %c0_133] : memref<2x1x32xf32, #tpu.memory_space<vmem>>, vector<1x1x32xf32>
    %292 = vector.shape_cast %291 : vector<1x1x32xf32> to vector<1x32xf32>
    %c1_134 = arith.constant 1 : index
    %c0_135 = arith.constant 0 : index
    %c0_136 = arith.constant 0 : index
    %293 = vector.load %arg16[%c1_134, %c0_135, %c0_136] : memref<2x1x32xf32, #tpu.memory_space<vmem>>, vector<1x1x32xf32>
    %294 = vector.shape_cast %293 : vector<1x1x32xf32> to vector<1x32xf32>
    %cst_137 = arith.constant dense<0.000000e+00> : vector<32xf32>
    %295 = vector.multi_reduction <add>, %290, %cst_137 [1] : vector<32x32xf32> to vector<32xf32>
    %296 = vector.shape_cast %295 : vector<32xf32> to vector<32x1xf32>
    %cst_138 = arith.constant 3.200000e+01 : f32
    %297 = vector.broadcast %cst_138 : f32 to vector<32x1xf32>
    %298 = arith.divf %296, %297 : vector<32x1xf32>
    %299 = vector.broadcast %298 : vector<32x1xf32> to vector<32x32xf32>
    %300 = arith.subf %290, %299 : vector<32x32xf32>
    %301 = arith.mulf %300, %300 : vector<32x32xf32>
    %cst_139 = arith.constant dense<0.000000e+00> : vector<32xf32>
    %302 = vector.multi_reduction <add>, %301, %cst_139 [1] : vector<32x32xf32> to vector<32xf32>
    %303 = vector.shape_cast %302 : vector<32xf32> to vector<32x1xf32>
    %cst_140 = arith.constant 3.200000e+01 : f32
    %304 = vector.broadcast %cst_140 : f32 to vector<32x1xf32>
    %305 = arith.divf %303, %304 : vector<32x1xf32>
    %306 = vector.broadcast %298 : vector<32x1xf32> to vector<32x32xf32>
    %307 = arith.subf %290, %306 : vector<32x32xf32>
    %cst_141 = arith.constant 9.99999974E-6 : f32
    %308 = vector.broadcast %cst_141 : f32 to vector<32x1xf32>
    %309 = arith.addf %305, %308 : vector<32x1xf32>
    %310 = math.rsqrt %309 : vector<32x1xf32>
    %311 = vector.broadcast %310 : vector<32x1xf32> to vector<32x32xf32>
    %312 = arith.mulf %307, %311 : vector<32x32xf32>
    %313 = vector.broadcast %292 : vector<1x32xf32> to vector<32x32xf32>
    %314 = arith.mulf %312, %313 : vector<32x32xf32>
    %315 = vector.broadcast %294 : vector<1x32xf32> to vector<32x32xf32>
    %316 = arith.addf %314, %315 : vector<32x32xf32>
    %c0_142 = arith.constant 0 : index
    %c0_143 = arith.constant 0 : index
    %317 = vector.load %arg17[%c0_142, %c0_143] : memref<32x64xf32, #tpu.memory_space<vmem>>, vector<32x64xf32>
    %cst_144 = arith.constant dense<0.000000e+00> : vector<32x64xf32>
    %318 = tpu.matmul %316, %317, %cst_144 {dimension_numbers = #tpu.dot_dimension_numbers<[1], [0], [0], [1], [0, 0, 1, 1], [], []>} : vector<32x32xf32>, vector<32x64xf32>, vector<32x64xf32> -> vector<32x64xf32>
    %c0_145 = arith.constant 0 : index
    %c0_146 = arith.constant 0 : index
    %319 = vector.load %arg18[%c0_145, %c0_146] : memref<1x64xf32, #tpu.memory_space<vmem>>, vector<1x64xf32>
    %320 = vector.broadcast %319 : vector<1x64xf32> to vector<32x64xf32>
    %321 = arith.addf %318, %320 : vector<32x64xf32>
    %322 = arith.addf %0, %321 : vector<32x64xf32>
    %cst_147 = arith.constant 0.000000e+00 : f32
    %cst_148 = arith.constant 1.000000e+00 : f32
    %323 = vector.broadcast %cst_147 : f32 to vector<32x64xf32>
    %324 = arith.maximumf %323, %322 : vector<32x64xf32>
    %325 = vector.broadcast %cst_148 : f32 to vector<32x64xf32>
    %326 = arith.minimumf %325, %324 : vector<32x64xf32>
    %c0_149 = arith.constant 0 : index
    %c0_150 = arith.constant 0 : index
    %327 = vector.load %arg19[%c0_149, %c0_150] : memref<32x64xf32, #tpu.memory_space<vmem>>, vector<32x64xf32>
    tpu.vector_store %arg19[%c0_149, %c0_150], %326 {strides = array<i32>} : memref<32x64xf32, #tpu.memory_space<vmem>>, vector<32x64xf32>,
    return
  }
  func.func @transform_0(%arg0: i32) -> (i32, i32) {
    %c0_i32 = arith.constant 0 : i32
    %c0_i32_0 = arith.constant 0 : i32
    %c0_i32_1 = arith.constant 0 : i32
    return %c0_i32, %c0_i32_0 : i32, i32
  }
  func.func @transform_1(%arg0: i32) -> (i32, i32) {
    %c0_i32 = arith.constant 0 : i32
    %c0_i32_0 = arith.constant 0 : i32
    %c0_i32_1 = arith.constant 0 : i32
    return %c0_i32, %c0_i32_0 : i32, i32
  }
  func.func @transform_2(%arg0: i32) -> (i32, i32) {
    %c0_i32 = arith.constant 0 : i32
    %c0_i32_0 = arith.constant 0 : i32
    %c0_i32_1 = arith.constant 0 : i32
    return %c0_i32, %c0_i32_0 : i32, i32
  }
  func.func @transform_3(%arg0: i32) -> (i32, i32) {
    %c0_i32 = arith.constant 0 : i32
    %c0_i32_0 = arith.constant 0 : i32
    %c0_i32_1 = arith.constant 0 : i32
    return %c0_i32, %c0_i32_0 : i32, i32
  }
  func.func @transform_4(%arg0: i32) -> (i32, i32, i32) {
    %c0_i32 = arith.constant 0 : i32
    %c0_i32_0 = arith.constant 0 : i32
    %c0_i32_1 = arith.constant 0 : i32
    %c0_i32_2 = arith.constant 0 : i32
    return %c0_i32, %c0_i32_0, %c0_i32_1 : i32, i32, i32
  }
  func.func @transform_5(%arg0: i32) -> (i32, i32, i32) {
    %c0_i32 = arith.constant 0 : i32
    %c0_i32_0 = arith.constant 0 : i32
    %c0_i32_1 = arith.constant 0 : i32
    %c0_i32_2 = arith.constant 0 : i32
    return %c0_i32, %c0_i32_0, %c0_i32_1 : i32, i32, i32
  }
  func.func @transform_6(%arg0: i32) -> (i32, i32, i32) {
    %c0_i32 = arith.constant 0 : i32
    %c0_i32_0 = arith.constant 0 : i32
    %c0_i32_1 = arith.constant 0 : i32
    %c0_i32_2 = arith.constant 0 : i32
    return %c0_i32, %c0_i32_0, %c0_i32_1 : i32, i32, i32
  }
  func.func @transform_7(%arg0: i32) -> (i32, i32, i32) {
    %c0_i32 = arith.constant 0 : i32
    %c0_i32_0 = arith.constant 0 : i32
    %c0_i32_1 = arith.constant 0 : i32
    %c0_i32_2 = arith.constant 0 : i32
    return %c0_i32, %c0_i32_0, %c0_i32_1 : i32, i32, i32
  }
  func.func @transform_8(%arg0: i32) -> (i32, i32, i32) {
    %c0_i32 = arith.constant 0 : i32
    %c0_i32_0 = arith.constant 0 : i32
    %c0_i32_1 = arith.constant 0 : i32
    %c0_i32_2 = arith.constant 0 : i32
    return %c0_i32, %c0_i32_0, %c0_i32_1 : i32, i32, i32
  }
  func.func @transform_9(%arg0: i32) -> (i32, i32, i32) {
    %c0_i32 = arith.constant 0 : i32
    %c0_i32_0 = arith.constant 0 : i32
    %c0_i32_1 = arith.constant 0 : i32
    %c0_i32_2 = arith.constant 0 : i32
    return %c0_i32, %c0_i32_0, %c0_i32_1 : i32, i32, i32
  }
  func.func @transform_10(%arg0: i32) -> (i32, i32, i32) {
    %c0_i32 = arith.constant 0 : i32
    %c0_i32_0 = arith.constant 0 : i32
    %c0_i32_1 = arith.constant 0 : i32
    %c0_i32_2 = arith.constant 0 : i32
    return %c0_i32, %c0_i32_0, %c0_i32_1 : i32, i32, i32
  }
  func.func @transform_11(%arg0: i32) -> (i32, i32, i32) {
    %c0_i32 = arith.constant 0 : i32
    %c0_i32_0 = arith.constant 0 : i32
    %c0_i32_1 = arith.constant 0 : i32
    %c0_i32_2 = arith.constant 0 : i32
    return %c0_i32, %c0_i32_0, %c0_i32_1 : i32, i32, i32
  }
  func.func @transform_12(%arg0: i32) -> (i32, i32, i32) {
    %c0_i32 = arith.constant 0 : i32
    %c0_i32_0 = arith.constant 0 : i32
    %c0_i32_1 = arith.constant 0 : i32
    %c0_i32_2 = arith.constant 0 : i32
    return %c0_i32, %c0_i32_0, %c0_i32_1 : i32, i32, i32
  }
  func.func @transform_13(%arg0: i32) -> (i32, i32, i32) {
    %c0_i32 = arith.constant 0 : i32
    %c0_i32_0 = arith.constant 0 : i32
    %c0_i32_1 = arith.constant 0 : i32
    %c0_i32_2 = arith.constant 0 : i32
    return %c0_i32, %c0_i32_0, %c0_i32_1 : i32, i32, i32
  }
  func.func @transform_14(%arg0: i32) -> (i32, i32, i32) {
    %c0_i32 = arith.constant 0 : i32
    %c0_i32_0 = arith.constant 0 : i32
    %c0_i32_1 = arith.constant 0 : i32
    %c0_i32_2 = arith.constant 0 : i32
    return %c0_i32, %c0_i32_0, %c0_i32_1 : i32, i32, i32
  }
  func.func @transform_15(%arg0: i32) -> (i32, i32, i32) {
    %c0_i32 = arith.constant 0 : i32
    %c0_i32_0 = arith.constant 0 : i32
    %c0_i32_1 = arith.constant 0 : i32
    %c0_i32_2 = arith.constant 0 : i32
    return %c0_i32, %c0_i32_0, %c0_i32_1 : i32, i32, i32
  }
  func.func @transform_16(%arg0: i32) -> (i32, i32) {
    %c0_i32 = arith.constant 0 : i32
    %c0_i32_0 = arith.constant 0 : i32
    %c0_i32_1 = arith.constant 0 : i32
    return %c0_i32, %c0_i32_0 : i32, i32
  }
  func.func @transform_17(%arg0: i32) -> (i32, i32) {
    %c0_i32 = arith.constant 0 : i32
    %c0_i32_0 = arith.constant 0 : i32
    %c0_i32_1 = arith.constant 0 : i32
    return %c0_i32, %c0_i32_0 : i32, i32
  }
  func.func @transform_18(%arg0: i32) -> (i32, i32) {
    %c0_i32 = arith.constant 0 : i32
    %c0_i32_0 = arith.constant 0 : i32
    %c0_i32_1 = arith.constant 0 : i32
    return %c0_i32, %c0_i32_0 : i32, i32
  }
}

</mosaic_0001>

<bundles_post_ra>
// kernel: vit_forward.1
= control target key start
LH: loop header
LB: loop body
LE: loop exit
PB: predicated region body
PF: predicated region fallthrough
CT: control target
= control target key end

     0   :  { %vm78_vm0 = vcmask 523264   ;;  %vm193_vm1 = vcmask 261120   ;;  %vm301_vm2 = vcmask 64512   ;;  %s6311_s25 = smov 96   ;;  %vm478_vm4 = vcmask 130048   ;;  %s6312_s26 = smov 64   ;;  %s7310_s2 = inlined_call_operand.vmem [shape: f32[64,32], index: 2, kind: input, shape index: {}]   ;;  %s7311_s0 = inlined_call_operand.vmem [shape: f32[32,64], index: 0, kind: input, shape index: {}]   ;;  %s7312_s4 = inlined_call_operand.vmem [shape: f32[2,32,96], index: 4, kind: input, shape index: {}]   ;;  %s7313_s3 = inlined_call_operand.vmem [shape: f32[1,32], index: 3, kind: input, shape index: {}]   ;;  %s7314_s1 = inlined_call_operand.vmem [shape: f32[16,32], index: 1, kind: input, shape index: {}]   ;;  %s7315_s5 = inlined_call_operand.vmem [shape: f32[2,1,96], index: 5, kind: input, shape index: {}]   ;;  %s7316_s6 = inlined_call_operand.vmem [shape: f32[2,32,32], index: 6, kind: input, shape index: {}]   ;;  %s7317_s7 = inlined_call_operand.vmem [shape: f32[2,1,32], index: 7, kind: input, shape index: {}]   ;;  %s7318_s10 = inlined_call_operand.vmem [shape: f32[2,32,128], index: 10, kind: input, shape index: {}]   ;;  %s7319_s12 = inlined_call_operand.vmem [shape: f32[2,128,32], index: 12, kind: input, shape index: {}]   ;;  %s7320_s8 = inlined_call_operand.vmem [shape: f32[2,1,32], index: 8, kind: input, shape index: {}]   ;;  %s7321_s9 = inlined_call_operand.vmem [shape: f32[2,1,32], index: 9, kind: input, shape index: {}]   ;;  %s7322_s11 = inlined_call_operand.vmem [shape: f32[2,1,128], index: 11, kind: input, shape index: {}]   ;;  %s7323_s13 = inlined_call_operand.vmem [shape: f32[2,1,32], index: 13, kind: input, shape index: {}]   ;;  %s7324_s14 = inlined_call_operand.vmem [shape: f32[2,1,32], index: 14, kind: input, shape index: {}]   ;;  %s7325_s15 = inlined_call_operand.vmem [shape: f32[2,1,32], index: 15, kind: input, shape index: {}]   ;;  %s7326_s16 = inlined_call_operand.vmem [shape: f32[32,64], index: 16, kind: input, shape index: {}]   ;;  %s7327_s17 = inlined_call_operand.vmem [shape: f32[1,64], index: 17, kind: input, shape index: {}]   ;;  %s7328_s18 = inlined_call_operand.vmem [shape: f32[32,64], index: 18, kind: output, shape index: {}]  }
   0x1   :  { %7350 = sst [smem:[#allocation2_spill]] %s7310_s2  ;;  %v4839_v22 = vld [vmem:[%s7313_s3] ss:$0 sm:$0xff]  ;;  %v177_v27 = vld [vmem:[%s7314_s1 + $0x8] sm:$0xff]  ;;  %vm6518_vm3 = vmpackc.low %vm301_vm2, %vm301_vm2  ;;  %s6313_s28 = smov 88   ;;  %vm1953_vm5 = vcmask 195584  }
   0x2   :  { %7351 = sst [smem:[#allocation3_spill]] %s7311_s0  ;;  %s7353_s29 = sld [smem:[#allocation2_spill]]  ;;  %v176_v26 = vld [vmem:[%s7314_s1] sm:$0xff] }
   0x3   :  { %7352 = sst [smem:[#allocation4_spill]] %s7312_s4  ;;  %s7354_s27 = sld [smem:[#allocation3_spill]]  ;;  %v4844_v37 = vld [vmem:[%s7315_s5] ss:$0 sm:$0xff] }
   0x4   :  { %s7355_s21 = sld [smem:[#allocation4_spill]]  ;;  %s6314_s30 = smov 120  }
   0x5   :  { %s6315_s2 = smov 56   ;;  %s7342_s19 = smov 80  }
   0x6   :  { %s7340_s0 = smov 112   ;;  %s7338_s20 = smov 48  }
   0x7   :  { %s7336_s22 = smov 72   ;;  %s7334_s4 = smov 104  }
   0x8   :  { %v63_v0 = vld [vmem:[%s7353_s29] sm:$0xff]  ;;  %v64_v1 = vld [vmem:[%s7353_s29 + $0x8] sm:$0xff]  ;;  %v65_v2 = vld [vmem:[%s7353_s29 + $0x10] sm:$0xff]  ;;  %s7332_s23 = smov 40   ;;  %s7348_s24 = smov 8  }
   0x9   :  { %v5677_v3 = vpack.c.bf16 %v64_v1, %v63_v0  ;;  %v66_v4 = vld [vmem:[%s7353_s29 + $0x18] sm:$0xff]  ;;  %v67_v6 = vld [vmem:[%s7353_s29 + $0x20] sm:$0xff]  ;;  %v68_v7 = vld [vmem:[%s7353_s29 + $0x28] sm:$0xff]  ;;  %s7344_s1 = smov 24  }
   0xa   :  { %v5681_v5 = vpack.c.bf16 %v66_v4, %v65_v2  ;;  %v59_v8 = vld [vmem:[%s7354_s27] sm:$0xff]  ;;  %v5685_v9 = vpack.c.bf16 %v68_v7, %v67_v6  ;;  %v69_v10 = vld [vmem:[%s7353_s29 + $0x30] sm:$0xff]  ;;  %v70_v11 = vld [vmem:[%s7353_s29 + $0x38] sm:$0xff]  ;;  %s7346_s29 = smov 16  }
   0xb   :  { %5678 = vmatprep.subr.bf16.mxu1 %v5677_v3  ;;  %5273 = vmatprep.mubr.msk.f32.mxu1 %vm78_vm0, %v59_v8  ;;  %v5689_v12 = vpack.c.bf16 %v70_v11, %v69_v10  ;;  %v182_v13 = vld [vmem:[%s7355_s21] sm:$0xff]  ;;  %v183_v14 = vld [vmem:[%s7355_s21 + $0x8] sm:$0xff]  ;;  %v61_v17 = vld [vmem:[%s7354_s27 + $0x10] sm:$0xff] }
   0xc   :  { %5680 = vmatpush3.bf16.msra.mxu1 %v5677_v3  ;;  %v5693_v15 = vpack.c.bf16 %v183_v14, %v182_v13  ;;  %v60_v16 = vld [vmem:[%s7354_s27 + $0x8] sm:$0xff]  ;;  %v62_v18 = vld [vmem:[%s7354_s27 + $0x18] sm:$0xff]  ;;  %v184_v19 = vld [vmem:[%s7355_s21 + $0x10] sm:$0xff] }
   0xd   :  { %5682 = vmatprep.subr.bf16.mxu1 %v5681_v5  ;;  %v185_v20 = vld [vmem:[%s7355_s21 + $0x18] sm:$0xff] }
   0xe   :  { %v5697_v21 = vpack.c.bf16 %v185_v20, %v184_v19 }
  0x10   :  { %5684 = vmatpush3.bf16.msra.mxu1 %v5681_v5 }
  0x11   :  { %5686 = vmatprep.subr.bf16.mxu1 %v5685_v9 }
  0x14   :  { %5688 = vmatpush3.bf16.msra.mxu1 %v5685_v9 }
  0x15   :  { %5690 = vmatprep.subr.bf16.mxu1 %v5689_v12 }
  0x18   :  { %5692 = vmatpush3.bf16.msra.mxu1 %v5689_v12 }
  0x19   :  { %5694 = vmatprep.subr.bf16.mxu1 %v5693_v15 }
  0x1b   :  { %5274 = vmatmul.mubr.msk.f32.vlgmr.msra.gmra.mrb[0].mxu1 %vm78_vm0, %v60_v16 }
  0x1c   :  { %5276 = vmatprep.mubr.msk.f32.mxu1 %vm78_vm0, %v61_v17  ;;  %5696 = vmatpush3.bf16.msra.mxu1 %v5693_v15 }
  0x1d   :  { %5698 = vmatprep.subr.bf16.mxu1 %v5697_v21 }
  0x1f   :  { %5277 = vmatmul.mubr.msk.f32.gmra.mrb[2].mxu1 %vm78_vm0, %v62_v18 }
  0x20   :  { %5700 = vmatpush3.bf16.msra.mxu1 %v5697_v21 }
  0xee   :  { %v5275_v23 = vpop.f32.mrb[0].mxu1 }
  0xef   :  { %v163_v24 = vadd.f32 %v5275_v23, %v4839_v22  ;;  %v157_v25 = vpop.f32.mrb[1].mxu1 }
  0xf0   :  { %v158_v28 = vadd.f32 %v4839_v22, %v157_v25 }
  0xf1   :  { %v6483_v31 = vadd.f32 %v177_v27, %v163_v24 }
  0xf2   :  { %v6481_v29 = vadd.f32 %v176_v26, %v158_v28  ;;  %v5278_v30 = vpop.f32.mrb[2].mxu1 }
  0xf3   :  { %v173_v32 = vadd.f32 %v5278_v30, %v4839_v22  ;;  %v167_v33 = vpop.f32.mrb[3].mxu1 }
  0xf4   :  { %v168_v34 = vadd.f32 %v4839_v22, %v167_v33  ;;  %5287 = vmatprep.mubr.msk.f32.mxu1 %vm193_vm1, %v6481_v29 }
  0xf5   :  { %v6487_v35 = vadd.f32 %v177_v27, %v173_v32  ;;  %5288 = vmatmul.mubr.msk.f32.vlgmr.msra.gmra.mrb[4].mxu1 %vm193_vm1, %v6483_v31 }
  0xf6   :  { %v6491_v36 = vadd.f32 %v176_v26, %v168_v34 }
  0xf8   :  { %5290 = vmatprep.mubr.msk.f32.mxu1 %vm193_vm1, %v6491_v36 }
  0xf9   :  { %5291 = vmatmul.mubr.msk.f32.gmra.mrb[6].mxu1 %vm193_vm1, %v6487_v35 }
 0x1c8   :  { %v5289_v38 = vpop.f32.mrb[4].mxu1 }
 0x1c9   :  { %v278_v39 = vadd.f32 %v5289_v38, %v4844_v37  ;;  %v272_v40 = vpop.f32.mrb[5].mxu1 }
 0x1ca   :  { %v273_v41 = vadd.f32 %v4844_v37, %v272_v40 }
 0x1cb   :  { %v6530_v59 = vmul.f32 0.35355338, %v278_v39 }
 0x1cc   :  { %v5292_v42 = vpop.f32.mrb[6].mxu1  ;;  %v6500_v43 = vpack.i.bf16 %v278_v39, %v273_v41  ;;  %v6502_v44 = vmul.f32 0.35355338, %v273_v41 }
 0x1cd   :  { %v288_v45 = vadd.f32 %v5292_v42, %v4844_v37  ;;  %v282_v46 = vpop.f32.mrb[7].mxu1 }
 0x1ce   :  { %v283_v47 = vadd.f32 %v4844_v37, %v282_v46  ;;  %5988 = vrot.lane.b32.xlu0 %v6500_v43, %s6311_s25  ;;  %5297 = vmatprep.mubr.msk.f32.mxu1 %vm301_vm2, %v6502_v44 }
 0x1cf   :  { %v6534_v60 = vmul.f32 0.35355338, %v288_v45 }
 0x1d0   :  { %v6508_v48 = vpack.i.bf16 %v288_v45, %v283_v47  ;;  %v6510_v49 = vmul.f32 0.35355338, %v283_v47 }
 0x1d2   :  { %5993 = vrot.lane.b32.xlu0 %v6508_v48, %s6311_s25  ;;  %5304 = vmatprep.mubr.msk.f32.mxu0 %vm301_vm2, %v6510_v49 }
 0x240   :  { %v5989_v50 = vpop.permute.xlu0 %5988 }
 0x241   :  { %v5991_v51 = vunpack.i.h.bf16 %v5989_v50  ;;  %v5990_v52 = vunpack.i.l.bf16 %v5989_v50 }
 0x243   :  { %v5701_v54 = vpack.c.bf16 %v5991_v51, %v5990_v52 }
 0x244   :  { %v5994_v55 = vpop.permute.xlu0 %5993 }
 0x245   :  { %5703 = vmatprep.subr.msk.bf16.mxu1 %vm6518_vm3, %v5701_v54  ;;  %v5996_v56 = vunpack.i.h.bf16 %v5994_v55  ;;  %v5995_v57 = vunpack.i.l.bf16 %v5994_v55 }
 0x246   :  { %5706 = vmatpush3.bf16.xpose.msk.msra.mxu1 %vm6518_vm3, %v5701_v54 }
 0x247   :  { %v5707_v58 = vpack.c.bf16 %v5996_v56, %v5995_v57 }
 0x249   :  { %5709 = vmatprep.subr.msk.bf16.mxu0 %vm6518_vm3, %v5707_v58 }
 0x24a   :  { %5712 = vmatpush3.bf16.xpose.msk.msra.mxu0 %vm6518_vm3, %v5707_v58 }
 0x24d   :  { %5298 = vmatmul.mubr.msk.f32.vlgmr.msra.gmra.mrb[8].mxu1 %vm301_vm2, %v6530_v59 }
 0x251   :  { %5305 = vmatmul.mubr.msk.f32.vlgmr.msra.gmra.mrb[0].mxu0 %vm301_vm2, %v6534_v60 }
 0x320   :  { %v5299_v61 = vpop.f32.mrb[8].mxu1 }
 0x321   :  { %v378_v62 = vpop.f32.mrb[9].mxu1  ;;  %v482_v3 = vsel %vm478_vm4, %v5299_v61, -inf }
 0x322   :  { %v479_v63 = vsel %vm478_vm4, %v378_v62, -inf }
 0x323   :  { %480 = vmax.xlane.f32.xlu1 %v479_v63 }
 0x324   :  { %v5306_v0 = vpop.f32.mrb[0].mxu0 }
 0x325   :  { %v469_v1 = vpop.f32.mrb[1].mxu0  ;;  %v488_v4 = vsel %vm478_vm4, %v5306_v0, -inf }
 0x326   :  { %v485_v2 = vsel %vm478_vm4, %v469_v1, -inf }
 0x327   :  { %486 = vmax.xlane.f32.xlu0 %v485_v2  ;;  %483 = vmax.xlane.f32.xlu1 %v482_v3 }
 0x32b   :  { %489 = vmax.xlane.f32.xlu1 %v488_v4 }
 0x33c   :  { %5998 = vrot.lane.b32.xlu1 %v6500_v43, %s6312_s26 }
 0x33d   :  { %6003 = vrot.lane.b32.xlu0 %v6508_v48, %s6312_s26 }
 0x340   :  { %6008 = vrot.lane.b32.xlu1 %v6500_v43, %s6313_s28 }
 0x341   :  { %788 = vrot.lane.b32.xlu0 %v6510_v49, %s6314_s30 }
 0x344   :  { %697 = vrot.lane.b32.xlu1 %v6502_v44, %s6314_s30 }
 0x348   :  { %6013 = vrot.lane.b32.xlu1 %v6508_v48, %s6313_s28 }
 0x34c   :  { %699 = vrot.lane.b32.xlu1 %v6530_v59, %s6314_s30 }
 0x3b0   :  { %v481_v5 = vpop.xlane.xlu1 %480 }
 0x3b1   :  { %v491_v6 = vsub.f32 %v378_v62, %v481_v5 }
 0x3b3   :  { %v495_v11 = vmul.f32 1.442695, %v491_v6 }
 0x3b4   :  { %v487_v7 = vpop.xlane.xlu0 %486  ;;  %v484_v8 = vpop.xlane.xlu1 %483 }
 0x3b5   :  { %v492_v9 = vsub.f32 %v5299_v61, %v484_v8  ;;  %v493_v18 = vsub.f32 %v469_v1, %v487_v7 }
 0x3b7   :  { %v497_v10 = vmul.f32 1.442695, %v492_v9  ;;  %v499_v24 = vmul.f32 1.442695, %v493_v18 }
 0x3b8   :  { %v6004_v12 = vpop.permute.xlu0 %6003  ;;  %v490_v13 = vpop.xlane.xlu1 %489 }
 0x3b9   :  { %v6006_v14 = vunpack.i.h.bf16 %v6004_v12  ;;  %v6005_v15 = vunpack.i.l.bf16 %v6004_v12  ;;  %v494_v16 = vsub.f32 %v5306_v0, %v490_v13  ;;  %6147 = vpow2.f32 %v497_v10 }
 0x3ba   :  { %6149 = vpow2.f32 %v495_v11 }
 0x3bb   :  { %v5717_v17 = vpack.c.bf16 %v6006_v14, %v6005_v15  ;;  %v501_v19 = vmul.f32 1.442695, %v494_v16 }
 0x3bc   :  { %v5999_v20 = vpop.permute.xlu1 %5998  ;;  %v789_v2 = vpop.permute.xlu0 %788 }
 0x3bd   :  { %v6001_v21 = vunpack.i.h.bf16 %v5999_v20  ;;  %v6000_v22 = vunpack.i.l.bf16 %v5999_v20  ;;  %5718 = vmatprep.subr.bf16.mxu1 %v5717_v17  ;;  %6151 = vpow2.f32 %v501_v19 }
 0x3be   :  { %5720 = vmatpush3.bf16.msra.mxu1 %v5717_v17  ;;  %6153 = vpow2.f32 %v499_v24 }
 0x3bf   :  { %v5713_v23 = vpack.c.bf16 %v6001_v21, %v6000_v22 }
 0x3c0   :  { %v6009_v25 = vpop.permute.xlu1 %6008 }
 0x3c1   :  { %v6011_v26 = vunpack.i.h.bf16 %v6009_v25  ;;  %v6010_v27 = vunpack.i.l.bf16 %v6009_v25  ;;  %5714 = vmatprep.subr.bf16.mxu0 %v5713_v23 }
 0x3c2   :  { %5716 = vmatpush3.bf16.msra.mxu0 %v5713_v23 }
 0x3c3   :  { %v5721_v28 = vpack.c.bf16 %v6011_v26, %v6010_v27  ;;  %v6148_v30 = vpop.eup %6147 }
 0x3c4   :  { %v698_v32 = vpop.permute.xlu1 %697  ;;  %v506_v33 = vsel %vm478_vm4, %v6148_v30, 0.0  ;;  %v6150_v34 = vpop.eup %6149 }
 0x3c5   :  { %5723 = vmatprep.subr.msk.bf16.mxu0 %vm6518_vm3, %v5721_v28  ;;  %507 = vadd.xlane.f32.xlu1 %v506_v33  ;;  %v503_v40 = vsel %vm478_vm4, %v6150_v34, 0.0 }
 0x3c7   :  { %v6152_v41 = vpop.eup %6151 }
 0x3c8   :  { %v6014_v37 = vpop.permute.xlu1 %6013  ;;  %v512_v45 = vsel %vm478_vm4, %v6152_v41, 0.0  ;;  %v6154_v46 = vpop.eup %6153 }
 0x3c9   :  { %v6016_v38 = vunpack.i.h.bf16 %v6014_v37  ;;  %v6015_v39 = vunpack.i.l.bf16 %v6014_v37  ;;  %504 = vadd.xlane.f32.xlu1 %v503_v40  ;;  %v509_v47 = vsel %vm478_vm4, %v6154_v46, 0.0 }
 0x3cb   :  { %v5727_v42 = vpack.c.bf16 %v6016_v38, %v6015_v39 }
 0x3cc   :  { %v700_v50 = vpop.permute.xlu1 %699 }
 0x3cd   :  { %5729 = vmatprep.subr.msk.bf16.mxu1 %vm6518_vm3, %v5727_v42  ;;  %513 = vadd.xlane.f32.xlu1 %v512_v45 }
 0x3d1   :  { %510 = vadd.xlane.f32.xlu1 %v509_v47 }
 0x3e2   :  { %790 = vrot.lane.b32.xlu1 %v6534_v60, %s6314_s30 }
 0x452   :  { %v508_v51 = vpop.xlane.xlu1 %507 }
 0x453   :  { %6155 = vrcp.f32 %v508_v51 }
 0x456   :  { %v505_v52 = vpop.xlane.xlu1 %504 }
 0x457   :  { %6157 = vrcp.f32 %v505_v52 }
 0x45a   :  { %v514_v54 = vpop.xlane.xlu1 %513 }
 0x45b   :  { %6159 = vrcp.f32 %v514_v54 }
 0x45d   :  { %v6156_v56 = vpop.eup %6155 }
 0x45e   :  { %v511_v55 = vpop.xlane.xlu1 %510  ;;  %v520_v61 = vmul.f32 %v6156_v56, %v6148_v30 }
 0x45f   :  { %6161 = vrcp.f32 %v511_v55 }
 0x461   :  { %v6158_v57 = vpop.eup %6157 }
 0x462   :  { %v519_v58 = vmul.f32 %v6158_v57, %v6150_v34  ;;  %v791_v3 = vpop.permute.xlu1 %790 }
 0x464   :  { %5311 = vmatprep.mubr.msk.f32.mxu0 %vm478_vm4, %v519_v58 }
 0x465   :  { %5312 = vmatmul.mubr.msk.f32.vlgmr.msra.gmra.mrb[2].mxu0 %vm478_vm4, %v520_v61  ;;  %v6160_v62 = vpop.eup %6159 }
 0x466   :  { %5726 = vmatpush3.bf16.xpose.msk.msra.mxu0 %vm6518_vm3, %v5721_v28  ;;  %5325 = vmatprep.mubr.msk.f32.mxu0 %vm301_vm2, %v698_v32  ;;  %v522_v1 = vmul.f32 %v6160_v62, %v6152_v41 }
 0x469   :  { %v6162_v63 = vpop.eup %6161 }
 0x46a   :  { %v521_v0 = vmul.f32 %v6162_v63, %v6154_v46 }
 0x46c   :  { %5318 = vmatprep.mubr.msk.f32.mxu1 %vm478_vm4, %v521_v0 }
 0x46d   :  { %5326 = vmatmul.mubr.msk.f32.vlgmr.msra.gmra.mrb[4].mxu0 %vm301_vm2, %v700_v50  ;;  %5319 = vmatmul.mubr.msk.f32.vlgmr.msra.gmra.mrb[10].mxu1 %vm478_vm4, %v522_v1 }
 0x46e   :  { %5732 = vmatpush3.bf16.xpose.msk.msra.mxu1 %vm6518_vm3, %v5727_v42  ;;  %5332 = vmatprep.mubr.msk.f32.mxu1 %vm301_vm2, %v789_v2 }
 0x475   :  { %5333 = vmatmul.mubr.msk.f32.vlgmr.msra.gmra.mrb[12].mxu1 %vm301_vm2, %v791_v3 }
 0x538   :  { %v6578_v4 = vpop.f32.mrb[2].mxu0 }
 0x539   :  { %v6580_v5 = vpop.f32.mrb[3].mxu0 }
 0x540   :  { %v5327_v6 = vpop.f32.mrb[4].mxu0  ;;  %v6582_v7 = vpop.f32.mrb[10].mxu1 }
 0x541   :  { %v779_v8 = vpop.f32.mrb[5].mxu0  ;;  %v6584_v9 = vpop.f32.mrb[11].mxu1  ;;  %v882_v10 = vsel %vm478_vm4, %v5327_v6, -inf }
 0x542   :  { %883 = vmax.xlane.f32.xlu1 %v882_v10  ;;  %v879_v11 = vsel %vm478_vm4, %v779_v8, -inf }
 0x543   :  { %880 = vmax.xlane.f32.xlu0 %v879_v11 }
 0x548   :  { %v5334_v12 = vpop.f32.mrb[12].mxu1 }
 0x549   :  { %v870_v13 = vpop.f32.mrb[13].mxu1  ;;  %v888_v15 = vsel %vm478_vm4, %v5334_v12, -inf }
 0x54a   :  { %v885_v14 = vsel %vm478_vm4, %v870_v13, -inf }
 0x54b   :  { %886 = vmax.xlane.f32.xlu0 %v885_v14 }
 0x54f   :  { %889 = vmax.xlane.f32.xlu0 %v888_v15 }
 0x553   :  { %6018 = vrot.lane.b32.xlu1 %v6500_v43, %s6315_s2 }
 0x557   :  { %6028 = vrot.lane.b32.xlu1 %v6500_v43, %s7342_s19 }
 0x55b   :  { %1097 = vrot.lane.b32.xlu1 %v6502_v44, %s7340_s0 }
 0x565   :  { %6023 = vrot.lane.b32.xlu0 %v6508_v48, %s6315_s2 }
 0x5cf   :  { %v884_v16 = vpop.xlane.xlu1 %883 }
 0x5d0   :  { %v892_v17 = vsub.f32 %v5327_v6, %v884_v16  ;;  %v881_v18 = vpop.xlane.xlu0 %880 }
 0x5d1   :  { %v891_v19 = vsub.f32 %v779_v8, %v881_v18 }
 0x5d2   :  { %v897_v20 = vmul.f32 1.442695, %v892_v17 }
 0x5d3   :  { %v895_v21 = vmul.f32 1.442695, %v891_v19  ;;  %v6019_v22 = vpop.permute.xlu1 %6018 }
 0x5d4   :  { %6163 = vpow2.f32 %v897_v20  ;;  %v6021_v23 = vunpack.i.h.bf16 %v6019_v22  ;;  %v6020_v24 = vunpack.i.l.bf16 %v6019_v22 }
 0x5d5   :  { %6165 = vpow2.f32 %v895_v21 }
 0x5d6   :  { %v5733_v25 = vpack.c.bf16 %v6021_v23, %v6020_v24 }
 0x5d7   :  { %v6029_v26 = vpop.permute.xlu1 %6028 }
 0x5d8   :  { %v6031_v27 = vunpack.i.h.bf16 %v6029_v26  ;;  %v6030_v28 = vunpack.i.l.bf16 %v6029_v26  ;;  %5734 = vmatprep.subr.bf16.mxu0 %v5733_v25  ;;  %v887_v30 = vpop.xlane.xlu0 %886 }
 0x5d9   :  { %5736 = vmatpush3.bf16.msra.mxu0 %v5733_v25  ;;  %v893_v52 = vsub.f32 %v870_v13, %v887_v30 }
 0x5da   :  { %v5741_v32 = vpack.c.bf16 %v6031_v27, %v6030_v28 }
 0x5db   :  { %v899_v54 = vmul.f32 1.442695, %v893_v52  ;;  %v1098_v57 = vpop.permute.xlu1 %1097 }
 0x5dc   :  { %5743 = vmatprep.subr.msk.bf16.mxu0 %vm6518_vm3, %v5741_v32  ;;  %v890_v33 = vpop.xlane.xlu0 %889 }
 0x5dd   :  { %v894_v34 = vsub.f32 %v5334_v12, %v890_v33 }
 0x5de   :  { %v6164_v37 = vpop.eup %6163 }
 0x5df   :  { %v6166_v38 = vpop.eup %6165  ;;  %v901_v39 = vmul.f32 1.442695, %v894_v34  ;;  %v906_v40 = vsel %vm478_vm4, %v6164_v37, 0.0 }
 0x5e0   :  { %907 = vadd.xlane.f32.xlu0 %v906_v40  ;;  %v6024_v41 = vpop.permute.xlu0 %6023  ;;  %v903_v42 = vsel %vm478_vm4, %v6166_v38, 0.0 }
 0x5e1   :  { %6167 = vpow2.f32 %v901_v39  ;;  %v6026_v45 = vunpack.i.h.bf16 %v6024_v41  ;;  %v6025_v46 = vunpack.i.l.bf16 %v6024_v41  ;;  %904 = vadd.xlane.f32.xlu1 %v903_v42 }
 0x5e2   :  { %6169 = vpow2.f32 %v899_v54 }
 0x5e3   :  { %v5737_v47 = vpack.c.bf16 %v6026_v45, %v6025_v46 }
 0x5e5   :  { %5738 = vmatprep.subr.bf16.mxu1 %v5737_v47 }
 0x5e6   :  { %5740 = vmatpush3.bf16.msra.mxu1 %v5737_v47 }
 0x5eb   :  { %v6168_v50 = vpop.eup %6167 }
 0x5ec   :  { %v912_v51 = vsel %vm478_vm4, %v6168_v50, 0.0  ;;  %v6170_v55 = vpop.eup %6169 }
 0x5ed   :  { %913 = vadd.xlane.f32.xlu0 %v912_v51  ;;  %v909_v56 = vsel %vm478_vm4, %v6170_v55, 0.0 }
 0x5f2   :  { %1099 = vrot.lane.b32.xlu1 %v6530_v59, %s7340_s0 }
 0x603   :  { %6033 = vrot.lane.b32.xlu0 %v6508_v48, %s7342_s19 }
 0x607   :  { %1188 = vrot.lane.b32.xlu0 %v6510_v49, %s7340_s0 }
 0x616   :  { %910 = vadd.xlane.f32.xlu1 %v909_v56 }
 0x627   :  { %1190 = vrot.lane.b32.xlu1 %v6534_v60, %s7340_s0 }
 0x66d   :  { %v908_v58 = vpop.xlane.xlu0 %907 }
 0x66e   :  { %6171 = vrcp.f32 %v908_v58  ;;  %v905_v61 = vpop.xlane.xlu1 %904 }
 0x66f   :  { %6173 = vrcp.f32 %v905_v61 }
 0x672   :  { %v1100_v11 = vpop.permute.xlu1 %1099 }
 0x678   :  { %v6172_v62 = vpop.eup %6171 }
 0x679   :  { %v6174_v63 = vpop.eup %6173  ;;  %v920_v2 = vmul.f32 %v6172_v62, %v6164_v37 }
 0x67a   :  { %v914_v0 = vpop.xlane.xlu0 %913  ;;  %v919_v1 = vmul.f32 %v6174_v63, %v6166_v38 }
 0x67b   :  { %6175 = vrcp.f32 %v914_v0 }
 0x67c   :  { %5339 = vmatprep.mubr.msk.f32.mxu0 %vm478_vm4, %v919_v1 }
 0x67d   :  { %5340 = vmatmul.mubr.msk.f32.vlgmr.msra.gmra.mrb[6].mxu0 %vm478_vm4, %v920_v2 }
 0x67e   :  { %5746 = vmatpush3.bf16.xpose.msk.msra.mxu0 %vm6518_vm3, %v5741_v32  ;;  %5353 = vmatprep.mubr.msk.f32.mxu0 %vm301_vm2, %v1098_v57  ;;  %v6034_v3 = vpop.permute.xlu0 %6033 }
 0x67f   :  { %v6036_v6 = vunpack.i.h.bf16 %v6034_v3  ;;  %v6035_v8 = vunpack.i.l.bf16 %v6034_v3 }
 0x681   :  { %v5747_v10 = vpack.c.bf16 %v6036_v6, %v6035_v8 }
 0x682   :  { %v1189_v17 = vpop.permute.xlu0 %1188 }
 0x683   :  { %5749 = vmatprep.subr.msk.bf16.mxu1 %vm6518_vm3, %v5747_v10 }
 0x685   :  { %5354 = vmatmul.mubr.msk.f32.vlgmr.msra.gmra.mrb[8].mxu0 %vm301_vm2, %v1100_v11  ;;  %v6176_v13 = vpop.eup %6175 }
 0x686   :  { %v922_v16 = vmul.f32 %v6176_v13, %v6168_v50 }
 0x6a3   :  { %v911_v12 = vpop.xlane.xlu1 %910 }
 0x6a4   :  { %6177 = vrcp.f32 %v911_v12 }
 0x6a7   :  { %v1191_v18 = vpop.permute.xlu1 %1190 }
 0x6ae   :  { %v6178_v14 = vpop.eup %6177 }
 0x6af   :  { %v921_v15 = vmul.f32 %v6178_v14, %v6170_v55 }
 0x6b1   :  { %5346 = vmatprep.mubr.msk.f32.mxu1 %vm478_vm4, %v921_v15 }
 0x6b2   :  { %5347 = vmatmul.mubr.msk.f32.vlgmr.msra.gmra.mrb[14].mxu1 %vm478_vm4, %v922_v16 }
 0x6b3   :  { %5752 = vmatpush3.bf16.xpose.msk.msra.mxu1 %vm6518_vm3, %v5747_v10  ;;  %5360 = vmatprep.mubr.msk.f32.mxu1 %vm301_vm2, %v1189_v17 }
 0x6ba   :  { %5361 = vmatmul.mubr.msk.f32.vlgmr.msra.gmra.mrb[16].mxu1 %vm301_vm2, %v1191_v18 }
 0x750   :  { %v6626_v19 = vpop.f32.mrb[6].mxu0 }
 0x751   :  { %v6628_v20 = vpop.f32.mrb[7].mxu0 }
 0x758   :  { %v5355_v21 = vpop.f32.mrb[8].mxu0 }
 0x759   :  { %v1179_v22 = vpop.f32.mrb[9].mxu0  ;;  %v1282_v23 = vsel %vm478_vm4, %v5355_v21, -inf }
 0x75a   :  { %1283 = vmax.xlane.f32.xlu1 %v1282_v23  ;;  %v1279_v24 = vsel %vm478_vm4, %v1179_v22, -inf }
 0x75b   :  { %1280 = vmax.xlane.f32.xlu0 %v1279_v24 }
 0x76b   :  { %6038 = vrot.lane.b32.xlu1 %v6500_v43, %s7338_s20 }
 0x76f   :  { %6048 = vrot.lane.b32.xlu1 %v6500_v43, %s7336_s22 }
 0x773   :  { %1497 = vrot.lane.b32.xlu1 %v6502_v44, %s7334_s4 }
 0x785   :  { %v6638_v25 = vpop.f32.mrb[14].mxu1 }
 0x786   :  { %v6640_v26 = vpop.f32.mrb[15].mxu1 }
 0x78d   :  { %v5362_v27 = vpop.f32.mrb[16].mxu1 }
 0x78e   :  { %v1270_v28 = vpop.f32.mrb[17].mxu1  ;;  %v1288_v32 = vsel %vm478_vm4, %v5362_v27, -inf }
 0x78f   :  { %v1285_v30 = vsel %vm478_vm4, %v1270_v28, -inf }
 0x790   :  { %1286 = vmax.xlane.f32.xlu0 %v1285_v30 }
 0x794   :  { %1289 = vmax.xlane.f32.xlu0 %v1288_v32 }
 0x7aa   :  { %6043 = vrot.lane.b32.xlu0 %v6508_v48, %s7338_s20 }
 0x7e7   :  { %v1284_v33 = vpop.xlane.xlu1 %1283 }
 0x7e8   :  { %v1292_v34 = vsub.f32 %v5355_v21, %v1284_v33  ;;  %v1281_v37 = vpop.xlane.xlu0 %1280 }
 0x7e9   :  { %v1291_v38 = vsub.f32 %v1179_v22, %v1281_v37 }
 0x7ea   :  { %v1297_v44 = vmul.f32 1.442695, %v1292_v34 }
 0x7eb   :  { %v1295_v39 = vmul.f32 1.442695, %v1291_v38  ;;  %v6039_v40 = vpop.permute.xlu1 %6038 }
 0x7ec   :  { %6179 = vpow2.f32 %v1297_v44  ;;  %v6041_v41 = vunpack.i.h.bf16 %v6039_v40  ;;  %v6040_v42 = vunpack.i.l.bf16 %v6039_v40 }
 0x7ed   :  { %6181 = vpow2.f32 %v1295_v39 }
 0x7ee   :  { %v5753_v45 = vpack.c.bf16 %v6041_v41, %v6040_v42 }
 0x7ef   :  { %v6049_v46 = vpop.permute.xlu1 %6048 }
 0x7f0   :  { %v6051_v47 = vunpack.i.h.bf16 %v6049_v46  ;;  %v6050_v50 = vunpack.i.l.bf16 %v6049_v46  ;;  %5754 = vmatprep.subr.bf16.mxu0 %v5753_v45 }
 0x7f1   :  { %5756 = vmatpush3.bf16.msra.mxu0 %v5753_v45 }
 0x7f2   :  { %v5761_v51 = vpack.c.bf16 %v6051_v47, %v6050_v50 }
 0x7f3   :  { %v1498_v12 = vpop.permute.xlu1 %1497 }
 0x7f4   :  { %5763 = vmatprep.subr.msk.bf16.mxu0 %vm6518_vm3, %v5761_v51 }
 0x7f6   :  { %v6180_v52 = vpop.eup %6179 }
 0x7f7   :  { %v6182_v54 = vpop.eup %6181  ;;  %v1306_v55 = vsel %vm478_vm4, %v6180_v52, 0.0 }
 0x7f8   :  { %1307 = vadd.xlane.f32.xlu0 %v1306_v55  ;;  %v1303_v56 = vsel %vm478_vm4, %v6182_v54, 0.0 }
 0x7f9   :  { %1304 = vadd.xlane.f32.xlu1 %v1303_v56 }
 0x80a   :  { %1499 = vrot.lane.b32.xlu1 %v6530_v59, %s7334_s4 }
 0x81d   :  { %v1287_v57 = vpop.xlane.xlu0 %1286 }
 0x81e   :  { %v1293_v58 = vsub.f32 %v1270_v28, %v1287_v57 }
 0x820   :  { %v1299_v61 = vmul.f32 1.442695, %v1293_v58 }
 0x821   :  { %v1290_v62 = vpop.xlane.xlu0 %1289 }
 0x822   :  { %6183 = vpow2.f32 %v1299_v61  ;;  %v1294_v63 = vsub.f32 %v5362_v27, %v1290_v62 }
 0x824   :  { %v1301_v0 = vmul.f32 1.442695, %v1294_v63 }
 0x825   :  { %v6044_v1 = vpop.permute.xlu0 %6043 }
 0x826   :  { %6185 = vpow2.f32 %v1301_v0  ;;  %v6046_v2 = vunpack.i.h.bf16 %v6044_v1  ;;  %v6045_v3 = vunpack.i.l.bf16 %v6044_v1 }
 0x828   :  { %v5757_v6 = vpack.c.bf16 %v6046_v2, %v6045_v3 }
 0x82a   :  { %5758 = vmatprep.subr.bf16.mxu1 %v5757_v6 }
 0x82b   :  { %5760 = vmatpush3.bf16.msra.mxu1 %v5757_v6 }
 0x82c   :  { %v6184_v8 = vpop.eup %6183 }
 0x82d   :  { %v1309_v10 = vsel %vm478_vm4, %v6184_v8, 0.0 }
 0x82e   :  { %1310 = vadd.xlane.f32.xlu1 %v1309_v10 }
 0x830   :  { %v6186_v11 = vpop.eup %6185 }
 0x831   :  { %v1312_v59 = vsel %vm478_vm4, %v6186_v11, 0.0 }
 0x832   :  { %1313 = vadd.xlane.f32.xlu0 %v1312_v59 }
 0x83f   :  { %1590 = vrot.lane.b32.xlu1 %v6534_v60, %s7334_s4 }
 0x848   :  { %6053 = vrot.lane.b32.xlu0 %v6508_v48, %s7336_s22 }
 0x84c   :  { %1588 = vrot.lane.b32.xlu0 %v6510_v49, %s7334_s4  ;;  %s7365_s4 = smov 16  }
 0x885   :  { %v1308_v13 = vpop.xlane.xlu0 %1307 }
 0x886   :  { %6187 = vrcp.f32 %v1308_v13  ;;  %v1305_v14 = vpop.xlane.xlu1 %1304 }
 0x887   :  { %6189 = vrcp.f32 %v1305_v14 }
 0x88a   :  { %v1500_v60 = vpop.permute.xlu1 %1499 }
 0x890   :  { %v6188_v15 = vpop.eup %6187 }
 0x891   :  { %v6190_v16 = vpop.eup %6189  ;;  %v1320_v18 = vmul.f32 %v6188_v15, %v6180_v52 }
 0x892   :  { %v1319_v17 = vmul.f32 %v6190_v16, %v6182_v54 }
 0x894   :  { %5367 = vmatprep.mubr.msk.f32.mxu0 %vm478_vm4, %v1319_v17 }
 0x895   :  { %5368 = vmatmul.mubr.msk.f32.vlgmr.msra.gmra.mrb[10].mxu0 %vm478_vm4, %v1320_v18 }
 0x896   :  { %5766 = vmatpush3.bf16.xpose.msk.msra.mxu0 %vm6518_vm3, %v5761_v51  ;;  %5381 = vmatprep.mubr.msk.f32.mxu0 %vm301_vm2, %v1498_v12 }
 0x89d   :  { %5382 = vmatmul.mubr.msk.f32.vlgmr.msra.gmra.mrb[12].mxu0 %vm301_vm2, %v1500_v60 }
 0x8bb   :  { %v1311_v49 = vpop.xlane.xlu1 %1310 }
 0x8bc   :  { %6191 = vrcp.f32 %v1311_v49 }
 0x8bf   :  { %v1314_v21 = vpop.xlane.xlu0 %1313  ;;  %v1591_v37 = vpop.permute.xlu1 %1590 }
 0x8c0   :  { %6193 = vrcp.f32 %v1314_v21 }
 0x8c3   :  { %v6054_v22 = vpop.permute.xlu0 %6053 }
 0x8c4   :  { %v6056_v23 = vunpack.i.h.bf16 %v6054_v22  ;;  %v6055_v24 = vunpack.i.l.bf16 %v6054_v22 }
 0x8c6   :  { %v6192_v27 = vpop.eup %6191  ;;  %v5767_v28 = vpack.c.bf16 %v6056_v23, %v6055_v24 }
 0x8c7   :  { %v1321_v30 = vmul.f32 %v6192_v27, %v6184_v8  ;;  %v1589_v34 = vpop.permute.xlu0 %1588 }
 0x8c8   :  { %5769 = vmatprep.subr.msk.bf16.mxu1 %vm6518_vm3, %v5767_v28 }
 0x8c9   :  { %5374 = vmatprep.mubr.msk.f32.mxu1 %vm478_vm4, %v1321_v30 }
 0x8ca   :  { %v6194_v32 = vpop.eup %6193 }
 0x8cb   :  { %v1322_v33 = vmul.f32 %v6194_v32, %v6186_v11 }
 0x8cd   :  { %5375 = vmatmul.mubr.msk.f32.vlgmr.msra.gmra.mrb[18].mxu1 %vm478_vm4, %v1322_v33 }
 0x8ce   :  { %5772 = vmatpush3.bf16.xpose.msk.msra.mxu1 %vm6518_vm3, %v5767_v28  ;;  %5388 = vmatprep.mubr.msk.f32.mxu1 %vm301_vm2, %v1589_v34 }
 0x8d5   :  { %5389 = vmatmul.mubr.msk.f32.vlgmr.msra.gmra.mrb[20].mxu1 %vm301_vm2, %v1591_v37  ;;  %v1958_v37 = vld [vmem:[%s7316_s6] sm:$0xff] }
 0x968   :  { %v5369_v38 = vpop.f32.mrb[10].mxu0 }
 0x969   :  { %v1401_v44 = vpop.f32.mrb[11].mxu0 }
 0x970   :  { %v5383_v39 = vpop.f32.mrb[12].mxu0 }
 0x971   :  { %v1579_v40 = vpop.f32.mrb[13].mxu0  ;;  %v1682_v41 = vsel %vm478_vm4, %v5383_v39, -inf }
 0x972   :  { %1683 = vmax.xlane.f32.xlu1 %v1682_v41  ;;  %v1679_v42 = vsel %vm478_vm4, %v1579_v40, -inf }
 0x973   :  { %1680 = vmax.xlane.f32.xlu0 %v1679_v42 }
 0x9a0   :  { %v6676_v45 = vpop.f32.mrb[18].mxu1 }
 0x9a1   :  { %v6678_v46 = vpop.f32.mrb[19].mxu1 }
 0x9a8   :  { %v5390_v47 = vpop.f32.mrb[20].mxu1 }
 0x9a9   :  { %v1670_v50 = vpop.f32.mrb[21].mxu1  ;;  %v1688_v52 = vsel %vm478_vm4, %v5390_v47, -inf }
 0x9aa   :  { %v1685_v51 = vsel %vm478_vm4, %v1670_v50, -inf }
 0x9ab   :  { %1686 = vmax.xlane.f32.xlu0 %v1685_v51 }
 0x9af   :  { %1689 = vmax.xlane.f32.xlu0 %v1688_v52 }
 0x9ff   :  { %v1684_v54 = vpop.xlane.xlu1 %1683 }
 0xa00   :  { %v1692_v55 = vsub.f32 %v5383_v39, %v1684_v54  ;;  %v1681_v56 = vpop.xlane.xlu0 %1680 }
 0xa01   :  { %v1691_v57 = vsub.f32 %v1579_v40, %v1681_v56  ;;  %v1961_v40 = vld [vmem:[%s7316_s6 + $0x18] sm:$0xff] }
 0xa02   :  { %v1697_v58 = vmul.f32 1.442695, %v1692_v55 }
 0xa03   :  { %v1695_v61 = vmul.f32 1.442695, %v1691_v57 }
 0xa04   :  { %6195 = vpow2.f32 %v1697_v58 }
 0xa05   :  { %6197 = vpow2.f32 %v1695_v61 }
 0xa0e   :  { %v6196_v62 = vpop.eup %6195 }
 0xa0f   :  { %v6198_v63 = vpop.eup %6197  ;;  %v1706_v0 = vsel %vm478_vm4, %v6196_v62, 0.0 }
 0xa10   :  { %1707 = vadd.xlane.f32.xlu0 %v1706_v0  ;;  %v1703_v1 = vsel %vm478_vm4, %v6198_v63, 0.0 }
 0xa11   :  { %1704 = vadd.xlane.f32.xlu1 %v1703_v1 }
 0xa38   :  { %v1687_v2 = vpop.xlane.xlu0 %1686 }
 0xa39   :  { %v1693_v3 = vsub.f32 %v1670_v50, %v1687_v2 }
 0xa3b   :  { %v1699_v6 = vmul.f32 1.442695, %v1693_v3 }
 0xa3c   :  { %v1690_v8 = vpop.xlane.xlu0 %1689 }
 0xa3d   :  { %6199 = vpow2.f32 %v1699_v6  ;;  %v1694_v10 = vsub.f32 %v5390_v47, %v1690_v8 }
 0xa3f   :  { %v1701_v11 = vmul.f32 1.442695, %v1694_v10 }
 0xa41   :  { %6201 = vpow2.f32 %v1701_v11 }
 0xa47   :  { %v6200_v59 = vpop.eup %6199 }
 0xa48   :  { %v1709_v12 = vsel %vm478_vm4, %v6200_v59, 0.0 }
 0xa49   :  { %1710 = vadd.xlane.f32.xlu1 %v1709_v12 }
 0xa4b   :  { %v6202_v13 = vpop.eup %6201 }
 0xa4c   :  { %v1712_v14 = vsel %vm478_vm4, %v6202_v13, 0.0 }
 0xa4d   :  { %1713 = vadd.xlane.f32.xlu0 %v1712_v14 }
 0xa5a   :  { %6058 = vrot.lane.b32.xlu1 %v6500_v43, %s7332_s23 }
 0xa5e   :  { %1901 = vrot.lane.b32.xlu1 %v6628_v20, %s7348_s24 }
 0xa62   :  { %1903 = vrot.lane.b32.xlu1 %v6626_v19, %s7348_s24 }
 0xa63   :  { %6063 = vrot.lane.b32.xlu0 %v6508_v48, %s7332_s23 }
 0xa66   :  { %1919 = vrot.lane.b32.xlu1 %v5369_v38, %s7346_s29  ;;  %v1959_v38 = vld [vmem:[%s7316_s6 + $0x8] sm:$0xff] }
 0xa67   :  { %1917 = vrot.lane.b32.xlu0 %v1401_v44, %s7346_s29  ;;  %v1960_v44 = vld [vmem:[%s7316_s6 + $0x10] sm:$0xff]  ;;  %v5781_v39 = vpack.c.bf16 %v1959_v38, %v1958_v37 }
 0xa68   :  { %v5785_v41 = vpack.c.bf16 %v1961_v40, %v1960_v44 }
 0xa9d   :  { %v1708_v43 = vpop.xlane.xlu0 %1707 }
 0xa9e   :  { %v1705_v15 = vpop.xlane.xlu1 %1704 }
 0xa9f   :  { %6203 = vrcp.f32 %v1705_v15 }
 0xaa0   :  { %6205 = vrcp.f32 %v1708_v43 }
 0xaa9   :  { %v6204_v16 = vpop.eup %6203 }
 0xaaa   :  { %v1719_v17 = vmul.f32 %v6204_v16, %v6198_v63  ;;  %v6206_v21 = vpop.eup %6205 }
 0xaab   :  { %v1720_v28 = vmul.f32 %v6206_v21, %v6196_v62 }
 0xaac   :  { %5395 = vmatprep.mubr.msk.f32.mxu0 %vm478_vm4, %v1719_v17 }
 0xad6   :  { %v1711_v20 = vpop.xlane.xlu1 %1710 }
 0xad7   :  { %6207 = vrcp.f32 %v1711_v20 }
 0xada   :  { %v6059_v18 = vpop.permute.xlu1 %6058  ;;  %v1714_v19 = vpop.xlane.xlu0 %1713 }
 0xadb   :  { %v6061_v60 = vunpack.i.h.bf16 %v6059_v18  ;;  %v6060_v49 = vunpack.i.l.bf16 %v6059_v18  ;;  %6209 = vrcp.f32 %v1714_v19 }
 0xadd   :  { %v5773_v48 = vpack.c.bf16 %v6061_v60, %v6060_v49 }
 0xade   :  { %v6064_v22 = vpop.permute.xlu0 %6063  ;;  %v1902_v52 = vpop.permute.xlu1 %1901 }
 0xadf   :  { %v6066_v23 = vunpack.i.h.bf16 %v6064_v22  ;;  %v6065_v24 = vunpack.i.l.bf16 %v6064_v22  ;;  %5774 = vmatprep.subr.bf16.mxu0 %v5773_v48 }
 0xae0   :  { %5776 = vmatpush3.bf16.msra.mxu0 %v5773_v48 }
 0xae1   :  { %v6208_v27 = vpop.eup %6207  ;;  %v5777_v30 = vpack.c.bf16 %v6066_v23, %v6065_v24  ;;  %5782 = vmatprep.subr.bf16.mxu0 %v5781_v39 }
 0xae2   :  { %v1721_v32 = vmul.f32 %v6208_v27, %v6200_v59  ;;  %v1904_v54 = vpop.permute.xlu1 %1903  ;;  %v1918_v56 = vpop.permute.xlu0 %1917 }
 0xae3   :  { %5396 = vmatmul.mubr.msk.f32.vlgmr.msra.gmra.mrb[14].mxu0 %vm478_vm4, %v1720_v28  ;;  %5778 = vmatprep.subr.bf16.mxu1 %v5777_v30  ;;  %v1946_v57 = vsel %vm301_vm2, %v6578_v4, %v1904_v54  ;;  %v2147_v54 = vld [vmem:[%s7318_s10 + $0x10] sm:$0xff] }
 0xae4   :  { %5780 = vmatpush3.bf16.msra.mxu1 %v5777_v30  ;;  %5402 = vmatprep.mubr.msk.f32.mxu1 %vm478_vm4, %v1721_v32 }
 0xae5   :  { %v6210_v33 = vpop.eup %6209  ;;  %5784 = vmatpush3.bf16.msra.mxu0 %v5781_v39 }
 0xae6   :  { %v1722_v34 = vmul.f32 %v6210_v33, %v6202_v13  ;;  %5786 = vmatprep.subr.bf16.mxu0 %v5785_v41  ;;  %v1920_v55 = vpop.permute.xlu1 %1919 }
 0xae8   :  { %5403 = vmatmul.mubr.msk.f32.vlgmr.msra.gmra.mrb[22].mxu1 %vm478_vm4, %v1722_v34 }
 0xae9   :  { %5788 = vmatpush3.bf16.msra.mxu0 %v5785_v41 }
 0xbb6   :  { %v5397_v42 = vpop.f32.mrb[14].mxu0 }
 0xbb7   :  { %1935 = vrot.lane.b32.xlu1 %v5397_v42, %s7344_s1  ;;  %v1801_v47 = vpop.f32.mrb[15].mxu0 }
 0xbb8   :  { %1933 = vrot.lane.b32.xlu0 %v1801_v47, %s7344_s1 }
 0xbbb   :  { %1907 = vrot.lane.b32.xlu1 %v6638_v25, %s7348_s24  ;;  %v5404_v50 = vpop.f32.mrb[22].mxu1  ;;  %v1945_v25 = vsel %vm301_vm2, %v6580_v5, %v1902_v52 }
 0xbbc   :  { %1905 = vrot.lane.b32.xlu0 %v6640_v26, %s7348_s24  ;;  %v1888_v51 = vpop.f32.mrb[23].mxu1  ;;  %s7366_s24 = smov 24  }
 0xbbf   :  { %1923 = vrot.lane.b32.xlu1 %v6676_v45, %s7346_s29  ;;  %v1949_v45 = vsel %vm478_vm4, %v1945_v25, %v1918_v56  ;;  %v2257_v25 = vld [vmem:[%s7319_s12] sm:$0xff] }
 0xbc0   :  { %1921 = vrot.lane.b32.xlu0 %v6678_v46, %s7346_s29  ;;  %v1950_v46 = vsel %vm478_vm4, %v1946_v57, %v1920_v55  ;;  %v2148_v55 = vld [vmem:[%s7318_s10 + $0x18] sm:$0xff]  ;;  %v2259_v57 = vld [vmem:[%s7319_s12 + $0x10] sm:$0xff]  ;;  %s7364_s29 = smov 8  }
 0xbc1   :  { %v5793_v56 = vpack.c.bf16 %v2148_v55, %v2147_v54 }
 0xbc3   :  { %1939 = vrot.lane.b32.xlu1 %v5404_v50, %s7344_s1  ;;  %v2145_v50 = vld [vmem:[%s7318_s10] sm:$0xff] }
 0xbc4   :  { %1937 = vrot.lane.b32.xlu0 %v1888_v51, %s7344_s1  ;;  %v2146_v51 = vld [vmem:[%s7318_s10 + $0x8] sm:$0xff] }
 0xbc5   :  { %v5789_v52 = vpack.c.bf16 %v2146_v51, %v2145_v50 }
 0xbc7   :  { %5790 = vmatprep.subr.bf16.mxu1 %v5789_v52 }
 0xbc8   :  { %5792 = vmatpush3.bf16.msra.mxu1 %v5789_v52 }
 0xbc9   :  { %5794 = vmatprep.subr.bf16.mxu1 %v5793_v56 }
 0xbcc   :  { %5796 = vmatpush3.bf16.msra.mxu1 %v5793_v56 }
 0xc29   :  { %v1936_v26 = vpop.permute.xlu1 %1935 }
 0xc2a   :  { %v1934_v58 = vpop.permute.xlu0 %1933  ;;  %v1955_v62 = vsel %vm1953_vm5, %v1950_v46, %v1936_v26  ;;  %v2258_v26 = vld [vmem:[%s7319_s12 + $0x8] sm:$0xff] }
 0xc2b   :  { %v1954_v61 = vsel %vm1953_vm5, %v1949_v45, %v1934_v58  ;;  %v5797_v45 = vpack.c.bf16 %v2258_v26, %v2257_v25  ;;  %v2260_v58 = vld [vmem:[%s7319_s12 + $0x18] sm:$0xff] }
 0xc2c   :  { %5413 = vmatprep.mubr.msk.f32.mxu0 %vm193_vm1, %v1954_v61  ;;  %v5801_v46 = vpack.c.bf16 %v2260_v58, %v2259_v57  ;;  %v2261_v61 = vld [vmem:[%s7319_s12 + $0x20] sm:$0xff] }
 0xc2d   :  { %v1908_v63 = vpop.permute.xlu1 %1907  ;;  %5414 = vmatmul.mubr.msk.f32.vlgmr.msra.gmra.mrb[16].mxu0 %vm193_vm1, %v1955_v62  ;;  %v2262_v62 = vld [vmem:[%s7319_s12 + $0x28] sm:$0xff]  ;;  %5798 = vmatprep.subr.bf16.mxu0 %v5797_v45  ;;  %v4909_v58 = vld [vmem:[%s7323_s13] ss:$0 sm:$0xff] }
 0xc2e   :  { %v1906_v0 = vpop.permute.xlu0 %1905  ;;  %v1948_v3 = vsel %vm301_vm2, %v6582_v7, %v1908_v63  ;;  %5800 = vmatpush3.bf16.msra.mxu0 %v5797_v45  ;;  %v5805_v63 = vpack.c.bf16 %v2262_v62, %v2261_v61 }
 0xc2f   :  { %v1947_v4 = vsel %vm301_vm2, %v6584_v9, %v1906_v0  ;;  %v4897_v9 = vld [vmem:[%s7317_s7] ss:$0 sm:$0xff]  ;;  %5802 = vmatprep.subr.bf16.mxu0 %v5801_v46  ;;  %v2263_v0 = vld [vmem:[%s7319_s12 + $0x30] sm:$0xff] }
 0xc31   :  { %v1924_v5 = vpop.permute.xlu1 %1923 }
 0xc32   :  { %v1922_v1 = vpop.permute.xlu0 %1921  ;;  %v1952_v10 = vsel %vm478_vm4, %v1948_v3, %v1924_v5  ;;  %v2264_v5 = vld [vmem:[%s7319_s12 + $0x38] sm:$0xff]  ;;  %5804 = vmatpush3.bf16.msra.mxu0 %v5801_v46 }
 0xc33   :  { %v1951_v6 = vsel %vm478_vm4, %v1947_v4, %v1922_v1  ;;  %5806 = vmatprep.subr.bf16.mxu0 %v5805_v63  ;;  %v5809_v1 = vpack.c.bf16 %v2264_v5, %v2263_v0  ;;  %v2265_v4 = vld [vmem:[%s7319_s12 + $0x40] sm:$0xff] }
 0xc35   :  { %v1940_v2 = vpop.permute.xlu1 %1939 }
 0xc36   :  { %v1938_v8 = vpop.permute.xlu0 %1937  ;;  %v1957_v59 = vsel %vm1953_vm5, %v1952_v10, %v1940_v2  ;;  %v2266_v2 = vld [vmem:[%s7319_s12 + $0x48] sm:$0xff]  ;;  %5808 = vmatpush3.bf16.msra.mxu0 %v5805_v63 }
 0xc37   :  { %v1956_v11 = vsel %vm1953_vm5, %v1951_v6, %v1938_v8  ;;  %5810 = vmatprep.subr.bf16.mxu0 %v5809_v1  ;;  %v5813_v3 = vpack.c.bf16 %v2266_v2, %v2265_v4  ;;  %v2267_v6 = vld [vmem:[%s7319_s12 + $0x50] sm:$0xff]  ;;  %v2268_v8 = vld [vmem:[%s7319_s12 + $0x58] sm:$0xff] }
 0xc38   :  { %5416 = vmatprep.mubr.msk.f32.mxu0 %vm193_vm1, %v1956_v11  ;;  %v5817_v10 = vpack.c.bf16 %v2268_v8, %v2267_v6  ;;  %v2269_v11 = vld [vmem:[%s7319_s12 + $0x60] sm:$0xff] }
 0xc39   :  { %5417 = vmatmul.mubr.msk.f32.gmra.mrb[18].mxu0 %vm193_vm1, %v1957_v59  ;;  %v2270_v59 = vld [vmem:[%s7319_s12 + $0x68] sm:$0xff] }
 0xc3a   :  { %5812 = vmatpush3.bf16.msra.mxu0 %v5809_v1 }
 0xc3b   :  { %5814 = vmatprep.subr.bf16.mxu0 %v5813_v3 }
 0xc3e   :  { %5816 = vmatpush3.bf16.msra.mxu0 %v5813_v3 }
 0xc3f   :  { %5818 = vmatprep.subr.bf16.mxu0 %v5817_v10 }
 0xc42   :  { %5820 = vmatpush3.bf16.msra.mxu0 %v5817_v10 }
 0xd00   :  { %v5415_v12 = vpop.f32.mrb[16].mxu0 }
 0xd01   :  { %v2053_v13 = vadd.f32 %v5415_v12, %v4897_v9  ;;  %v2047_v7 = vpop.f32.mrb[17].mxu0 }
 0xd02   :  { %v2048_v14 = vadd.f32 %v4897_v9, %v2047_v7 }
 0xd03   :  { %v2067_v15 = vadd.f32 %v2053_v13, %v6483_v31 }
 0xd04   :  { %v2066_v16 = vadd.f32 %v2048_v14, %v6481_v29 }
 0xd05   :  { %v2075_v17 = vsel %vm193_vm1, %v2067_v15, 0.0 }
 0xd06   :  { %2076 = vadd.xlane.f32.xlu1 %v2075_v17  ;;  %v2072_v43 = vsel %vm193_vm1, %v2066_v16, 0.0 }
 0xd07   :  { %2073 = vadd.xlane.f32.xlu0 %v2072_v43 }
 0xd0c   :  { %v5418_v20 = vpop.f32.mrb[18].mxu0 }
 0xd0d   :  { %v2057_v18 = vpop.f32.mrb[19].mxu0  ;;  %v2063_v19 = vadd.f32 %v5418_v20, %v4897_v9 }
 0xd0e   :  { %v2058_v60 = vadd.f32 %v4897_v9, %v2057_v18  ;;  %v5821_v9 = vpack.c.bf16 %v2270_v59, %v2269_v11  ;;  %v4902_v18 = vld [vmem:[%s7320_s8] ss:$0 sm:$0xff] }
 0xd0f   :  { %v2069_v21 = vadd.f32 %v2063_v19, %v6487_v35 }
 0xd10   :  { %v2068_v49 = vadd.f32 %v2058_v60, %v6491_v36  ;;  %5822 = vmatprep.subr.bf16.mxu0 %v5821_v9 }
 0xd11   :  { %v2081_v31 = vsel %vm193_vm1, %v2069_v21, 0.0  ;;  %5824 = vmatpush3.bf16.msra.mxu0 %v5821_v9 }
 0xd12   :  { %v2078_v48 = vsel %vm193_vm1, %v2068_v49, 0.0 }
 0xd13   :  { %2079 = vadd.xlane.f32.xlu0 %v2078_v48 }
 0xd17   :  { %2082 = vadd.xlane.f32.xlu0 %v2081_v31 }
 0xd93   :  { %v2077_v29 = vpop.xlane.xlu1 %2076 }
 0xd94   :  { %v2086_v22 = vmul.f32 0.03125, %v2077_v29  ;;  %v2074_v23 = vpop.xlane.xlu0 %2073  ;;  %v4903_v29 = vld [vmem:[%s7321_s9] ss:$0 sm:$0xff] }
 0xd95   :  { %v2085_v24 = vmul.f32 0.03125, %v2074_v23 }
 0xd96   :  { %v6755_v27 = vsub.f32 %v2067_v15, %v2086_v22 }
 0xd97   :  { %v6757_v28 = vsub.f32 %v2066_v16, %v2085_v24 }
 0xd98   :  { %v2094_v30 = vmul.f32 %v6755_v27, %v6755_v27 }
 0xd99   :  { %v2093_v36 = vmul.f32 %v6757_v28, %v6757_v28 }
 0xd9a   :  { %v2100_v35 = vsel %vm193_vm1, %v2094_v30, 0.0 }
 0xd9b   :  { %2101 = vadd.xlane.f32.xlu0 %v2100_v35  ;;  %v2097_v32 = vsel %vm193_vm1, %v2093_v36, 0.0 }
 0xd9c   :  { %2098 = vadd.xlane.f32.xlu1 %v2097_v32 }
 0xda0   :  { %v2080_v33 = vpop.xlane.xlu0 %2079 }
 0xda1   :  { %v2087_v34 = vmul.f32 0.03125, %v2080_v33 }
 0xda3   :  { %v6765_v37 = vsub.f32 %v2068_v49, %v2087_v34 }
 0xda4   :  { %v2083_v38 = vpop.xlane.xlu0 %2082 }
 0xda5   :  { %v2088_v44 = vmul.f32 0.03125, %v2083_v38  ;;  %v2095_v39 = vmul.f32 %v6765_v37, %v6765_v37 }
 0xda7   :  { %v6769_v40 = vsub.f32 %v2069_v21, %v2088_v44  ;;  %v2103_v41 = vsel %vm193_vm1, %v2095_v39, 0.0  ;;  %v2271_v39 = vld [vmem:[%s7319_s12 + $0x70] sm:$0xff] }
 0xda8   :  { %2104 = vadd.xlane.f32.xlu1 %v2103_v41  ;;  %v2272_v41 = vld [vmem:[%s7319_s12 + $0x78] sm:$0xff] }
 0xda9   :  { %v2096_v42 = vmul.f32 %v6769_v40, %v6769_v40 }
 0xdab   :  { %v2106_v47 = vsel %vm193_vm1, %v2096_v42, 0.0 }
 0xdac   :  { %2107 = vadd.xlane.f32.xlu0 %v2106_v47 }
 0xe28   :  { %v2102_v12 = vpop.xlane.xlu0 %2101 }
 0xe29   :  { %v2110_v13 = vmul.f32 0.03125, %v2102_v12  ;;  %v2099_v7 = vpop.xlane.xlu1 %2098 }
 0xe2a   :  { %v2109_v14 = vmul.f32 0.03125, %v2099_v7 }
 0xe2b   :  { %v2114_v15 = vadd.f32 1e-05, %v2110_v13 }
 0xe2c   :  { %v2113_v16 = vadd.f32 1e-05, %v2109_v14 }
 0xe2d   :  { %6211 = vrsqrt.f32 %v2114_v15 }
 0xe2e   :  { %6213 = vrsqrt.f32 %v2113_v16 }
 0xe35   :  { %v2105_v17 = vpop.xlane.xlu1 %2104 }
 0xe36   :  { %v2111_v43 = vmul.f32 0.03125, %v2105_v17 }
 0xe37   :  { %v6212_v20 = vpop.eup %6211 }
 0xe38   :  { %v6214_v19 = vpop.eup %6213  ;;  %v2122_v60 = vmul.f32 %v6212_v20, %v6755_v27  ;;  %v2115_v49 = vadd.f32 1e-05, %v2111_v43 }
 0xe39   :  { %v2108_v48 = vpop.xlane.xlu0 %2107  ;;  %v2121_v21 = vmul.f32 %v6214_v19, %v6757_v28 }
 0xe3a   :  { %6215 = vrsqrt.f32 %v2115_v49  ;;  %v2112_v31 = vmul.f32 0.03125, %v2108_v48  ;;  %v2132_v22 = vmul.f32 %v4902_v18, %v2122_v60 }
 0xe3b   :  { %v2131_v23 = vmul.f32 %v4902_v18, %v2121_v21 }
 0xe3c   :  { %v2116_v24 = vadd.f32 1e-05, %v2112_v31  ;;  %v2142_v36 = vadd.f32 %v4903_v29, %v2132_v22 }
 0xe3d   :  { %v2141_v30 = vadd.f32 %v4903_v29, %v2131_v23 }
 0xe3e   :  { %6217 = vrsqrt.f32 %v2116_v24 }
 0xe3f   :  { %5427 = vmatprep.mubr.msk.f32.mxu1 %vm193_vm1, %v2141_v30 }
 0xe40   :  { %5428 = vmatmul.mubr.msk.f32.vlgmr.msra.gmra.mrb[24].mxu1 %vm193_vm1, %v2142_v36 }
 0xe44   :  { %v6216_v27 = vpop.eup %6215 }
 0xe45   :  { %v2123_v35 = vmul.f32 %v6216_v27, %v6765_v37  ;;  %v5825_v37 = vpack.c.bf16 %v2272_v41, %v2271_v39 }
 0xe47   :  { %v2133_v28 = vmul.f32 %v4902_v18, %v2123_v35  ;;  %5826 = vmatprep.subr.bf16.mxu0 %v5825_v37  ;;  %v4914_v35 = vld [vmem:[%s7355_s21 + $0x30] sm:$0xff] }
 0xe48   :  { %v6218_v32 = vpop.eup %6217  ;;  %5828 = vmatpush3.bf16.msra.mxu0 %v5825_v37 }
 0xe49   :  { %v2143_v33 = vadd.f32 %v4903_v29, %v2133_v28  ;;  %v2124_v34 = vmul.f32 %v6218_v32, %v6769_v40  ;;  %v4904_v40 = vld [vmem:[%s7322_s11] ss:$0 sm:$0xff]  ;;  %v4915_v28 = vld [vmem:[%s7355_s21 + $0x38] sm:$0xff] }
 0xe4a   :  { %v5833_v32 = vpack.c.bf16 %v4915_v28, %v4914_v35 }
 0xe4b   :  { %5430 = vmatprep.mubr.msk.f32.mxu1 %vm193_vm1, %v2143_v33  ;;  %v2134_v38 = vmul.f32 %v4902_v18, %v2124_v34 }
 0xe4d   :  { %v2144_v44 = vadd.f32 %v4903_v29, %v2134_v38 }
 0xe4f   :  { %5431 = vmatmul.mubr.msk.f32.gmra.mrb[26].mxu1 %vm193_vm1, %v2144_v44 }
 0xf13   :  { %v5429_v42 = vpop.f32.mrb[24].mxu1 }
 0xf14   :  { %v2240_v47 = vadd.f32 %v5429_v42, %v4904_v40  ;;  %v2234_v50 = vpop.f32.mrb[25].mxu1  ;;  %v4910_v42 = vld [vmem:[%s7324_s14] ss:$0 sm:$0xff] }
 0xf15   :  { %v2235_v51 = vadd.f32 %v4904_v40, %v2234_v50 }
 0xf16   :  { %v2254_v54 = vmax.f32 %v2240_v47, 0.0 }
 0xf17   :  { %v2253_v52 = vmax.f32 %v2235_v51, 0.0 }
 0xf19   :  { %5465 = vmatprep.mubr.f32.mxu0 %v2253_v52 }
 0xf1a   :  { %5466 = vmatmul.mubr.f32.vlgmr.msra.gmra.mrb[20].mxu0 %v2254_v54 }
 0xf22   :  { %v5432_v55 = vpop.f32.mrb[26].mxu1 }
 0xf23   :  { %v2250_v56 = vadd.f32 %v5432_v55, %v4904_v40  ;;  %v2244_v25 = vpop.f32.mrb[27].mxu1 }
 0xf24   :  { %v2245_v26 = vadd.f32 %v4904_v40, %v2244_v25  ;;  %v4911_v25 = vld [vmem:[%s7325_s15] ss:$0 sm:$0xff] }
 0xf25   :  { %v2256_v45 = vmax.f32 %v2250_v56, 0.0 }
 0xf26   :  { %v2255_v57 = vmax.f32 %v2245_v26, 0.0 }
 0xf28   :  { %5468 = vmatprep.mubr.f32.mxu0 %v2255_v57 }
 0xf29   :  { %5469 = vmatmul.mubr.f32.gmra.mrb[22].mxu0 %v2256_v45 }
 0xfed   :  { %v5467_v46 = vpop.f32.mrb[20].mxu0 }
 0xfee   :  { %v2352_v61 = vadd.f32 %v5467_v46, %v4909_v58  ;;  %v2346_v62 = vpop.f32.mrb[21].mxu0 }
 0xfef   :  { %v2347_v63 = vadd.f32 %v4909_v58, %v2346_v62 }
 0xff0   :  { %v2366_v0 = vadd.f32 %v2352_v61, %v2142_v36  ;;  %v4913_v36 = vld [vmem:[%s7355_s21 + $0x28] sm:$0xff] }
 0xff1   :  { %v2365_v5 = vadd.f32 %v2347_v63, %v2141_v30  ;;  %v4912_v30 = vld [vmem:[%s7355_s21 + $0x20] sm:$0xff] }
 0xff2   :  { %v2374_v1 = vsel %vm193_vm1, %v2366_v0, 0.0  ;;  %v5829_v27 = vpack.c.bf16 %v4913_v36, %v4912_v30 }
 0xff3   :  { %2375 = vadd.xlane.f32.xlu0 %v2374_v1  ;;  %v2371_v4 = vsel %vm193_vm1, %v2365_v5, 0.0 }
 0xff4   :  { %2372 = vadd.xlane.f32.xlu1 %v2371_v4  ;;  %5830 = vmatprep.subr.bf16.mxu1 %v5829_v27 }
 0xff5   :  { %5832 = vmatpush3.bf16.msra.mxu1 %v5829_v27 }
 0xff6   :  { %5834 = vmatprep.subr.bf16.mxu1 %v5833_v32 }
 0xff9   :  { %5836 = vmatpush3.bf16.msra.mxu1 %v5833_v32 }
 0xffc   :  { %v5470_v2 = vpop.f32.mrb[22].mxu0 }
 0xffd   :  { %v2362_v3 = vadd.f32 %v5470_v2, %v4909_v58  ;;  %v2356_v6 = vpop.f32.mrb[23].mxu0 }
 0xffe   :  { %v2357_v8 = vadd.f32 %v4909_v58, %v2356_v6 }
 0xfff   :  { %v2368_v10 = vadd.f32 %v2362_v3, %v2144_v44  ;;  %v4917_v3 = vld [vmem:[%s7315_s5 + $0x1] ss:$0 sm:$0xff]  ;;  %s7358_s5 = smov 80  }
0x1000   :  { %v2367_v11 = vadd.f32 %v2357_v8, %v2143_v33 }
0x1001   :  { %v2380_v59 = vsel %vm193_vm1, %v2368_v10, 0.0 }
0x1002   :  { %2381 = vadd.xlane.f32.xlu0 %v2380_v59  ;;  %v2377_v9 = vsel %vm193_vm1, %v2367_v11, 0.0 }
0x1003   :  { %2378 = vadd.xlane.f32.xlu1 %v2377_v9 }
0x1080   :  { %v2376_v12 = vpop.xlane.xlu0 %2375 }
0x1081   :  { %v2384_v13 = vmul.f32 0.03125, %v2376_v12  ;;  %v2373_v7 = vpop.xlane.xlu1 %2372 }
0x1082   :  { %v2383_v14 = vmul.f32 0.03125, %v2373_v7 }
0x1083   :  { %v2388_v15 = vsub.f32 %v2366_v0, %v2384_v13 }
0x1084   :  { %v2387_v16 = vsub.f32 %v2365_v5, %v2383_v14 }
0x1085   :  { %v2392_v17 = vmul.f32 %v2388_v15, %v2388_v15 }
0x1086   :  { %v2391_v43 = vmul.f32 %v2387_v16, %v2387_v16 }
0x1087   :  { %v2398_v20 = vsel %vm193_vm1, %v2392_v17, 0.0 }
0x1088   :  { %2399 = vadd.xlane.f32.xlu0 %v2398_v20  ;;  %v2395_v18 = vsel %vm193_vm1, %v2391_v43, 0.0 }
0x1089   :  { %2396 = vadd.xlane.f32.xlu1 %v2395_v18 }
0x108f   :  { %v2382_v19 = vpop.xlane.xlu0 %2381 }
0x1090   :  { %v2386_v60 = vmul.f32 0.03125, %v2382_v19  ;;  %v2379_v49 = vpop.xlane.xlu1 %2378 }
0x1091   :  { %v2385_v48 = vmul.f32 0.03125, %v2379_v49 }
0x1092   :  { %v2390_v21 = vsub.f32 %v2368_v10, %v2386_v60 }
0x1093   :  { %v2389_v31 = vsub.f32 %v2367_v11, %v2385_v48 }
0x1094   :  { %v2394_v29 = vmul.f32 %v2390_v21, %v2390_v21 }
0x1095   :  { %v2393_v22 = vmul.f32 %v2389_v31, %v2389_v31 }
0x1096   :  { %v2404_v23 = vsel %vm193_vm1, %v2394_v29, 0.0 }
0x1097   :  { %2405 = vadd.xlane.f32.xlu0 %v2404_v23  ;;  %v2401_v24 = vsel %vm193_vm1, %v2393_v22, 0.0 }
0x1098   :  { %2402 = vadd.xlane.f32.xlu1 %v2401_v24 }
0x1115   :  { %v2400_v33 = vpop.xlane.xlu0 %2399 }
0x1116   :  { %v2408_v34 = vmul.f32 0.03125, %v2400_v33  ;;  %v2397_v38 = vpop.xlane.xlu1 %2396 }
0x1117   :  { %v2407_v44 = vmul.f32 0.03125, %v2397_v38 }
0x1118   :  { %v2412_v39 = vadd.f32 1e-05, %v2408_v34 }
0x1119   :  { %v2411_v41 = vadd.f32 1e-05, %v2407_v44 }
0x111a   :  { %6219 = vrsqrt.f32 %v2412_v39 }
0x111b   :  { %6221 = vrsqrt.f32 %v2411_v41 }
0x1124   :  { %v6220_v37 = vpop.eup %6219  ;;  %v2406_v40 = vpop.xlane.xlu0 %2405 }
0x1125   :  { %v6222_v47 = vpop.eup %6221  ;;  %v2420_v50 = vmul.f32 %v6220_v37, %v2388_v15  ;;  %v2410_v51 = vmul.f32 0.03125, %v2406_v40  ;;  %v2403_v52 = vpop.xlane.xlu1 %2402 }
0x1126   :  { %v2409_v54 = vmul.f32 0.03125, %v2403_v52  ;;  %v2419_v55 = vmul.f32 %v6222_v47, %v2387_v16 }
0x1127   :  { %v2414_v56 = vadd.f32 1e-05, %v2410_v51  ;;  %v2430_v26 = vmul.f32 %v4910_v42, %v2420_v50 }
0x1128   :  { %v2413_v57 = vadd.f32 1e-05, %v2409_v54  ;;  %v2429_v45 = vmul.f32 %v4910_v42, %v2419_v55 }
0x1129   :  { %6223 = vrsqrt.f32 %v2414_v56  ;;  %v6883_v46 = vadd.f32 %v4911_v25, %v2430_v26 }
0x112a   :  { %6225 = vrsqrt.f32 %v2413_v57  ;;  %v6881_v58 = vadd.f32 %v4911_v25, %v2429_v45 }
0x112c   :  { %5479 = vmatprep.mubr.msk.f32.mxu1 %vm193_vm1, %v6881_v58 }
0x112d   :  { %5480 = vmatmul.mubr.msk.f32.vlgmr.msra.gmra.mrb[28].mxu1 %vm193_vm1, %v6883_v46 }
0x1133   :  { %v6224_v61 = vpop.eup %6223 }
0x1134   :  { %v6226_v62 = vpop.eup %6225  ;;  %v2422_v63 = vmul.f32 %v6224_v61, %v2390_v21 }
0x1135   :  { %v2421_v0 = vmul.f32 %v6226_v62, %v2389_v31 }
0x1136   :  { %v2432_v5 = vmul.f32 %v4910_v42, %v2422_v63 }
0x1137   :  { %v2431_v1 = vmul.f32 %v4910_v42, %v2421_v0 }
0x1138   :  { %v6891_v2 = vadd.f32 %v4911_v25, %v2432_v5 }
0x1139   :  { %v6889_v4 = vadd.f32 %v4911_v25, %v2431_v1 }
0x113b   :  { %5482 = vmatprep.mubr.msk.f32.mxu1 %vm193_vm1, %v6889_v4 }
0x113c   :  { %5483 = vmatmul.mubr.msk.f32.gmra.mrb[30].mxu1 %vm193_vm1, %v6891_v2 }
0x1200   :  { %v5481_v6 = vpop.f32.mrb[28].mxu1 }
0x1201   :  { %v2540_v8 = vadd.f32 %v5481_v6, %v4917_v3  ;;  %v2534_v10 = vpop.f32.mrb[29].mxu1 }
0x1202   :  { %v2535_v11 = vadd.f32 %v4917_v3, %v2534_v10 }
0x1203   :  { %v6916_v18 = vmul.f32 0.35355338, %v2540_v8 }
0x1204   :  { %v6900_v59 = vpack.i.bf16 %v2540_v8, %v2535_v11  ;;  %v6902_v9 = vmul.f32 0.35355338, %v2535_v11 }
0x1206   :  { %6068 = vrot.lane.b32.xlu1 %v6900_v59, %s6311_s25  ;;  %5489 = vmatprep.mubr.msk.f32.mxu1 %vm301_vm2, %v6902_v9 }
0x120f   :  { %v5484_v12 = vpop.f32.mrb[30].mxu1 }
0x1210   :  { %v2550_v13 = vadd.f32 %v5484_v12, %v4917_v3  ;;  %v2544_v7 = vpop.f32.mrb[31].mxu1 }
0x1211   :  { %v2545_v14 = vadd.f32 %v4917_v3, %v2544_v7 }
0x1212   :  { %v6928_v31 = vmul.f32 0.35355338, %v2550_v13 }
0x1213   :  { %v6908_v15 = vpack.i.bf16 %v2550_v13, %v2545_v14  ;;  %v6918_v19 = vmul.f32 0.35355338, %v2545_v14 }
0x1215   :  { %6073 = vrot.lane.b32.xlu0 %v6908_v15, %s6311_s25  ;;  %s7359_s25 = smov 112  }
0x1278   :  { %v6069_v16 = vpop.permute.xlu1 %6068 }
0x1279   :  { %v6071_v17 = vunpack.i.h.bf16 %v6069_v16  ;;  %v6070_v43 = vunpack.i.l.bf16 %v6069_v16 }
0x127b   :  { %v5837_v20 = vpack.c.bf16 %v6071_v17, %v6070_v43 }
0x127d   :  { %5839 = vmatprep.subr.msk.bf16.mxu1 %vm6518_vm3, %v5837_v20 }
0x127e   :  { %5842 = vmatpush3.bf16.xpose.msk.msra.mxu1 %vm6518_vm3, %v5837_v20 }
0x1285   :  { %5490 = vmatmul.mubr.msk.f32.vlgmr.msra.gmra.mrb[32].mxu1 %vm301_vm2, %v6916_v18 }
0x1286   :  { %5496 = vmatprep.mubr.msk.f32.mxu1 %vm301_vm2, %v6918_v19 }
0x1287   :  { %v6074_v60 = vpop.permute.xlu0 %6073 }
0x1288   :  { %v6076_v49 = vunpack.i.h.bf16 %v6074_v60  ;;  %v6075_v48 = vunpack.i.l.bf16 %v6074_v60 }
0x128a   :  { %v5843_v21 = vpack.c.bf16 %v6076_v49, %v6075_v48 }
0x128c   :  { %5845 = vmatprep.subr.msk.bf16.mxu1 %vm6518_vm3, %v5843_v21 }
0x128d   :  { %5848 = vmatpush3.bf16.xpose.msk.msra.mxu1 %vm6518_vm3, %v5843_v21 }
0x1294   :  { %5497 = vmatmul.mubr.msk.f32.vlgmr.msra.gmra.mrb[34].mxu1 %vm301_vm2, %v6928_v31 }
0x1358   :  { %v5491_v29 = vpop.f32.mrb[32].mxu1 }
0x1359   :  { %v2639_v22 = vpop.f32.mrb[33].mxu1  ;;  %v2742_v23 = vsel %vm478_vm4, %v5491_v29, -inf }
0x135a   :  { %2743 = vmax.xlane.f32.xlu0 %v2742_v23  ;;  %v2739_v24 = vsel %vm478_vm4, %v2639_v22, -inf }
0x135b   :  { %2740 = vmax.xlane.f32.xlu1 %v2739_v24 }
0x1367   :  { %v5498_v30 = vpop.f32.mrb[34].mxu1 }
0x1368   :  { %v2730_v36 = vpop.f32.mrb[35].mxu1  ;;  %v2748_v27 = vsel %vm478_vm4, %v5498_v30, -inf }
0x1369   :  { %2749 = vmax.xlane.f32.xlu0 %v2748_v27  ;;  %v2745_v35 = vsel %vm478_vm4, %v2730_v36, -inf }
0x136c   :  { %6078 = vrot.lane.b32.xlu1 %v6900_v59, %s6312_s26 }
0x1390   :  { %2746 = vmax.xlane.f32.xlu1 %v2745_v35 }
0x13a1   :  { %6088 = vrot.lane.b32.xlu1 %v6900_v59, %s6313_s28 }
0x13a5   :  { %6093 = vrot.lane.b32.xlu1 %v6908_v15, %s6313_s28  ;;  %s7361_s28 = smov 72  }
0x13e7   :  { %v2744_v28 = vpop.xlane.xlu0 %2743 }
0x13e8   :  { %v2752_v32 = vsub.f32 %v5491_v29, %v2744_v28  ;;  %v2741_v33 = vpop.xlane.xlu1 %2740 }
0x13e9   :  { %v2751_v34 = vsub.f32 %v2639_v22, %v2741_v33 }
0x13ea   :  { %v2757_v38 = vmul.f32 1.442695, %v2752_v32 }
0x13eb   :  { %v2755_v44 = vmul.f32 1.442695, %v2751_v34 }
0x13ec   :  { %6227 = vpow2.f32 %v2757_v38  ;;  %v6079_v39 = vpop.permute.xlu1 %6078 }
0x13ed   :  { %6229 = vpow2.f32 %v2755_v44  ;;  %v6081_v41 = vunpack.i.h.bf16 %v6079_v39  ;;  %v6080_v37 = vunpack.i.l.bf16 %v6079_v39 }
0x13ef   :  { %v5849_v40 = vpack.c.bf16 %v6081_v41, %v6080_v37 }
0x13f1   :  { %5850 = vmatprep.subr.bf16.mxu1 %v5849_v40 }
0x13f2   :  { %5852 = vmatpush3.bf16.msra.mxu1 %v5849_v40 }
0x13f6   :  { %v6228_v42 = vpop.eup %6227  ;;  %v2750_v52 = vpop.xlane.xlu0 %2749 }
0x13f7   :  { %v6230_v47 = vpop.eup %6229  ;;  %v2766_v50 = vsel %vm478_vm4, %v6228_v42, 0.0  ;;  %v2754_v54 = vsub.f32 %v5498_v30, %v2750_v52 }
0x13f8   :  { %2767 = vadd.xlane.f32.xlu0 %v2766_v50  ;;  %v2763_v51 = vsel %vm478_vm4, %v6230_v47, 0.0 }
0x13f9   :  { %2764 = vadd.xlane.f32.xlu1 %v2763_v51  ;;  %v2761_v55 = vmul.f32 1.442695, %v2754_v54 }
0x13fb   :  { %6231 = vpow2.f32 %v2761_v55 }
0x1405   :  { %v6232_v63 = vpop.eup %6231 }
0x1406   :  { %v2772_v5 = vsel %vm478_vm4, %v6232_v63, 0.0 }
0x140a   :  { %2959 = vrot.lane.b32.xlu1 %v6916_v18, %s6314_s30 }
0x140e   :  { %6083 = vrot.lane.b32.xlu0 %v6908_v15, %s6312_s26  ;;  %s7360_s26 = smov 48  }
0x141d   :  { %v2747_v56 = vpop.xlane.xlu1 %2746 }
0x141e   :  { %v2753_v25 = vsub.f32 %v2730_v36, %v2747_v56 }
0x1420   :  { %v2759_v26 = vmul.f32 1.442695, %v2753_v25 }
0x1421   :  { %v6089_v57 = vpop.permute.xlu1 %6088 }
0x1422   :  { %6233 = vpow2.f32 %v2759_v26  ;;  %v6091_v45 = vunpack.i.h.bf16 %v6089_v57  ;;  %v6090_v61 = vunpack.i.l.bf16 %v6089_v57 }
0x1424   :  { %v5857_v62 = vpack.c.bf16 %v6091_v45, %v6090_v61 }
0x1425   :  { %v6094_v3 = vpop.permute.xlu1 %6093 }
0x1426   :  { %5859 = vmatprep.subr.msk.bf16.mxu0 %vm6518_vm3, %v5857_v62  ;;  %v6096_v16 = vunpack.i.h.bf16 %v6094_v3  ;;  %v6095_v17 = vunpack.i.l.bf16 %v6094_v3 }
0x1427   :  { %5862 = vmatpush3.bf16.xpose.msk.msra.mxu0 %vm6518_vm3, %v5857_v62 }
0x1428   :  { %v5863_v60 = vpack.c.bf16 %v6096_v16, %v6095_v17 }
0x142c   :  { %v6234_v0 = vpop.eup %6233 }
0x142d   :  { %2773 = vadd.xlane.f32.xlu0 %v2772_v5  ;;  %v2769_v1 = vsel %vm478_vm4, %v6234_v0, 0.0 }
0x142e   :  { %2770 = vadd.xlane.f32.xlu1 %v2769_v1 }
0x143f   :  { %3050 = vrot.lane.b32.xlu1 %v6928_v31, %s6314_s30 }
0x1443   :  { %2957 = vrot.lane.b32.xlu0 %v6902_v9, %s6314_s30 }
0x1447   :  { %3048 = vrot.lane.b32.xlu0 %v6918_v19, %s6314_s30  ;;  %s7362_s30 = smov 104  }
0x1485   :  { %v2768_v6 = vpop.xlane.xlu0 %2767 }
0x1486   :  { %6235 = vrcp.f32 %v2768_v6  ;;  %v2765_v8 = vpop.xlane.xlu1 %2764 }
0x1487   :  { %6237 = vrcp.f32 %v2765_v8 }
0x1489   :  { %v6084_v10 = vpop.permute.xlu0 %6083 }
0x148a   :  { %v6086_v11 = vunpack.i.h.bf16 %v6084_v10  ;;  %v6085_v12 = vunpack.i.l.bf16 %v6084_v10  ;;  %v2960_v49 = vpop.permute.xlu1 %2959 }
0x148c   :  { %v5853_v13 = vpack.c.bf16 %v6086_v11, %v6085_v12 }
0x148e   :  { %5854 = vmatprep.subr.bf16.mxu1 %v5853_v13 }
0x1490   :  { %v6236_v7 = vpop.eup %6235 }
0x1491   :  { %v6238_v14 = vpop.eup %6237  ;;  %v2780_v20 = vmul.f32 %v6236_v7, %v6228_v42 }
0x1492   :  { %v2779_v43 = vmul.f32 %v6238_v14, %v6230_v47 }
0x1494   :  { %5503 = vmatprep.mubr.msk.f32.mxu1 %vm478_vm4, %v2779_v43 }
0x1495   :  { %5504 = vmatmul.mubr.msk.f32.vlgmr.msra.gmra.mrb[36].mxu1 %vm478_vm4, %v2780_v20 }
0x1496   :  { %5856 = vmatpush3.bf16.msra.mxu1 %v5853_v13 }
0x1497   :  { %5865 = vmatprep.subr.msk.bf16.mxu1 %vm6518_vm3, %v5863_v60 }
0x14ba   :  { %v2774_v48 = vpop.xlane.xlu0 %2773 }
0x14bb   :  { %6239 = vrcp.f32 %v2774_v48  ;;  %v2771_v21 = vpop.xlane.xlu1 %2770 }
0x14bc   :  { %6241 = vrcp.f32 %v2771_v21 }
0x14be   :  { %v2958_v29 = vpop.permute.xlu0 %2957 }
0x14bf   :  { %5517 = vmatprep.mubr.msk.f32.mxu0 %vm301_vm2, %v2958_v29  ;;  %v3051_v27 = vpop.permute.xlu1 %3050 }
0x14c0   :  { %5518 = vmatmul.mubr.msk.f32.vlgmr.msra.gmra.mrb[24].mxu0 %vm301_vm2, %v2960_v49 }
0x14c2   :  { %v3049_v36 = vpop.permute.xlu0 %3048 }
0x14c5   :  { %v6240_v22 = vpop.eup %6239 }
0x14c6   :  { %v6242_v23 = vpop.eup %6241  ;;  %v2782_v30 = vmul.f32 %v6240_v22, %v6232_v63 }
0x14c7   :  { %v2781_v24 = vmul.f32 %v6242_v23, %v6234_v0 }
0x14c9   :  { %5510 = vmatprep.mubr.msk.f32.mxu1 %vm478_vm4, %v2781_v24 }
0x14ca   :  { %5511 = vmatmul.mubr.msk.f32.vlgmr.msra.gmra.mrb[38].mxu1 %vm478_vm4, %v2782_v30 }
0x14cb   :  { %5868 = vmatpush3.bf16.xpose.msk.msra.mxu1 %vm6518_vm3, %v5863_v60  ;;  %5524 = vmatprep.mubr.msk.f32.mxu1 %vm301_vm2, %v3049_v36 }
0x14d2   :  { %5525 = vmatmul.mubr.msk.f32.vlgmr.msra.gmra.mrb[40].mxu1 %vm301_vm2, %v3051_v27 }
0x1568   :  { %v6972_v35 = vpop.f32.mrb[36].mxu1 }
0x1569   :  { %v6974_v28 = vpop.f32.mrb[37].mxu1 }
0x1593   :  { %v5519_v32 = vpop.f32.mrb[24].mxu0 }
0x1594   :  { %v3039_v33 = vpop.f32.mrb[25].mxu0  ;;  %v3142_v34 = vsel %vm478_vm4, %v5519_v32, -inf }
0x1595   :  { %3143 = vmax.xlane.f32.xlu1 %v3142_v34  ;;  %v3139_v38 = vsel %vm478_vm4, %v3039_v33, -inf }
0x1596   :  { %3140 = vmax.xlane.f32.xlu0 %v3139_v38 }
0x159d   :  { %v6978_v44 = vpop.f32.mrb[38].mxu1 }
0x159e   :  { %v6980_v39 = vpop.f32.mrb[39].mxu1 }
0x15a5   :  { %v5526_v41 = vpop.f32.mrb[40].mxu1 }
0x15a6   :  { %v3130_v37 = vpop.f32.mrb[41].mxu1  ;;  %v3148_v42 = vsel %vm478_vm4, %v5526_v41, -inf }
0x15a7   :  { %v3145_v40 = vsel %vm478_vm4, %v3130_v37, -inf }
0x15a8   :  { %3146 = vmax.xlane.f32.xlu0 %v3145_v40 }
0x15ac   :  { %3149 = vmax.xlane.f32.xlu0 %v3148_v42 }
0x1622   :  { %v3144_v47 = vpop.xlane.xlu1 %3143 }
0x1623   :  { %v3152_v50 = vsub.f32 %v5519_v32, %v3144_v47  ;;  %v3141_v51 = vpop.xlane.xlu0 %3140 }
0x1624   :  { %v3151_v52 = vsub.f32 %v3039_v33, %v3141_v51 }
0x1625   :  { %v3157_v54 = vmul.f32 1.442695, %v3152_v50 }
0x1626   :  { %v3155_v55 = vmul.f32 1.442695, %v3151_v52 }
0x1627   :  { %6243 = vpow2.f32 %v3157_v54 }
0x1628   :  { %6245 = vpow2.f32 %v3155_v55 }
0x1631   :  { %v6244_v56 = vpop.eup %6243 }
0x1632   :  { %v6246_v25 = vpop.eup %6245  ;;  %v3166_v26 = vsel %vm478_vm4, %v6244_v56, 0.0 }
0x1633   :  { %3167 = vadd.xlane.f32.xlu0 %v3166_v26  ;;  %v3163_v57 = vsel %vm478_vm4, %v6246_v25, 0.0 }
0x1634   :  { %3164 = vadd.xlane.f32.xlu1 %v3163_v57 }
0x1635   :  { %v3147_v45 = vpop.xlane.xlu0 %3146 }
0x1636   :  { %v3153_v0 = vsub.f32 %v3130_v37, %v3147_v45 }
0x1638   :  { %v3159_v5 = vmul.f32 1.442695, %v3153_v0 }
0x1639   :  { %v3150_v61 = vpop.xlane.xlu0 %3149 }
0x163a   :  { %v3154_v62 = vsub.f32 %v5526_v41, %v3150_v61 }
0x163c   :  { %v3161_v63 = vmul.f32 1.442695, %v3154_v62 }
0x163e   :  { %6247 = vpow2.f32 %v3161_v63 }
0x163f   :  { %6249 = vpow2.f32 %v3159_v5 }
0x1645   :  { %6098 = vrot.lane.b32.xlu1 %v6900_v59, %s6315_s2 }
0x1648   :  { %v6248_v1 = vpop.eup %6247 }
0x1649   :  { %6103 = vrot.lane.b32.xlu0 %v6908_v15, %s6315_s2  ;;  %6108 = vrot.lane.b32.xlu1 %v6900_v59, %s7358_s5  ;;  %v3172_v3 = vsel %vm478_vm4, %v6248_v1, 0.0  ;;  %v6250_v6 = vpop.eup %6249  ;;  %s7363_s2 = smov 40  }
0x164a   :  { %v3169_v8 = vsel %vm478_vm4, %v6250_v6, 0.0 }
0x164d   :  { %6113 = vrot.lane.b32.xlu1 %v6908_v15, %s7358_s5 }
0x1651   :  { %3359 = vrot.lane.b32.xlu1 %v6916_v18, %s7359_s25 }
0x1668   :  { %3173 = vadd.xlane.f32.xlu0 %v3172_v3 }
0x1675   :  { %3170 = vadd.xlane.f32.xlu1 %v3169_v8 }
0x167e   :  { %3357 = vrot.lane.b32.xlu0 %v6902_v9, %s7359_s25 }
0x1682   :  { %3448 = vrot.lane.b32.xlu0 %v6918_v19, %s7359_s25 }
0x1686   :  { %3450 = vrot.lane.b32.xlu1 %v6928_v31, %s7359_s25 }
0x16c0   :  { %v3168_v10 = vpop.xlane.xlu0 %3167 }
0x16c1   :  { %6251 = vrcp.f32 %v3168_v10  ;;  %v3165_v11 = vpop.xlane.xlu1 %3164 }
0x16c2   :  { %6253 = vrcp.f32 %v3165_v11 }
0x16c4   :  { %v6104_v12 = vpop.permute.xlu0 %6103 }
0x16c5   :  { %v6106_v13 = vunpack.i.h.bf16 %v6104_v12  ;;  %v6105_v7 = vunpack.i.l.bf16 %v6104_v12  ;;  %v6099_v14 = vpop.permute.xlu1 %6098 }
0x16c6   :  { %v6101_v16 = vunpack.i.h.bf16 %v6099_v14  ;;  %v6100_v17 = vunpack.i.l.bf16 %v6099_v14 }
0x16c7   :  { %v5873_v43 = vpack.c.bf16 %v6106_v13, %v6105_v7 }
0x16c8   :  { %v5869_v20 = vpack.c.bf16 %v6101_v16, %v6100_v17 }
0x16c9   :  { %v6109_v60 = vpop.permute.xlu1 %6108  ;;  %5874 = vmatprep.subr.bf16.mxu1 %v5873_v43 }
0x16ca   :  { %v6111_v49 = vunpack.i.h.bf16 %v6109_v60  ;;  %v6110_v48 = vunpack.i.l.bf16 %v6109_v60  ;;  %5870 = vmatprep.subr.bf16.mxu0 %v5869_v20  ;;  %5876 = vmatpush3.bf16.msra.mxu1 %v5873_v43 }
0x16cb   :  { %v6252_v21 = vpop.eup %6251  ;;  %5872 = vmatpush3.bf16.msra.mxu0 %v5869_v20 }
0x16cc   :  { %v6254_v29 = vpop.eup %6253  ;;  %v5877_v22 = vpack.c.bf16 %v6111_v49, %v6110_v48  ;;  %v3180_v30 = vmul.f32 %v6252_v21, %v6244_v56 }
0x16cd   :  { %v6114_v23 = vpop.permute.xlu1 %6113  ;;  %v3179_v24 = vmul.f32 %v6254_v29, %v6246_v25 }
0x16ce   :  { %v6116_v36 = vunpack.i.h.bf16 %v6114_v23  ;;  %v6115_v27 = vunpack.i.l.bf16 %v6114_v23  ;;  %5879 = vmatprep.subr.msk.bf16.mxu0 %vm6518_vm3, %v5877_v22 }
0x16cf   :  { %5531 = vmatprep.mubr.msk.f32.mxu0 %vm478_vm4, %v3179_v24 }
0x16d0   :  { %v5883_v32 = vpack.c.bf16 %v6116_v36, %v6115_v27  ;;  %5532 = vmatmul.mubr.msk.f32.vlgmr.msra.gmra.mrb[26].mxu0 %vm478_vm4, %v3180_v30 }
0x16d1   :  { %v3360_v38 = vpop.permute.xlu1 %3359 }
0x16d2   :  { %5885 = vmatprep.subr.msk.bf16.mxu1 %vm6518_vm3, %v5883_v32 }
0x16d4   :  { %5882 = vmatpush3.bf16.xpose.msk.msra.mxu0 %vm6518_vm3, %v5877_v22 }
0x16f5   :  { %v3174_v33 = vpop.xlane.xlu0 %3173 }
0x16f6   :  { %6255 = vrcp.f32 %v3174_v33 }
0x16f9   :  { %v3358_v34 = vpop.permute.xlu0 %3357 }
0x16fa   :  { %5545 = vmatprep.mubr.msk.f32.mxu0 %vm301_vm2, %v3358_v34 }
0x16fb   :  { %5546 = vmatmul.mubr.msk.f32.vlgmr.msra.gmra.mrb[28].mxu0 %vm301_vm2, %v3360_v38 }
0x16fd   :  { %v3449_v50 = vpop.permute.xlu0 %3448 }
0x1700   :  { %v6256_v37 = vpop.eup %6255 }
0x1701   :  { %v3182_v47 = vmul.f32 %v6256_v37, %v6248_v1 }
0x1702   :  { %v3171_v41 = vpop.xlane.xlu1 %3170 }
0x1703   :  { %6257 = vrcp.f32 %v3171_v41 }
0x1706   :  { %v3451_v51 = vpop.permute.xlu1 %3450 }
0x170d   :  { %v6258_v40 = vpop.eup %6257 }
0x170e   :  { %v3181_v42 = vmul.f32 %v6258_v40, %v6250_v6 }
0x1710   :  { %5538 = vmatprep.mubr.msk.f32.mxu1 %vm478_vm4, %v3181_v42 }
0x1711   :  { %5539 = vmatmul.mubr.msk.f32.vlgmr.msra.gmra.mrb[42].mxu1 %vm478_vm4, %v3182_v47 }
0x1712   :  { %5888 = vmatpush3.bf16.xpose.msk.msra.mxu1 %vm6518_vm3, %v5883_v32  ;;  %5552 = vmatprep.mubr.msk.f32.mxu1 %vm301_vm2, %v3449_v50 }
0x1719   :  { %5553 = vmatmul.mubr.msk.f32.vlgmr.msra.gmra.mrb[44].mxu1 %vm301_vm2, %v3451_v51 }
0x17a3   :  { %v7020_v52 = vpop.f32.mrb[26].mxu0 }
0x17a4   :  { %v7022_v54 = vpop.f32.mrb[27].mxu0 }
0x17ce   :  { %v5547_v55 = vpop.f32.mrb[28].mxu0 }
0x17cf   :  { %v3439_v56 = vpop.f32.mrb[29].mxu0  ;;  %v3542_v25 = vsel %vm478_vm4, %v5547_v55, -inf }
0x17d0   :  { %3543 = vmax.xlane.f32.xlu1 %v3542_v25  ;;  %v3539_v26 = vsel %vm478_vm4, %v3439_v56, -inf }
0x17d1   :  { %3540 = vmax.xlane.f32.xlu0 %v3539_v26 }
0x17e4   :  { %v7026_v57 = vpop.f32.mrb[42].mxu1 }
0x17e5   :  { %v7028_v45 = vpop.f32.mrb[43].mxu1 }
0x17ec   :  { %v5554_v61 = vpop.f32.mrb[44].mxu1 }
0x17ed   :  { %v3530_v62 = vpop.f32.mrb[45].mxu1  ;;  %v3548_v0 = vsel %vm478_vm4, %v5554_v61, -inf }
0x17ee   :  { %v3545_v63 = vsel %vm478_vm4, %v3530_v62, -inf }
0x17ef   :  { %3546 = vmax.xlane.f32.xlu0 %v3545_v63 }
0x17f3   :  { %3549 = vmax.xlane.f32.xlu0 %v3548_v0 }
0x185d   :  { %v3544_v5 = vpop.xlane.xlu1 %3543 }
0x185e   :  { %v3552_v1 = vsub.f32 %v5547_v55, %v3544_v5  ;;  %v3541_v3 = vpop.xlane.xlu0 %3540 }
0x185f   :  { %v3551_v6 = vsub.f32 %v3439_v56, %v3541_v3 }
0x1860   :  { %v3557_v8 = vmul.f32 1.442695, %v3552_v1 }
0x1861   :  { %v3555_v10 = vmul.f32 1.442695, %v3551_v6 }
0x1862   :  { %6259 = vpow2.f32 %v3557_v8 }
0x1863   :  { %6261 = vpow2.f32 %v3555_v10 }
0x186c   :  { %v6260_v11 = vpop.eup %6259 }
0x186d   :  { %v6262_v12 = vpop.eup %6261  ;;  %v3566_v13 = vsel %vm478_vm4, %v6260_v11, 0.0 }
0x186e   :  { %3567 = vadd.xlane.f32.xlu0 %v3566_v13  ;;  %v3563_v7 = vsel %vm478_vm4, %v6262_v12, 0.0 }
0x186f   :  { %3564 = vadd.xlane.f32.xlu1 %v3563_v7 }
0x187c   :  { %v3547_v14 = vpop.xlane.xlu0 %3546 }
0x187d   :  { %v3553_v20 = vsub.f32 %v3530_v62, %v3547_v14 }
0x187f   :  { %v3559_v60 = vmul.f32 1.442695, %v3553_v20 }
0x1880   :  { %6118 = vrot.lane.b32.xlu1 %v6900_v59, %s7360_s26  ;;  %v3550_v16 = vpop.xlane.xlu0 %3549 }
0x1881   :  { %v3554_v17 = vsub.f32 %v5554_v61, %v3550_v16 }
0x1883   :  { %v3561_v43 = vmul.f32 1.442695, %v3554_v17 }
0x1884   :  { %6128 = vrot.lane.b32.xlu1 %v6900_v59, %s7361_s28  ;;  %6123 = vrot.lane.b32.xlu0 %v6908_v15, %s7360_s26 }
0x1885   :  { %6263 = vpow2.f32 %v3561_v43 }
0x1886   :  { %6265 = vpow2.f32 %v3559_v60 }
0x1888   :  { %6133 = vrot.lane.b32.xlu1 %v6908_v15, %s7361_s28 }
0x188c   :  { %3759 = vrot.lane.b32.xlu1 %v6916_v18, %s7362_s30 }
0x188f   :  { %v6264_v49 = vpop.eup %6263 }
0x1890   :  { %v3572_v48 = vsel %vm478_vm4, %v6264_v49, 0.0  ;;  %v6266_v21 = vpop.eup %6265 }
0x1891   :  { %v3569_v29 = vsel %vm478_vm4, %v6266_v21, 0.0 }
0x18a3   :  { %3573 = vadd.xlane.f32.xlu0 %v3572_v48 }
0x18b0   :  { %3570 = vadd.xlane.f32.xlu1 %v3569_v29 }
0x18b9   :  { %3757 = vrot.lane.b32.xlu0 %v6902_v9, %s7362_s30 }
0x18bd   :  { %3848 = vrot.lane.b32.xlu0 %v6918_v19, %s7362_s30 }
0x18c1   :  { %3850 = vrot.lane.b32.xlu1 %v6928_v31, %s7362_s30 }
0x18fb   :  { %v3568_v18 = vpop.xlane.xlu0 %3567 }
0x18fc   :  { %6267 = vrcp.f32 %v3568_v18  ;;  %v3565_v22 = vpop.xlane.xlu1 %3564 }
0x18fd   :  { %6269 = vrcp.f32 %v3565_v22 }
0x18ff   :  { %v6124_v23 = vpop.permute.xlu0 %6123 }
0x1900   :  { %v6126_v24 = vunpack.i.h.bf16 %v6124_v23  ;;  %v6125_v30 = vunpack.i.l.bf16 %v6124_v23  ;;  %v6119_v36 = vpop.permute.xlu1 %6118 }
0x1901   :  { %v6121_v27 = vunpack.i.h.bf16 %v6119_v36  ;;  %v6120_v32 = vunpack.i.l.bf16 %v6119_v36 }
0x1902   :  { %v5893_v33 = vpack.c.bf16 %v6126_v24, %v6125_v30 }
0x1903   :  { %v5889_v34 = vpack.c.bf16 %v6121_v27, %v6120_v32 }
0x1904   :  { %v6129_v38 = vpop.permute.xlu1 %6128  ;;  %5894 = vmatprep.subr.bf16.mxu1 %v5893_v33 }
0x1905   :  { %v6131_v9 = vunpack.i.h.bf16 %v6129_v38  ;;  %v6130_v41 = vunpack.i.l.bf16 %v6129_v38  ;;  %5890 = vmatprep.subr.bf16.mxu0 %v5889_v34  ;;  %5896 = vmatpush3.bf16.msra.mxu1 %v5893_v33 }
0x1906   :  { %v6268_v19 = vpop.eup %6267  ;;  %5892 = vmatpush3.bf16.msra.mxu0 %v5889_v34 }
0x1907   :  { %v6270_v31 = vpop.eup %6269  ;;  %v5897_v37 = vpack.c.bf16 %v6131_v9, %v6130_v41  ;;  %v3580_v47 = vmul.f32 %v6268_v19, %v6260_v11 }
0x1908   :  { %v6134_v40 = vpop.permute.xlu1 %6133  ;;  %v3579_v42 = vmul.f32 %v6270_v31, %v6262_v12 }
0x1909   :  { %v6136_v50 = vunpack.i.h.bf16 %v6134_v40  ;;  %v6135_v51 = vunpack.i.l.bf16 %v6134_v40  ;;  %5899 = vmatprep.subr.msk.bf16.mxu0 %vm6518_vm3, %v5897_v37 }
0x190a   :  { %5559 = vmatprep.mubr.msk.f32.mxu0 %vm478_vm4, %v3579_v42 }
0x190b   :  { %v5903_v55 = vpack.c.bf16 %v6136_v50, %v6135_v51  ;;  %5560 = vmatmul.mubr.msk.f32.vlgmr.msra.gmra.mrb[30].mxu0 %vm478_vm4, %v3580_v47 }
0x190c   :  { %v3760_v26 = vpop.permute.xlu1 %3759 }
0x190d   :  { %5905 = vmatprep.subr.msk.bf16.mxu1 %vm6518_vm3, %v5903_v55 }
0x190f   :  { %5902 = vmatpush3.bf16.xpose.msk.msra.mxu0 %vm6518_vm3, %v5897_v37 }
0x1930   :  { %v3574_v56 = vpop.xlane.xlu0 %3573 }
0x1931   :  { %6271 = vrcp.f32 %v3574_v56 }
0x1934   :  { %v3758_v25 = vpop.permute.xlu0 %3757 }
0x1935   :  { %5573 = vmatprep.mubr.msk.f32.mxu0 %vm301_vm2, %v3758_v25 }
0x1936   :  { %5574 = vmatmul.mubr.msk.f32.vlgmr.msra.gmra.mrb[32].mxu0 %vm301_vm2, %v3760_v26 }
0x1938   :  { %v3849_v1 = vpop.permute.xlu0 %3848 }
0x193b   :  { %v6272_v62 = vpop.eup %6271 }
0x193c   :  { %v3582_v5 = vmul.f32 %v6272_v62, %v6264_v49 }
0x193d   :  { %v3571_v61 = vpop.xlane.xlu1 %3570 }
0x193e   :  { %6273 = vrcp.f32 %v3571_v61 }
0x1941   :  { %v3851_v3 = vpop.permute.xlu1 %3850 }
0x1948   :  { %v6274_v63 = vpop.eup %6273 }
0x1949   :  { %v3581_v0 = vmul.f32 %v6274_v63, %v6266_v21 }
0x194b   :  { %5566 = vmatprep.mubr.msk.f32.mxu1 %vm478_vm4, %v3581_v0 }
0x194c   :  { %5567 = vmatmul.mubr.msk.f32.vlgmr.msra.gmra.mrb[46].mxu1 %vm478_vm4, %v3582_v5 }
0x194d   :  { %5908 = vmatpush3.bf16.xpose.msk.msra.mxu1 %vm6518_vm3, %v5903_v55  ;;  %5580 = vmatprep.mubr.msk.f32.mxu1 %vm301_vm2, %v3849_v1  ;;  %v4970_v1 = vld [vmem:[%s7316_s6 + $0x20] sm:$0xff] }
0x1954   :  { %5581 = vmatmul.mubr.msk.f32.vlgmr.msra.gmra.mrb[48].mxu1 %vm301_vm2, %v3851_v3  ;;  %v4971_v3 = vld [vmem:[%s7316_s6 + $0x28] sm:$0xff] }
0x19de   :  { %v5561_v6 = vpop.f32.mrb[30].mxu0 }
0x19df   :  { %v3661_v8 = vpop.f32.mrb[31].mxu0 }
0x1a09   :  { %v5575_v10 = vpop.f32.mrb[32].mxu0 }
0x1a0a   :  { %v3839_v11 = vpop.f32.mrb[33].mxu0  ;;  %v3942_v12 = vsel %vm478_vm4, %v5575_v10, -inf }
0x1a0b   :  { %3943 = vmax.xlane.f32.xlu1 %v3942_v12  ;;  %v3939_v13 = vsel %vm478_vm4, %v3839_v11, -inf }
0x1a0c   :  { %3940 = vmax.xlane.f32.xlu0 %v3939_v13 }
0x1a1f   :  { %v7070_v7 = vpop.f32.mrb[46].mxu1 }
0x1a20   :  { %v7072_v14 = vpop.f32.mrb[47].mxu1 }
0x1a27   :  { %v5582_v53 = vpop.f32.mrb[48].mxu1 }
0x1a28   :  { %v3930_v16 = vpop.f32.mrb[49].mxu1  ;;  %v3948_v43 = vsel %vm478_vm4, %v5582_v53, -inf }
0x1a29   :  { %v3945_v17 = vsel %vm478_vm4, %v3930_v16, -inf }
0x1a2a   :  { %3946 = vmax.xlane.f32.xlu0 %v3945_v17 }
0x1a2e   :  { %3949 = vmax.xlane.f32.xlu0 %v3948_v43 }
0x1a98   :  { %v3944_v20 = vpop.xlane.xlu1 %3943 }
0x1a99   :  { %v3952_v60 = vsub.f32 %v5575_v10, %v3944_v20  ;;  %v3941_v49 = vpop.xlane.xlu0 %3940  ;;  %v4973_v10 = vld [vmem:[%s7316_s6 + $0x38] sm:$0xff] }
0x1a9a   :  { %v3951_v48 = vsub.f32 %v3839_v11, %v3941_v49 }
0x1a9b   :  { %v3957_v21 = vmul.f32 1.442695, %v3952_v60 }
0x1a9c   :  { %v3955_v29 = vmul.f32 1.442695, %v3951_v48 }
0x1a9d   :  { %6275 = vpow2.f32 %v3957_v21 }
0x1a9e   :  { %6277 = vpow2.f32 %v3955_v29 }
0x1aa7   :  { %v6276_v18 = vpop.eup %6275 }
0x1aa8   :  { %v6278_v22 = vpop.eup %6277  ;;  %v3966_v23 = vsel %vm478_vm4, %v6276_v18, 0.0 }
0x1aa9   :  { %3967 = vadd.xlane.f32.xlu0 %v3966_v23  ;;  %v3963_v24 = vsel %vm478_vm4, %v6278_v22, 0.0 }
0x1aaa   :  { %3964 = vadd.xlane.f32.xlu1 %v3963_v24 }
0x1ab7   :  { %v3947_v30 = vpop.xlane.xlu0 %3946 }
0x1ab8   :  { %v3953_v36 = vsub.f32 %v3930_v16, %v3947_v30 }
0x1aba   :  { %v3959_v27 = vmul.f32 1.442695, %v3953_v36 }
0x1abb   :  { %v3950_v32 = vpop.xlane.xlu0 %3949 }
0x1abc   :  { %6279 = vpow2.f32 %v3959_v27  ;;  %v3954_v33 = vsub.f32 %v5582_v53, %v3950_v32 }
0x1abe   :  { %v3961_v34 = vmul.f32 1.442695, %v3954_v33 }
0x1ac0   :  { %6281 = vpow2.f32 %v3961_v34 }
0x1ac6   :  { %v6280_v38 = vpop.eup %6279 }
0x1ac7   :  { %v3969_v9 = vsel %vm478_vm4, %v6280_v38, 0.0 }
0x1ac8   :  { %3970 = vadd.xlane.f32.xlu1 %v3969_v9 }
0x1aca   :  { %v6282_v41 = vpop.eup %6281 }
0x1acb   :  { %v3972_v19 = vsel %vm478_vm4, %v6282_v41, 0.0 }
0x1acc   :  { %3973 = vadd.xlane.f32.xlu0 %v3972_v19 }
0x1ad9   :  { %6138 = vrot.lane.b32.xlu1 %v6900_v59, %s7363_s2 }
0x1add   :  { %4161 = vrot.lane.b32.xlu1 %v7022_v54, %s7364_s29 }
0x1ae1   :  { %4163 = vrot.lane.b32.xlu1 %v7020_v52, %s7364_s29 }
0x1ae2   :  { %6143 = vrot.lane.b32.xlu0 %v6908_v15, %s7363_s2 }
0x1ae5   :  { %4179 = vrot.lane.b32.xlu1 %v5561_v6, %s7365_s4  ;;  %v4972_v6 = vld [vmem:[%s7316_s6 + $0x30] sm:$0xff] }
0x1ae6   :  { %4177 = vrot.lane.b32.xlu0 %v3661_v8, %s7365_s4  ;;  %v5917_v8 = vpack.c.bf16 %v4971_v3, %v4970_v1  ;;  %v5921_v11 = vpack.c.bf16 %v4973_v10, %v4972_v6 }
0x1b36   :  { %v3968_v59 = vpop.xlane.xlu0 %3967 }
0x1b37   :  { %v3965_v31 = vpop.xlane.xlu1 %3964 }
0x1b38   :  { %6283 = vrcp.f32 %v3965_v31 }
0x1b39   :  { %6285 = vrcp.f32 %v3968_v59 }
0x1b42   :  { %v6284_v37 = vpop.eup %6283 }
0x1b43   :  { %v3979_v40 = vmul.f32 %v6284_v37, %v6278_v22  ;;  %v6286_v51 = vpop.eup %6285 }
0x1b44   :  { %v3980_v61 = vmul.f32 %v6286_v51, %v6276_v18 }
0x1b45   :  { %5587 = vmatprep.mubr.msk.f32.mxu0 %vm478_vm4, %v3979_v40 }
0x1b55   :  { %v3971_v42 = vpop.xlane.xlu1 %3970 }
0x1b56   :  { %6287 = vrcp.f32 %v3971_v42 }
0x1b59   :  { %v6139_v54 = vpop.permute.xlu1 %6138  ;;  %v3974_v47 = vpop.xlane.xlu0 %3973 }
0x1b5a   :  { %v6141_v52 = vunpack.i.h.bf16 %v6139_v54  ;;  %v6140_v50 = vunpack.i.l.bf16 %v6139_v54  ;;  %6289 = vrcp.f32 %v3974_v47 }
0x1b5c   :  { %v5909_v15 = vpack.c.bf16 %v6141_v52, %v6140_v50 }
0x1b5d   :  { %v6144_v55 = vpop.permute.xlu0 %6143  ;;  %v4162_v17 = vpop.permute.xlu1 %4161 }
0x1b5e   :  { %v6146_v56 = vunpack.i.h.bf16 %v6144_v55  ;;  %v6145_v25 = vunpack.i.l.bf16 %v6144_v55  ;;  %5910 = vmatprep.subr.bf16.mxu0 %v5909_v15 }
0x1b5f   :  { %5912 = vmatpush3.bf16.msra.mxu0 %v5909_v15 }
0x1b60   :  { %v6288_v26 = vpop.eup %6287  ;;  %v5913_v62 = vpack.c.bf16 %v6146_v56, %v6145_v25  ;;  %5918 = vmatprep.subr.bf16.mxu0 %v5917_v8 }
0x1b61   :  { %v3981_v63 = vmul.f32 %v6288_v26, %v6280_v38  ;;  %v4164_v43 = vpop.permute.xlu1 %4163  ;;  %v4178_v60 = vpop.permute.xlu0 %4177 }
0x1b62   :  { %5588 = vmatmul.mubr.msk.f32.vlgmr.msra.gmra.mrb[34].mxu0 %vm478_vm4, %v3980_v61  ;;  %5914 = vmatprep.subr.bf16.mxu1 %v5913_v62 }
0x1b63   :  { %5916 = vmatpush3.bf16.msra.mxu1 %v5913_v62  ;;  %5594 = vmatprep.mubr.msk.f32.mxu1 %vm478_vm4, %v3981_v63 }
0x1b64   :  { %v6290_v0 = vpop.eup %6289  ;;  %5920 = vmatpush3.bf16.msra.mxu0 %v5917_v8 }
0x1b65   :  { %v3982_v5 = vmul.f32 %v6290_v0, %v6282_v41  ;;  %5922 = vmatprep.subr.bf16.mxu0 %v5921_v11  ;;  %v4180_v20 = vpop.permute.xlu1 %4179 }
0x1b67   :  { %5595 = vmatmul.mubr.msk.f32.vlgmr.msra.gmra.mrb[50].mxu1 %vm478_vm4, %v3982_v5 }
0x1b68   :  { %5924 = vmatpush3.bf16.msra.mxu0 %v5921_v11 }
0x1c35   :  { %v5589_v12 = vpop.f32.mrb[34].mxu0 }
0x1c36   :  { %4195 = vrot.lane.b32.xlu1 %v5589_v12, %s7366_s24  ;;  %v4061_v13 = vpop.f32.mrb[35].mxu0 }
0x1c37   :  { %4193 = vrot.lane.b32.xlu0 %v4061_v13, %s7366_s24  ;;  %v4984_v13 = vld [vmem:[%s7318_s10 + $0x20] sm:$0xff] }
0x1c3a   :  { %4167 = vrot.lane.b32.xlu1 %v7026_v57, %s7364_s29  ;;  %v5596_v53 = vpop.f32.mrb[50].mxu1  ;;  %v4205_v57 = vsel %vm301_vm2, %v6974_v28, %v4162_v17  ;;  %v4986_v17 = vld [vmem:[%s7318_s10 + $0x30] sm:$0xff] }
0x1c3b   :  { %4165 = vrot.lane.b32.xlu0 %v7028_v45, %s7364_s29  ;;  %v4148_v16 = vpop.f32.mrb[51].mxu1  ;;  %v4206_v45 = vsel %vm301_vm2, %v6972_v35, %v4164_v43  ;;  %v4987_v43 = vld [vmem:[%s7318_s10 + $0x38] sm:$0xff] }
0x1c3e   :  { %4183 = vrot.lane.b32.xlu1 %v7070_v7, %s7365_s4  ;;  %v4209_v7 = vsel %vm478_vm4, %v4205_v57, %v4178_v60  ;;  %v4994_v60 = vld [vmem:[%s7319_s12 + $0x80] sm:$0xff]  ;;  %v4995_v57 = vld [vmem:[%s7319_s12 + $0x88] sm:$0xff] }
0x1c3f   :  { %4181 = vrot.lane.b32.xlu0 %v7072_v14, %s7365_s4  ;;  %v4210_v14 = vsel %vm478_vm4, %v4206_v45, %v4180_v20  ;;  %v5929_v20 = vpack.c.bf16 %v4987_v43, %v4986_v17  ;;  %v5933_v45 = vpack.c.bf16 %v4995_v57, %v4994_v60 }
0x1c41   :  { %5934 = vmatprep.subr.bf16.mxu0 %v5933_v45 }
0x1c42   :  { %4199 = vrot.lane.b32.xlu1 %v5596_v53, %s7366_s24  ;;  %v4985_v53 = vld [vmem:[%s7318_s10 + $0x28] sm:$0xff] }
0x1c43   :  { %4197 = vrot.lane.b32.xlu0 %v4148_v16, %s7366_s24  ;;  %v5925_v16 = vpack.c.bf16 %v4985_v53, %v4984_v13 }
0x1c45   :  { %5926 = vmatprep.subr.bf16.mxu1 %v5925_v16 }
0x1c46   :  { %5928 = vmatpush3.bf16.msra.mxu1 %v5925_v16 }
0x1c47   :  { %5930 = vmatprep.subr.bf16.mxu1 %v5929_v20 }
0x1c4a   :  { %5932 = vmatpush3.bf16.msra.mxu1 %v5929_v20 }
0x1ca8   :  { %v4196_v49 = vpop.permute.xlu1 %4195 }
0x1ca9   :  { %v4194_v48 = vpop.permute.xlu0 %4193  ;;  %v4214_v29 = vsel %vm1953_vm5, %v4210_v14, %v4196_v49  ;;  %v4996_v49 = vld [vmem:[%s7319_s12 + $0x90] sm:$0xff]  ;;  %v4998_v14 = vld [vmem:[%s7319_s12 + $0xa0] sm:$0xff] }
0x1caa   :  { %v4213_v21 = vsel %vm1953_vm5, %v4209_v7, %v4194_v48  ;;  %v4997_v7 = vld [vmem:[%s7319_s12 + $0x98] sm:$0xff] }
0x1cab   :  { %5605 = vmatprep.mubr.msk.f32.mxu0 %vm193_vm1, %v4213_v21  ;;  %v5937_v48 = vpack.c.bf16 %v4997_v7, %v4996_v49  ;;  %v4999_v21 = vld [vmem:[%s7319_s12 + $0xa8] sm:$0xff] }
0x1cac   :  { %v4168_v18 = vpop.permute.xlu1 %4167  ;;  %5606 = vmatmul.mubr.msk.f32.vlgmr.msra.gmra.mrb[36].mxu0 %vm193_vm1, %v4214_v29  ;;  %v5941_v29 = vpack.c.bf16 %v4999_v21, %v4998_v14 }
0x1cad   :  { %v4166_v22 = vpop.permute.xlu0 %4165  ;;  %v4208_v30 = vsel %vm301_vm2, %v6978_v44, %v4168_v18  ;;  %5936 = vmatpush3.bf16.msra.mxu0 %v5933_v45  ;;  %v5000_v18 = vld [vmem:[%s7319_s12 + $0xb0] sm:$0xff]  ;;  %v5011_v45 = vld [vmem:[%s7323_s13 + $0x1] ss:$0 sm:$0xff] }
0x1cae   :  { %v4207_v35 = vsel %vm301_vm2, %v6980_v39, %v4166_v22  ;;  %v4975_v39 = vld [vmem:[%s7317_s7 + $0x1] ss:$0 sm:$0xff]  ;;  %5938 = vmatprep.subr.bf16.mxu0 %v5937_v48  ;;  %v5001_v22 = vld [vmem:[%s7319_s12 + $0xb8] sm:$0xff] }
0x1cb0   :  { %v4184_v28 = vpop.permute.xlu1 %4183 }
0x1cb1   :  { %v4182_v23 = vpop.permute.xlu0 %4181  ;;  %v4212_v32 = vsel %vm478_vm4, %v4208_v30, %v4184_v28  ;;  %5940 = vmatpush3.bf16.msra.mxu0 %v5937_v48  ;;  %v5945_v28 = vpack.c.bf16 %v5001_v22, %v5000_v18  ;;  %v5004_v30 = vld [vmem:[%s7319_s12 + $0xd0] sm:$0xff] }
0x1cb2   :  { %v4211_v36 = vsel %vm478_vm4, %v4207_v35, %v4182_v23  ;;  %5942 = vmatprep.subr.bf16.mxu0 %v5941_v29  ;;  %v5002_v23 = vld [vmem:[%s7319_s12 + $0xc0] sm:$0xff]  ;;  %v5003_v35 = vld [vmem:[%s7319_s12 + $0xc8] sm:$0xff] }
0x1cb4   :  { %v4200_v24 = vpop.permute.xlu1 %4199 }
0x1cb5   :  { %v4198_v27 = vpop.permute.xlu0 %4197  ;;  %v4216_v34 = vsel %vm1953_vm5, %v4212_v32, %v4200_v24  ;;  %5944 = vmatpush3.bf16.msra.mxu0 %v5941_v29  ;;  %v5949_v24 = vpack.c.bf16 %v5003_v35, %v5002_v23  ;;  %v5006_v32 = vld [vmem:[%s7319_s12 + $0xe0] sm:$0xff] }
0x1cb6   :  { %v4215_v33 = vsel %vm1953_vm5, %v4211_v36, %v4198_v27  ;;  %5946 = vmatprep.subr.bf16.mxu0 %v5945_v28  ;;  %v5005_v36 = vld [vmem:[%s7319_s12 + $0xd8] sm:$0xff] }
0x1cb7   :  { %5608 = vmatprep.mubr.msk.f32.mxu0 %vm193_vm1, %v4215_v33  ;;  %v5953_v27 = vpack.c.bf16 %v5005_v36, %v5004_v30  ;;  %v5007_v33 = vld [vmem:[%s7319_s12 + $0xe8] sm:$0xff] }
0x1cb8   :  { %5609 = vmatmul.mubr.msk.f32.gmra.mrb[38].mxu0 %vm193_vm1, %v4216_v34  ;;  %v5957_v34 = vpack.c.bf16 %v5007_v33, %v5006_v32 }
0x1cb9   :  { %5948 = vmatpush3.bf16.msra.mxu0 %v5945_v28 }
0x1cba   :  { %5950 = vmatprep.subr.bf16.mxu0 %v5949_v24 }
0x1cbd   :  { %5952 = vmatpush3.bf16.msra.mxu0 %v5949_v24 }
0x1cbe   :  { %5954 = vmatprep.subr.bf16.mxu0 %v5953_v27 }
0x1cc1   :  { %5956 = vmatpush3.bf16.msra.mxu0 %v5953_v27 }
0x1cc2   :  { %5958 = vmatprep.subr.bf16.mxu0 %v5957_v34 }
0x1cc5   :  { %5960 = vmatpush3.bf16.msra.mxu0 %v5957_v34 }
0x1d7f   :  { %v5607_v38 = vpop.f32.mrb[36].mxu0 }
0x1d80   :  { %v4314_v9 = vadd.f32 %v5607_v38, %v4975_v39  ;;  %v4308_v44 = vpop.f32.mrb[37].mxu0 }
0x1d81   :  { %v4309_v41 = vadd.f32 %v4975_v39, %v4308_v44 }
0x1d82   :  { %v4328_v19 = vadd.f32 %v4314_v9, %v6883_v46 }
0x1d83   :  { %v4327_v31 = vadd.f32 %v4309_v41, %v6881_v58 }
0x1d84   :  { %v4338_v37 = vsel %vm193_vm1, %v4328_v19, 0.0 }
0x1d85   :  { %4339 = vadd.xlane.f32.xlu1 %v4338_v37  ;;  %v4335_v40 = vsel %vm193_vm1, %v4327_v31, 0.0 }
0x1d86   :  { %4336 = vadd.xlane.f32.xlu0 %v4335_v40 }
0x1d8b   :  { %v5610_v59 = vpop.f32.mrb[38].mxu0 }
0x1d8c   :  { %v4318_v42 = vpop.f32.mrb[39].mxu0  ;;  %v4324_v54 = vadd.f32 %v5610_v59, %v4975_v39  ;;  %v4982_v59 = vld [vmem:[%s7320_s8 + $0x1] ss:$0 sm:$0xff] }
0x1d8d   :  { %v4319_v47 = vadd.f32 %v4975_v39, %v4318_v42 }
0x1d8e   :  { %v4330_v50 = vadd.f32 %v4324_v54, %v6891_v2 }
0x1d8f   :  { %v4329_v52 = vadd.f32 %v4319_v47, %v6889_v4 }
0x1d90   :  { %v4344_v46 = vsel %vm193_vm1, %v4330_v50, 0.0 }
0x1d91   :  { %v4341_v15 = vsel %vm193_vm1, %v4329_v52, 0.0 }
0x1d92   :  { %4342 = vadd.xlane.f32.xlu0 %v4341_v15 }
0x1d96   :  { %4345 = vadd.xlane.f32.xlu0 %v4344_v46  ;;  %v4983_v46 = vld [vmem:[%s7321_s9 + $0x1] ss:$0 sm:$0xff] }
0x1e12   :  { %v4340_v58 = vpop.xlane.xlu1 %4339 }
0x1e13   :  { %v4348_v51 = vmul.f32 0.03125, %v4340_v58  ;;  %v4337_v55 = vpop.xlane.xlu0 %4336 }
0x1e14   :  { %v4347_v56 = vmul.f32 0.03125, %v4337_v55 }
0x1e15   :  { %v7149_v25 = vsub.f32 %v4328_v19, %v4348_v51 }
0x1e16   :  { %v7151_v26 = vsub.f32 %v4327_v31, %v4347_v56 }
0x1e17   :  { %v4356_v61 = vmul.f32 %v7149_v25, %v7149_v25 }
0x1e18   :  { %v4355_v4 = vmul.f32 %v7151_v26, %v7151_v26 }
0x1e19   :  { %v4362_v2 = vsel %vm193_vm1, %v4356_v61, 0.0 }
0x1e1a   :  { %4363 = vadd.xlane.f32.xlu0 %v4362_v2  ;;  %v4359_v62 = vsel %vm193_vm1, %v4355_v4, 0.0 }
0x1e1b   :  { %4360 = vadd.xlane.f32.xlu1 %v4359_v62 }
0x1e1f   :  { %v4343_v63 = vpop.xlane.xlu0 %4342 }
0x1e20   :  { %v4349_v0 = vmul.f32 0.03125, %v4343_v63 }
0x1e22   :  { %v7159_v5 = vsub.f32 %v4329_v52, %v4349_v0 }
0x1e23   :  { %v4346_v1 = vpop.xlane.xlu0 %4345 }
0x1e24   :  { %v4350_v3 = vmul.f32 0.03125, %v4346_v1  ;;  %v4357_v6 = vmul.f32 %v7159_v5, %v7159_v5 }
0x1e26   :  { %v7163_v8 = vsub.f32 %v4330_v50, %v4350_v3  ;;  %v4365_v10 = vsel %vm193_vm1, %v4357_v6, 0.0  ;;  %v5008_v3 = vld [vmem:[%s7319_s12 + $0xf0] sm:$0xff]  ;;  %v5009_v6 = vld [vmem:[%s7319_s12 + $0xf8] sm:$0xff] }
0x1e27   :  { %4366 = vadd.xlane.f32.xlu1 %v4365_v10 }
0x1e28   :  { %v4358_v11 = vmul.f32 %v7163_v8, %v7163_v8 }
0x1e2a   :  { %v4368_v12 = vsel %vm193_vm1, %v4358_v11, 0.0 }
0x1e2b   :  { %4369 = vadd.xlane.f32.xlu0 %v4368_v12 }
0x1ea7   :  { %v4364_v39 = vpop.xlane.xlu0 %4363 }
0x1ea8   :  { %v4372_v38 = vmul.f32 0.03125, %v4364_v39  ;;  %v4361_v9 = vpop.xlane.xlu1 %4360 }
0x1ea9   :  { %v4371_v44 = vmul.f32 0.03125, %v4361_v9 }
0x1eaa   :  { %v4376_v41 = vadd.f32 1e-05, %v4372_v38 }
0x1eab   :  { %v4375_v19 = vadd.f32 1e-05, %v4371_v44 }
0x1eac   :  { %6291 = vrsqrt.f32 %v4376_v41 }
0x1ead   :  { %6293 = vrsqrt.f32 %v4375_v19 }
0x1eb4   :  { %v4367_v31 = vpop.xlane.xlu1 %4366 }
0x1eb5   :  { %v4373_v37 = vmul.f32 0.03125, %v4367_v31 }
0x1eb6   :  { %v6292_v40 = vpop.eup %6291 }
0x1eb7   :  { %v6294_v42 = vpop.eup %6293  ;;  %v4384_v54 = vmul.f32 %v6292_v40, %v7149_v25  ;;  %v4377_v47 = vadd.f32 1e-05, %v4373_v37 }
0x1eb8   :  { %v4370_v52 = vpop.xlane.xlu0 %4369  ;;  %v4383_v50 = vmul.f32 %v6294_v42, %v7151_v26 }
0x1eb9   :  { %6295 = vrsqrt.f32 %v4377_v47  ;;  %v4374_v15 = vmul.f32 0.03125, %v4370_v52  ;;  %v4394_v58 = vmul.f32 %v4982_v59, %v4384_v54 }
0x1eba   :  { %v4393_v51 = vmul.f32 %v4982_v59, %v4383_v50 }
0x1ebb   :  { %v4378_v55 = vadd.f32 1e-05, %v4374_v15  ;;  %v4404_v61 = vadd.f32 %v4983_v46, %v4394_v58 }
0x1ebc   :  { %v4403_v56 = vadd.f32 %v4983_v46, %v4393_v51 }
0x1ebd   :  { %6297 = vrsqrt.f32 %v4378_v55  ;;  %v4711_v55 = vld [vmem:[%s7326_s16] sm:$0xff] }
0x1ebe   :  { %5619 = vmatprep.mubr.msk.f32.mxu1 %vm193_vm1, %v4403_v56 }
0x1ebf   :  { %5620 = vmatmul.mubr.msk.f32.vlgmr.msra.gmra.mrb[52].mxu1 %vm193_vm1, %v4404_v61 }
0x1ec3   :  { %v6296_v25 = vpop.eup %6295 }
0x1ec4   :  { %v4385_v4 = vmul.f32 %v6296_v25, %v7159_v5  ;;  %v5961_v5 = vpack.c.bf16 %v5009_v6, %v5008_v3  ;;  %v4713_v25 = vld [vmem:[%s7326_s16 + $0x10] sm:$0xff] }
0x1ec6   :  { %v4395_v26 = vmul.f32 %v4982_v59, %v4385_v4  ;;  %5962 = vmatprep.subr.bf16.mxu0 %v5961_v5  ;;  %v4714_v4 = vld [vmem:[%s7326_s16 + $0x18] sm:$0xff] }
0x1ec7   :  { %v6298_v2 = vpop.eup %6297  ;;  %5964 = vmatpush3.bf16.msra.mxu0 %v5961_v5 }
0x1ec8   :  { %v4405_v62 = vadd.f32 %v4983_v46, %v4395_v26  ;;  %v4386_v63 = vmul.f32 %v6298_v2, %v7163_v8  ;;  %v4989_v8 = vld [vmem:[%s7322_s11 + $0x1] ss:$0 sm:$0xff]  ;;  %v5969_v26 = vpack.c.bf16 %v4714_v4, %v4713_v25 }
0x1eca   :  { %5622 = vmatprep.mubr.msk.f32.mxu1 %vm193_vm1, %v4405_v62  ;;  %v4396_v0 = vmul.f32 %v4982_v59, %v4386_v63 }
0x1ecc   :  { %v4406_v1 = vadd.f32 %v4983_v46, %v4396_v0 }
0x1ece   :  { %5623 = vmatmul.mubr.msk.f32.gmra.mrb[54].mxu1 %vm193_vm1, %v4406_v1 }
0x1f92   :  { %v5621_v10 = vpop.f32.mrb[52].mxu1 }
0x1f93   :  { %v4504_v11 = vadd.f32 %v5621_v10, %v4989_v8  ;;  %v4498_v12 = vpop.f32.mrb[53].mxu1 }
0x1f94   :  { %v4499_v13 = vadd.f32 %v4989_v8, %v4498_v12 }
0x1f95   :  { %v4518_v16 = vmax.f32 %v4504_v11, 0.0 }
0x1f96   :  { %v4517_v53 = vmax.f32 %v4499_v13, 0.0 }
0x1f98   :  { %5657 = vmatprep.mubr.f32.mxu0 %v4517_v53 }
0x1f99   :  { %5658 = vmatmul.mubr.f32.vlgmr.msra.gmra.mrb[40].mxu0 %v4518_v16 }
0x1fa1   :  { %v5624_v17 = vpop.f32.mrb[54].mxu1 }
0x1fa2   :  { %v4514_v43 = vadd.f32 %v5624_v17, %v4989_v8  ;;  %v4508_v20 = vpop.f32.mrb[55].mxu1 }
0x1fa3   :  { %v4509_v60 = vadd.f32 %v4989_v8, %v4508_v20  ;;  %v5014_v8 = vld [vmem:[%s7324_s14 + $0x1] ss:$0 sm:$0xff] }
0x1fa4   :  { %v4520_v49 = vmax.f32 %v4514_v43, 0.0  ;;  %v5015_v43 = vld [vmem:[%s7325_s15 + $0x1] ss:$0 sm:$0xff] }
0x1fa5   :  { %v4519_v57 = vmax.f32 %v4509_v60, 0.0 }
0x1fa7   :  { %5660 = vmatprep.mubr.f32.mxu0 %v4519_v57 }
0x1fa8   :  { %5661 = vmatmul.mubr.f32.gmra.mrb[42].mxu0 %v4520_v49 }
0x206c   :  { %v5659_v7 = vpop.f32.mrb[40].mxu0 }
0x206d   :  { %v4618_v48 = vadd.f32 %v5659_v7, %v5011_v45  ;;  %v4612_v14 = vpop.f32.mrb[41].mxu0 }
0x206e   :  { %v4613_v21 = vadd.f32 %v5011_v45, %v4612_v14 }
0x206f   :  { %v4632_v29 = vadd.f32 %v4618_v48, %v4404_v61 }
0x2070   :  { %v4631_v18 = vadd.f32 %v4613_v21, %v4403_v56  ;;  %v4712_v56 = vld [vmem:[%s7326_s16 + $0x8] sm:$0xff] }
0x2071   :  { %v4642_v22 = vsel %vm193_vm1, %v4632_v29, 0.0  ;;  %v5965_v61 = vpack.c.bf16 %v4712_v56, %v4711_v55 }
0x2072   :  { %4643 = vadd.xlane.f32.xlu0 %v4642_v22  ;;  %v4639_v28 = vsel %vm193_vm1, %v4631_v18, 0.0 }
0x2073   :  { %4640 = vadd.xlane.f32.xlu1 %v4639_v28  ;;  %5966 = vmatprep.subr.bf16.mxu1 %v5965_v61 }
0x2074   :  { %5968 = vmatpush3.bf16.msra.mxu1 %v5965_v61 }
0x2075   :  { %5970 = vmatprep.subr.bf16.mxu1 %v5969_v26 }
0x2078   :  { %5972 = vmatpush3.bf16.msra.mxu1 %v5969_v26 }
0x207b   :  { %v5662_v23 = vpop.f32.mrb[42].mxu0 }
0x207c   :  { %v4628_v35 = vadd.f32 %v5662_v23, %v5011_v45  ;;  %v4622_v24 = vpop.f32.mrb[43].mxu0  ;;  %v5016_v23 = vld [vmem:[%s7327_s17] ss:$0 sm:$0xff] }
0x207d   :  { %v4623_v30 = vadd.f32 %v5011_v45, %v4622_v24 }
0x207e   :  { %v4634_v36 = vadd.f32 %v4628_v35, %v4406_v1 }
0x207f   :  { %v4633_v27 = vadd.f32 %v4623_v30, %v4405_v62 }
0x2080   :  { %v4648_v32 = vsel %vm193_vm1, %v4634_v36, 0.0 }
0x2081   :  { %4649 = vadd.xlane.f32.xlu0 %v4648_v32  ;;  %v4645_v33 = vsel %vm193_vm1, %v4633_v27, 0.0 }
0x2082   :  { %4646 = vadd.xlane.f32.xlu1 %v4645_v33  ;;  %v6308_v33 = vld [vmem:[%s7354_s27] sm:$0xff] }
0x20ff   :  { %v4644_v34 = vpop.xlane.xlu0 %4643 }
0x2100   :  { %v4652_v39 = vmul.f32 0.03125, %v4644_v34  ;;  %v4641_v38 = vpop.xlane.xlu1 %4640 }
0x2101   :  { %v4651_v9 = vmul.f32 0.03125, %v4641_v38 }
0x2102   :  { %v4656_v44 = vsub.f32 %v4632_v29, %v4652_v39 }
0x2103   :  { %v4655_v41 = vsub.f32 %v4631_v18, %v4651_v9 }
0x2104   :  { %v4660_v19 = vmul.f32 %v4656_v44, %v4656_v44 }
0x2105   :  { %v4659_v31 = vmul.f32 %v4655_v41, %v4655_v41 }
0x2106   :  { %v4666_v37 = vsel %vm193_vm1, %v4660_v19, 0.0 }
0x2107   :  { %4667 = vadd.xlane.f32.xlu0 %v4666_v37  ;;  %v4663_v40 = vsel %vm193_vm1, %v4659_v31, 0.0 }
0x2108   :  { %4664 = vadd.xlane.f32.xlu1 %v4663_v40  ;;  %v6309_v40 = vld [vmem:[%s7354_s27 + $0x18] sm:$0xff] }
0x210e   :  { %v4650_v59 = vpop.xlane.xlu0 %4649 }
0x210f   :  { %v4654_v42 = vmul.f32 0.03125, %v4650_v59  ;;  %v4647_v54 = vpop.xlane.xlu1 %4646 }
0x2110   :  { %v4653_v47 = vmul.f32 0.03125, %v4647_v54 }
0x2111   :  { %v4658_v52 = vsub.f32 %v4634_v36, %v4654_v42  ;;  %v6310_v42 = vld [vmem:[%s7354_s27 + $0x10] sm:$0xff] }
0x2112   :  { %v4657_v50 = vsub.f32 %v4633_v27, %v4653_v47  ;;  %v6307_v27 = vld [vmem:[%s7354_s27 + $0x8] sm:$0xff] }
0x2113   :  { %v4662_v15 = vmul.f32 %v4658_v52, %v4658_v52 }
0x2114   :  { %v4661_v46 = vmul.f32 %v4657_v50, %v4657_v50 }
0x2115   :  { %v4672_v58 = vsel %vm193_vm1, %v4662_v15, 0.0 }
0x2116   :  { %4673 = vadd.xlane.f32.xlu0 %v4672_v58  ;;  %v4669_v51 = vsel %vm193_vm1, %v4661_v46, 0.0 }
0x2117   :  { %4670 = vadd.xlane.f32.xlu1 %v4669_v51 }
0x2194   :  { %v4668_v2 = vpop.xlane.xlu0 %4667 }
0x2195   :  { %v4676_v62 = vmul.f32 0.03125, %v4668_v2  ;;  %v4665_v63 = vpop.xlane.xlu1 %4664 }
0x2196   :  { %v4675_v0 = vmul.f32 0.03125, %v4665_v63 }
0x2197   :  { %v4680_v1 = vadd.f32 1e-05, %v4676_v62 }
0x2198   :  { %v4679_v3 = vadd.f32 1e-05, %v4675_v0 }
0x2199   :  { %6299 = vrsqrt.f32 %v4680_v1 }
0x219a   :  { %6301 = vrsqrt.f32 %v4679_v3 }
0x21a3   :  { %v6300_v6 = vpop.eup %6299  ;;  %v4674_v5 = vpop.xlane.xlu0 %4673 }
0x21a4   :  { %v6302_v10 = vpop.eup %6301  ;;  %v4688_v11 = vmul.f32 %v6300_v6, %v4656_v44  ;;  %v4678_v12 = vmul.f32 0.03125, %v4674_v5  ;;  %v4671_v13 = vpop.xlane.xlu1 %4670 }
0x21a5   :  { %v4677_v53 = vmul.f32 0.03125, %v4671_v13  ;;  %v4687_v16 = vmul.f32 %v6302_v10, %v4655_v41 }
0x21a6   :  { %v4682_v17 = vadd.f32 1e-05, %v4678_v12  ;;  %v4698_v20 = vmul.f32 %v5014_v8, %v4688_v11 }
0x21a7   :  { %v4681_v60 = vadd.f32 1e-05, %v4677_v53  ;;  %v4697_v57 = vmul.f32 %v5014_v8, %v4687_v16 }
0x21a8   :  { %6303 = vrsqrt.f32 %v4682_v17  ;;  %v4708_v45 = vadd.f32 %v5015_v43, %v4698_v20 }
0x21a9   :  { %6305 = vrsqrt.f32 %v4681_v60  ;;  %v4707_v49 = vadd.f32 %v5015_v43, %v4697_v57 }
0x21ab   :  { %5671 = vmatprep.mubr.msk.f32.mxu1 %vm193_vm1, %v4707_v49 }
0x21ac   :  { %5672 = vmatmul.mubr.msk.f32.vlgmr.msra.gmra.mrb[56].mxu1 %vm193_vm1, %v4708_v45 }
0x21b2   :  { %v6304_v7 = vpop.eup %6303 }
0x21b3   :  { %v6306_v48 = vpop.eup %6305  ;;  %v4690_v14 = vmul.f32 %v6304_v7, %v4658_v52 }
0x21b4   :  { %v4689_v21 = vmul.f32 %v6306_v48, %v4657_v50 }
0x21b5   :  { %v4700_v29 = vmul.f32 %v5014_v8, %v4690_v14 }
0x21b6   :  { %v4699_v18 = vmul.f32 %v5014_v8, %v4689_v21 }
0x21b7   :  { %v4710_v28 = vadd.f32 %v5015_v43, %v4700_v29 }
0x21b8   :  { %v4709_v22 = vadd.f32 %v5015_v43, %v4699_v18 }
0x21ba   :  { %5674 = vmatprep.mubr.msk.f32.mxu1 %vm193_vm1, %v4709_v22 }
0x21bb   :  { %5675 = vmatmul.mubr.msk.f32.gmra.mrb[58].mxu1 %vm193_vm1, %v4710_v28 }
0x227f   :  { %v5673_v35 = vpop.f32.mrb[56].mxu1 }
0x2280   :  { %v4806_v24 = vadd.f32 %v5673_v35, %v5016_v23  ;;  %v4800_v30 = vpop.f32.mrb[57].mxu1 }
0x2281   :  { %v4801_v36 = vadd.f32 %v5016_v23, %v4800_v30 }
0x2282   :  { %v4820_v32 = vadd.f32 %v6307_v27, %v4806_v24 }
0x2283   :  { %v4819_v34 = vadd.f32 %v6308_v33, %v4801_v36 }
0x2284   :  { %v4824_v39 = vmax.f32 %v4820_v32, 0.0 }
0x2285   :  { %v4823_v38 = vmax.f32 %v4819_v34, 0.0 }
0x2286   :  { %v4828_v9 = vmin.f32 %v4824_v39, 1.0 }
0x2287   :  { %v4827_v44 = vmin.f32 %v4823_v38, 1.0 }
0x2288   :  { %4832 = vst.msk [vmem:[%s7328_s18 + $0x8] sm:$0xff] %vm78_vm0, %v4828_v9 }
0x2289   :  { %4831 = vst.msk [vmem:[%s7328_s18] sm:$0xff] %vm78_vm0, %v4827_v44 }
0x228e   :  { %v5676_v41 = vpop.f32.mrb[58].mxu1 }
0x228f   :  { %v4816_v19 = vadd.f32 %v5676_v41, %v5016_v23  ;;  %v4810_v31 = vpop.f32.mrb[59].mxu1 }
0x2290   :  { %v4811_v37 = vadd.f32 %v5016_v23, %v4810_v31 }
0x2291   :  { %v4822_v59 = vadd.f32 %v6309_v40, %v4816_v19 }
0x2292   :  { %v4821_v54 = vadd.f32 %v6310_v42, %v4811_v37 }
0x2293   :  { %v4826_v47 = vmax.f32 %v4822_v59, 0.0 }
0x2294   :  { %v4825_v52 = vmax.f32 %v4821_v54, 0.0 }
0x2295   :  { %v4830_v50 = vmin.f32 %v4826_v47, 1.0 }
0x2296   :  { %v4829_v15 = vmin.f32 %v4825_v52, 1.0 }
0x2297   :  { %4834 = vst.msk [vmem:[%s7328_s18 + $0x18] sm:$0xff] %vm78_vm0, %v4830_v50 }
0x2298   :  { %4833 = vst.msk [vmem:[%s7328_s18 + $0x10] sm:$0xff] %vm78_vm0, %v4829_v15 }

</bundles_post_ra>
